<compile_context>
chip_gen: v7x
topology: tpu7x:2x2x1
jax: 0.10.0
libtpu: 0.0.40
codegen_flags: <defaults>
</compile_context>

<pallas_src>
import functools

import jax
import jax.numpy as jnp
from jax.experimental import pallas as pl
from jax.experimental.pallas import tpu as pltpu
import numpy as np


def _pos_enc_kernel(mask_ref, cmats_ref, inv_ref, phase_ref, out_ref, *,
                    Bt, F, HW, normalize, scale):
    # mask_ref : (Bt, 1, HW) int32     (1 = padded, 0 = valid)
    # cmats_ref: (HW, ncols) bf16      ncols = 4*HW if normalize else 2*HW
    # inv_ref  : (F, 1) f32            1 / dim_t
    # phase_ref: (F, 1) f32            0 for even channels, pi/2 for odd (cos == shifted sin)
    # out_ref  : (Bt, 2F, HW) f32      channel-first, spatial flattened (lane-dense)

    # not_mask rows, packed to (Bt, HW) bf16 for the MXU (values are exactly 0/1).
    rows = [(1 - mask_ref[b]).astype(jnp.bfloat16) for b in range(Bt)]   # each (1, HW)
    nm = rows[0] if Bt == 1 else jnp.concatenate(rows, axis=0)           # (Bt, HW)

    # One MXU matmul produces: [cumsum_H | cumsum_W | col_totals | row_totals]
    # f32 accumulation of 0/1 products -> exact integer sums.
    sums = jnp.dot(nm, cmats_ref[...], preferred_element_type=jnp.float32)  # (Bt, ncols)

    y_emb = sums[:, 0 * HW:1 * HW]            # cumsum along H, flattened row-major
    x_emb = sums[:, 1 * HW:2 * HW]            # cumsum along W, flattened row-major
    if normalize:
        eps = 1e-06
        y_emb = (y_emb - 0.5) / (sums[:, 2 * HW:3 * HW] + eps) * scale
        x_emb = (x_emb - 0.5) / (sums[:, 3 * HW:4 * HW] + eps) * scale

    inv = inv_ref[...]        # (F, 1)
    ph = phase_ref[...]       # (F, 1)
    for b in range(Bt):       # static, small
        yb = y_emb[b:b + 1, :]                               # (1, HW)
        xb = x_emb[b:b + 1, :]                               # (1, HW)
        # out[c] = sin(embed * inv_dim_t[c] + phase[c])  (== cos for odd c)
        out_ref[b, 0:F, :] = jnp.sin(yb * inv + ph)          # y half -> channels [0, F)
        out_ref[b, F:2 * F, :] = jnp.sin(xb * inv + ph)      # x half -> channels [F, 2F)


def _choose_batch_block(B, H, W, F):
    """Images per grid step: amortize per-step overhead but keep >=2 grid steps (v7x)."""
    HW = H * W
    per_img = (2 * F * HW * 4) * 3 + 8 * HW * 4   # rough VMEM bytes per image
    budget = 8 << 20                              # stay well inside default scoped VMEM
    bt = 1
    for cand in range(2, B + 1):
        if B % cand:
            continue
        if B // cand < 2:          # keep both v7x TensorCores busy
            break
        if cand * per_img > budget:
            break
        bt = cand
    return bt


def positional_encoding_2d(mask, *, num_pos_feats=64, temperature=10000,
                           normalize=False, scale=None, batch_block=None):
    """mask: (B, H, W) bool. Returns pos: (B, 2*num_pos_feats, H, W) float32 (NCHW)."""
    if scale is not None and not normalize:
        raise ValueError("normalize should be True if scale is passed")
    if scale is None:
        scale = 2 * np.pi

    B, H, W = mask.shape
    F = num_pos_feats
    HW = H * W

    # ---- host-side constants (built once per shape/config; all exact in bf16) ----
    idx = np.arange(HW)
    ih, iw = idx // W, idx % W
    same_col = iw[:, None] == iw[None, :]
    same_row = ih[:, None] == ih[None, :]
    cy = same_col & (ih[:, None] <= ih[None, :])   # cumulative sum along H
    cx = same_row & (iw[:, None] <= iw[None, :])   # cumulative sum along W
    mats = [cy, cx]
    if normalize:
        mats += [same_col, same_row]               # column / row totals (denominators)
    cmats = jnp.asarray(np.concatenate(mats, axis=1).astype(np.float32)).astype(jnp.bfloat16)

    i = np.arange(F, dtype=np.float64)
    dim_t = np.power(float(temperature), 2.0 * np.floor(i / 2) / F)
    inv_dim_t = jnp.asarray((1.0 / dim_t).astype(np.float32).reshape(F, 1))
    phase = jnp.asarray(((np.pi / 2.0) * (i % 2)).astype(np.float32).reshape(F, 1))

    # glue: bool -> int32 and a free flatten of the contiguous mask
    mask_i32 = mask.reshape(B, 1, HW).astype(jnp.int32)

    Bt = batch_block if batch_block is not None else _choose_batch_block(B, H, W, F)
    assert B % Bt == 0

    kernel = functools.partial(_pos_enc_kernel, Bt=Bt, F=F, HW=HW,
                               normalize=normalize, scale=float(scale))

    pos_flat = pl.pallas_call(
        kernel,
        out_shape=jax.ShapeDtypeStruct((B, 2 * F, HW), jnp.float32),
        grid_spec=pltpu.PrefetchScalarGridSpec(
            num_scalar_prefetch=0,
            grid=(B // Bt,),
            in_specs=[
                pl.BlockSpec((Bt, 1, HW), lambda b: (b, 0, 0)),      # mask (per block)
                pl.BlockSpec(cmats.shape, lambda b: (0, 0)),         # cumsum matrix (const)
                pl.BlockSpec((F, 1), lambda b: (0, 0)),              # 1/dim_t (const)
                pl.BlockSpec((F, 1), lambda b: (0, 0)),              # phase (const)
            ],
            out_specs=pl.BlockSpec((Bt, 2 * F, HW), lambda b: (b, 0, 0)),
        ),
        compiler_params=pltpu.CompilerParams(
            dimension_semantics=("parallel",)),
        # NOTE: for much larger H*W / num_pos_feats, also raise vmem_limit_bytes here.
    )(mask_i32, cmats, inv_dim_t, phase)

    # free contiguous reshape to NCHW (no transpose pass)
    return pos_flat.reshape(B, 2 * F, H, W)


def _reference(mask, *, num_pos_feats, temperature, normalize, scale):
    """Pure-JAX reference mirroring the PyTorch forward."""
    if scale is None:
        scale = 2 * np.pi
    not_mask = (~mask).astype(jnp.float32)
    y_embed = jnp.cumsum(not_mask, axis=1)
    x_embed = jnp.cumsum(not_mask, axis=2)
    if normalize:
        eps = 1e-06
        y_embed = (y_embed - 0.5) / (y_embed[:, -1:, :] + eps) * scale
        x_embed = (x_embed - 0.5) / (x_embed[:, :, -1:] + eps) * scale
    i = jnp.arange(num_pos_feats, dtype=jnp.float32)
    dim_t = temperature ** (2.0 * jnp.floor(i / 2) / num_pos_feats)
    pos_x = x_embed[:, :, :, None] / dim_t
    pos_y = y_embed[:, :, :, None] / dim_t
    pos_x = jnp.stack((jnp.sin(pos_x[..., 0::2]), jnp.cos(pos_x[..., 1::2])),
                      axis=4).reshape(*pos_x.shape[:3], -1)
    pos_y = jnp.stack((jnp.sin(pos_y[..., 0::2]), jnp.cos(pos_y[..., 1::2])),
                      axis=4).reshape(*pos_y.shape[:3], -1)
    pos = jnp.concatenate((pos_y, pos_x), axis=3)
    return jnp.transpose(pos, (0, 3, 1, 2))


if __name__ == "__main__":
    B, H, W = 2, 16, 16
    NUM_POS_FEATS = 32
    TEMPERATURE = 10000
    NORMALIZE = True
    SCALE = None  # defaults to 2*pi inside

    key = jax.random.PRNGKey(0)
    # random boolean padding mask (True = padded), as in DETR
    mask = jax.random.bernoulli(key, p=0.3, shape=(B, H, W))

    pos = positional_encoding_2d(mask, num_pos_feats=NUM_POS_FEATS,
                                 temperature=TEMPERATURE,
                                 normalize=NORMALIZE, scale=SCALE)
    pos = jax.block_until_ready(pos)

    ref = _reference(mask, num_pos_feats=NUM_POS_FEATS, temperature=TEMPERATURE,
                     normalize=NORMALIZE, scale=SCALE)
    np.testing.assert_allclose(np.asarray(pos), np.asarray(ref),
                               rtol=1e-5, atol=1e-5)
    assert pos.shape == (B, 2 * NUM_POS_FEATS, H, W)
    print("KERNEL_OK")
</pallas_src>

<mosaic_0001>
module attributes {stable_mosaic.version = 11 : i64} {
  func.func @_pos_enc_kernel(%arg0: i32, %arg1: memref<1x1x256xi32, #tpu.memory_space<vmem>>, %arg2: memref<256x1024xbf16, #tpu.memory_space<vmem>>, %arg3: memref<32x1xf32, #tpu.memory_space<vmem>>, %arg4: memref<32x1xf32, #tpu.memory_space<vmem>>, %arg5: memref<1x64x256xf32, #tpu.memory_space<vmem>>) attributes {dimension_semantics = [#tpu.dimension_semantics<parallel>], iteration_bounds = array<i64: 2>, scalar_prefetch = 0 : i64, scratch_operands = 0 : i64, tpu.core_type = #tpu.core_type<tc>, window_params = [{transform_indices = @transform_0, window_bounds = array<i64: 1, 1, 256>}, {pipeline_mode = #tpu.pipeline_mode<synchronous>, transform_indices = @transform_1, window_bounds = array<i64: 256, 1024>}, {pipeline_mode = #tpu.pipeline_mode<synchronous>, transform_indices = @transform_2, window_bounds = array<i64: 32, 1>}, {pipeline_mode = #tpu.pipeline_mode<synchronous>, transform_indices = @transform_3, window_bounds = array<i64: 32, 1>}, {transform_indices = @transform_4, window_bounds = array<i64: 1, 64, 256>}]} {
    %c0 = arith.constant 0 : index
    %c0_0 = arith.constant 0 : index
    %c0_1 = arith.constant 0 : index
    %0 = vector.load %arg1[%c0, %c0_0, %c0_1] : memref<1x1x256xi32, #tpu.memory_space<vmem>>, vector<1x1x256xi32>
    %1 = vector.shape_cast %0 : vector<1x1x256xi32> to vector<1x256xi32>
    %c1_i32 = arith.constant 1 : i32
    %2 = vector.broadcast %c1_i32 : i32 to vector<1x256xi32>
    %3 = arith.subi %2, %1 : vector<1x256xi32>
    %4 = arith.sitofp %3 : vector<1x256xi32> to vector<1x256xbf16>
    %c0_2 = arith.constant 0 : index
    %c0_3 = arith.constant 0 : index
    %5 = vector.load %arg2[%c0_2, %c0_3] : memref<256x1024xbf16, #tpu.memory_space<vmem>>, vector<256x1024xbf16>
    %cst = arith.constant dense<0.000000e+00> : vector<1x1024xf32>
    %6 = tpu.matmul %4, %5, %cst {dimension_numbers = #tpu.dot_dimension_numbers<[1], [0], [0], [1], [0, 0, 1, 1], [], []>} : vector<1x256xbf16>, vector<256x1024xbf16>, vector<1x1024xf32> -> vector<1x1024xf32>
    %7 = vector.extract_strided_slice %6 {offsets = [0, 0], sizes = [1, 256], strides = [1, 1]} : vector<1x1024xf32> to vector<1x256xf32>
    %8 = vector.extract_strided_slice %6 {offsets = [0, 256], sizes = [1, 256], strides = [1, 1]} : vector<1x1024xf32> to vector<1x256xf32>
    %cst_4 = arith.constant 5.000000e-01 : f32
    %9 = vector.broadcast %cst_4 : f32 to vector<1x256xf32>
    %10 = arith.subf %7, %9 : vector<1x256xf32>
    %11 = vector.extract_strided_slice %6 {offsets = [0, 512], sizes = [1, 256], strides = [1, 1]} : vector<1x1024xf32> to vector<1x256xf32>
    %cst_5 = arith.constant 9.99999997E-7 : f32
    %12 = vector.broadcast %cst_5 : f32 to vector<1x256xf32>
    %13 = arith.addf %11, %12 : vector<1x256xf32>
    %14 = arith.divf %10, %13 : vector<1x256xf32>
    %cst_6 = arith.constant 6.28318548 : f32
    %15 = vector.broadcast %cst_6 : f32 to vector<1x256xf32>
    %16 = arith.mulf %14, %15 : vector<1x256xf32>
    %cst_7 = arith.constant 5.000000e-01 : f32
    %17 = vector.broadcast %cst_7 : f32 to vector<1x256xf32>
    %18 = arith.subf %8, %17 : vector<1x256xf32>
    %19 = vector.extract_strided_slice %6 {offsets = [0, 768], sizes = [1, 256], strides = [1, 1]} : vector<1x1024xf32> to vector<1x256xf32>
    %cst_8 = arith.constant 9.99999997E-7 : f32
    %20 = vector.broadcast %cst_8 : f32 to vector<1x256xf32>
    %21 = arith.addf %19, %20 : vector<1x256xf32>
    %22 = arith.divf %18, %21 : vector<1x256xf32>
    %cst_9 = arith.constant 6.28318548 : f32
    %23 = vector.broadcast %cst_9 : f32 to vector<1x256xf32>
    %24 = arith.mulf %22, %23 : vector<1x256xf32>
    %c0_10 = arith.constant 0 : index
    %c0_11 = arith.constant 0 : index
    %25 = vector.load %arg3[%c0_10, %c0_11] : memref<32x1xf32, #tpu.memory_space<vmem>>, vector<32x1xf32>
    %c0_12 = arith.constant 0 : index
    %c0_13 = arith.constant 0 : index
    %26 = vector.load %arg4[%c0_12, %c0_13] : memref<32x1xf32, #tpu.memory_space<vmem>>, vector<32x1xf32>
    %27 = vector.broadcast %16 : vector<1x256xf32> to vector<32x256xf32>
    %28 = vector.broadcast %25 : vector<32x1xf32> to vector<32x256xf32>
    %29 = arith.mulf %27, %28 : vector<32x256xf32>
    %30 = vector.broadcast %26 : vector<32x1xf32> to vector<32x256xf32>
    %31 = arith.addf %29, %30 : vector<32x256xf32>
    %32 = math.sin %31 : vector<32x256xf32>
    %c0_14 = arith.constant 0 : index
    %c0_15 = arith.constant 0 : index
    %c0_16 = arith.constant 0 : index
    %33 = vector.load %arg5[%c0_14, %c0_15, %c0_16] : memref<1x64x256xf32, #tpu.memory_space<vmem>>, vector<1x32x256xf32>
    %34 = vector.shape_cast %33 : vector<1x32x256xf32> to vector<32x256xf32>
    %35 = vector.shape_cast %32 : vector<32x256xf32> to vector<1x32x256xf32>
    tpu.vector_store %arg5[%c0_14, %c0_15, %c0_16], %35 {strides = array<i32>} : memref<1x64x256xf32, #tpu.memory_space<vmem>>, vector<1x32x256xf32>,
    %36 = vector.broadcast %24 : vector<1x256xf32> to vector<32x256xf32>
    %37 = vector.broadcast %25 : vector<32x1xf32> to vector<32x256xf32>
    %38 = arith.mulf %36, %37 : vector<32x256xf32>
    %39 = vector.broadcast %26 : vector<32x1xf32> to vector<32x256xf32>
    %40 = arith.addf %38, %39 : vector<32x256xf32>
    %41 = math.sin %40 : vector<32x256xf32>
    %c0_17 = arith.constant 0 : index
    %c32 = arith.constant 32 : index
    %c0_18 = arith.constant 0 : index
    %42 = vector.load %arg5[%c0_17, %c32, %c0_18] : memref<1x64x256xf32, #tpu.memory_space<vmem>>, vector<1x32x256xf32>
    %43 = vector.shape_cast %42 : vector<1x32x256xf32> to vector<32x256xf32>
    %44 = vector.shape_cast %41 : vector<32x256xf32> to vector<1x32x256xf32>
    tpu.vector_store %arg5[%c0_17, %c32, %c0_18], %44 {strides = array<i32>} : memref<1x64x256xf32, #tpu.memory_space<vmem>>, vector<1x32x256xf32>,
    return
  }
  func.func @transform_0(%arg0: i32) -> (i32, i32, i32) {
    %c0_i32 = arith.constant 0 : i32
    %c0_i32_0 = arith.constant 0 : i32
    %c0_i32_1 = arith.constant 0 : i32
    return %arg0, %c0_i32, %c0_i32_0 : i32, i32, i32
  }
  func.func @transform_1(%arg0: i32) -> (i32, i32) {
    %c0_i32 = arith.constant 0 : i32
    %c0_i32_0 = arith.constant 0 : i32
    %c0_i32_1 = arith.constant 0 : i32
    return %c0_i32, %c0_i32_0 : i32, i32
  }
  func.func @transform_2(%arg0: i32) -> (i32, i32) {
    %c0_i32 = arith.constant 0 : i32
    %c0_i32_0 = arith.constant 0 : i32
    %c0_i32_1 = arith.constant 0 : i32
    return %c0_i32, %c0_i32_0 : i32, i32
  }
  func.func @transform_3(%arg0: i32) -> (i32, i32) {
    %c0_i32 = arith.constant 0 : i32
    %c0_i32_0 = arith.constant 0 : i32
    %c0_i32_1 = arith.constant 0 : i32
    return %c0_i32, %c0_i32_0 : i32, i32
  }
  func.func @transform_4(%arg0: i32) -> (i32, i32, i32) {
    %c0_i32 = arith.constant 0 : i32
    %c0_i32_0 = arith.constant 0 : i32
    %c0_i32_1 = arith.constant 0 : i32
    return %arg0, %c0_i32, %c0_i32_0 : i32, i32, i32
  }
}

</mosaic_0001>

<bundles_post_ra>
// kernel: tpu_custom_call.1
= control target key start
LH: loop header
LB: loop body
LE: loop exit
PB: predicated region body
PF: predicated region fallthrough
CT: control target
= control target key end

     0   :  { %9 = vsyncpa [#allocation3], 0  ;;  %s5095_s0 = inlined_call_operand.vmem [shape: s32[2,1,256], index: 0, kind: input, shape index: {}]   ;;  %s5096_s1 = inlined_call_operand.hbm [shape: bf16[256,1024], index: 1, kind: input, shape index: {}]   ;;  %s5097_s2 = inlined_call_operand.vmem [shape: f32[32,1], index: 2, kind: input, shape index: {}]   ;;  %s5098_s3 = inlined_call_operand.vmem [shape: f32[32,1], index: 3, kind: input, shape index: {}]   ;;  %s5099_s4 = inlined_call_operand.hbm [shape: f32[2,64,256], index: 4, kind: output, shape index: {}]  }
   0x1   :  { %10 = vsyncpa [#allocation4], 0 }
   0x2   :  { %12 = vsyncpa [#allocation4 + $0x1], 0  ;;  %s3583_s15 = smov 0   ;;  %s3585_s16 = smov 0  }
   0x3   :  { %s3587_s17 = smov 0   ;;  %s3589_s18 = smov 0  }
   0x4 LB: > { %s3604_s19 = sadd.s32 4294967295, %s3543_s18   ;;  %s3040_s20 = sadd.s32 4294967294, %s3543_s18   ;;  %s3543_s18 = sphi %s3589_s18, %s5143_s18   ;;  %s3539_s17 = sphi %s3587_s17, %s5142_s17   ;;  %s3535_s16 = sphi %s3585_s16, %s5141_s16   ;;  %s3531_s15 = sphi %s3583_s15, %s5140_s15  }
   0x5   : > { %s3608_s21 = sadd.s32 1, %s3543_s18   ;;  %s114_s22 = sadd.s32 1, %s3539_s17 }
   0x6   : > { %s111_s23 = ssub.s32 %s3543_s18, %s3608_s21  ;;  %p124_p0 = scmp.ne.s32.totalorder %s3539_s17, %s3535_s16 }
   0x7   : > { %p112_p1 = scmp.eq.s32.totalorder %s111_s23, 0  ;;  %p125_p2 = scmp.eq.s32.totalorder %s3604_s19, 1 }
   0x8   : > { %p130_p3 = scmp.ne.s32.totalorder %s3535_s16, %s3531_s15  ;;  %p131_p4 = scmp.eq.s32.totalorder %s3040_s20, 1 }
   0x9   : > { %s3619_s24 = scalar_select %p112_p1, %s3539_s17, %s114_s22  }
   0xa   : > { %p3621_p5 = por %p125_p2, %p124_p0  ;;  %p3625_p6 = por %p131_p4, %p130_p3 }
   0xb   : > { %p3041_p7 = scmp.ge.s32.totalorder %s3543_s18, 1  ;;  %p138_p8 = scmp.lt.s32.totalorder %s3543_s18, 3 }
   0xc   : > { %s5103_s25 = scalar_select %p3621_p5, 1, 0 }
   0xd   : > { %s5104_s26 = scalar_select %p3625_p6, 1, 0 }
   0xe   : > { %p5100_p9 = scmp.eq.s32.totalorder %s3604_s19, 0  ;;  %p3632_p10 = pnand %p3041_p7, %p138_p8 }
   0xf   : > { %s3545_s28 = smov [#allocation2]   ;;  %s3449_s7 = scalar_lea.hbm %s5096_s1, 16384 }
  0x10   : > { %s5105_s27 = scalar_select %p3632_p10, 1, 0 }
  0x11   : > { %s150_s29 = sshll.u32 %s3545_s28, 4  ;;  %p3320_p11 = pneg %p3632_p10  ;;  %s151_s29 = int_to_ptr.vmem [resolvable:$true] %s150_s29 }
  0x12   : > { %p3450_p13 = scmp.ne.s32.totalorder %s5096_s1, %s3449_s7  ;;  %p3456_p3 = scmp.lt.u32.totalorder %s3449_s7, %s5096_s1 }
  0x13   : > { %p3640_p12 = pnand %p5100_p9, %p3320_p11 }
  0x15   : > { %p3451_p0 = pneg %p3640_p12 }
  0x17   : > { %p3452_p1 = pnand %p3451_p0, %p3450_p13 }
  0x19   : > { %p3453_p2 = pneg %p3452_p1 }
  0x1b   : > { %p3458_p4 = pnand %p3456_p3, %p3453_p2 }
  0x1d   : > { %3461 = shalt.err (!%p3458_p4)
}
  0x1e   : > { %s3462_s12 = scalar_lea.vmem %s151_s29, 16384  ;;  %p3470_p9 = scmp.lt.s32.totalorder %s151_s29, %s151_s29 }
  0x1f   : > { %p3463_p7 = scmp.ne.s32.totalorder %s151_s29, %s3462_s12  ;;  %p3471_p6 = scmp.lt.s32.totalorder %s3462_s12, %s3462_s12 }
  0x21   : > { %p3465_p8 = pnand %p3463_p7, %p3451_p0  ;;  %p3472_p5 = por %p3471_p6, %p3470_p9 }
  0x23   : > { %p3466_p11 = pneg %p3465_p8 }
  0x25   : > { %p3473_p10 = pnand %p3472_p5, %p3466_p11 }
  0x27   : > { %3476 = shalt.err (!%p3473_p10)
}
  0x28   : > { %s3546_s13 = smov 512   ;;  %s3547_s14 = smov 32  }
  0x29   : > { %3323 = dma.hbm_to_vmem [thread:$0]  (!%p3640_p12), %s5096_s1, 16384, %s151_s29, [#allocation3], %s3546_s13, %s3546_s13, %s3547_s14  }
  0x2a   : > { %p5107_p13 = scmp.ne.s32.totalorder %s5105_s27, 0 }
  0x2b   : > { %p5108_p1 = scmp.eq.s32.totalorder (!%p5107_p13), %s3604_s19, 0 }
  0x2c   : > { %179 = sbr.rel (%p5107_p13) target bundleno = 870 (0x366), region = 36 }
  0x33   : > { %3522 = dma.done.wait (%p5108_p1), [#allocation3], 16384   ;;  %p5109_p0 = pmov %p5108_p1 }
  0x34   : > { %v224_v0 = vld [vmem:[#allocation2] sm:$0xff]  ;;  %v225_v2 = vld [vmem:[#allocation2 + $0x8] sm:$0xff]  ;;  %p204_p5 = scmp.lt.s32.totalorder %s3604_s19, 1  ;;  %v3548_v26 = vmov 0   ;;  %v212_v41 = vlaneseq  ;;  %s3249_s7 = sshll.u32 %s3604_s19, 11 }
  0x35   : > { %3524 = vsyncadd (%p5109_p0), [#allocation3], 4294950912  ;;  %v228_v1 = vld [vmem:[#allocation2 + $0x20] sm:$0xff]  ;;  %v229_v4 = vld [vmem:[#allocation2 + $0x28] sm:$0xff]  ;;  %3376 = vset.pattern.permute.xlu1 %v3548_v26  ;;  %3375 = vset.pattern.permute.xlu0 %v3548_v26  ;;  %s5046_s11 = scalar_lea.hbm %s5099_s4, %s3249_s7  ;;  %p5138_p9 = scmp.ne.s32.totalorder %s5103_s25, 0 }
  0x36   : > { %v3049_v3 = vcombine.high %v224_v0, %v228_v1  ;;  %v3048_v5 = vcombine.low %v224_v0, %v228_v1  ;;  %v232_v6 = vld [vmem:[#allocation2 + $0x40] sm:$0xff]  ;;  %v3051_v8 = vcombine.high %v225_v2, %v229_v4  ;;  %v3050_v9 = vcombine.low %v225_v2, %v229_v4  ;;  %v233_v11 = vld [vmem:[#allocation2 + $0x48] sm:$0xff]  ;;  %s205_s23 = scalar_select %p204_p5, %s3604_s19, 1 }
  0x37   : > { %v236_v7 = vld [vmem:[#allocation2 + $0x60] sm:$0xff]  ;;  %v237_v12 = vld [vmem:[#allocation2 + $0x68] sm:$0xff]  ;;  %v3673_v50 = vshrl.u32 %v212_v41, 7  ;;  %s3555_s13 = smov [#allocation5]  }
  0x38   : > { %v3057_v10 = vcombine.high %v232_v6, %v236_v7  ;;  %v240_v13 = vld [vmem:[#allocation2 + $0x80] sm:$0xff]  ;;  %992 = vmatprep.subr.bf16.mxu0 %v3049_v3  ;;  %v3059_v14 = vcombine.high %v233_v11, %v237_v12  ;;  %v241_v16 = vld [vmem:[#allocation2 + $0x88] sm:$0xff]  ;;  %1033 = vmatprep.subr.bf16.mxu1 %v3051_v8  ;;  %v3056_v18 = vcombine.low %v232_v6, %v236_v7  ;;  %s3047_s27 = sshll.u32 %s205_s23, 1  ;;  %s3481_s14 = sshll.u32 %s3555_s13, 4  ;;  %s3482_s14 = int_to_ptr.vmem [resolvable:$false] %s3481_s14 }
  0x39   : > { %v244_v15 = vld [vmem:[#allocation2 + $0xa0] sm:$0xff]  ;;  %v245_v17 = vld [vmem:[#allocation2 + $0xa8] sm:$0xff]  ;;  %993 = vmatpush1.bf16.msra.mxu0 %v3048_v5  ;;  %1034 = vmatpush1.bf16.msra.mxu1 %v3050_v9  ;;  %v3058_v19 = vcombine.low %v233_v11, %v237_v12  ;;  %s207_s30 = scalar_lea.vmem %s5095_s0, %s3047_s27  ;;  %v218_v61 = vsub.s32 1, %v3673_v50  ;;  %s3483_s20 = scalar_lea.vmem %s3482_s14, 4096 }
  0x3a   : > { %994 = vmatprep.subr.bf16.mxu0 %v3057_v10  ;;  %v3065_v20 = vcombine.high %v240_v13, %v244_v15  ;;  %1035 = vmatprep.subr.bf16.mxu1 %v3059_v14  ;;  %v3067_v21 = vcombine.high %v241_v16, %v245_v17  ;;  %v248_v22 = vld [vmem:[#allocation2 + $0xc0] sm:$0xff]  ;;  %v249_v24 = vld [vmem:[#allocation2 + $0xc8] sm:$0xff]  ;;  %v3064_v27 = vcombine.low %v240_v13, %v244_v15 }
  0x3b   : > { %v252_v23 = vld [vmem:[#allocation2 + $0xe0] sm:$0xff]  ;;  %v253_v25 = vld [vmem:[#allocation2 + $0xe8] sm:$0xff]  ;;  %v3066_v28 = vcombine.low %v241_v16, %v245_v17 }
  0x3c   : > { %v3073_v29 = vcombine.high %v248_v22, %v252_v23  ;;  %v3075_v30 = vcombine.high %v249_v24, %v253_v25  ;;  %v256_v31 = vld [vmem:[#allocation2 + $0x100] sm:$0xff]  ;;  %v257_v33 = vld [vmem:[#allocation2 + $0x108] sm:$0xff]  ;;  %v3072_v35 = vcombine.low %v248_v22, %v252_v23  ;;  %v3074_v36 = vcombine.low %v249_v24, %v253_v25 }
  0x3d   : > { %995 = vmatpush1.bf16.msra.mxu0 %v3056_v18  ;;  %1036 = vmatpush1.bf16.msra.mxu1 %v3058_v19  ;;  %v260_v32 = vld [vmem:[#allocation2 + $0x120] sm:$0xff]  ;;  %v261_v34 = vld [vmem:[#allocation2 + $0x128] sm:$0xff] }
  0x3e   : > { %996 = vmatprep.subr.bf16.mxu0 %v3065_v20  ;;  %1037 = vmatprep.subr.bf16.mxu1 %v3067_v21  ;;  %v3081_v37 = vcombine.high %v256_v31, %v260_v32  ;;  %v3083_v38 = vcombine.high %v257_v33, %v261_v34  ;;  %v264_v39 = vld [vmem:[#allocation2 + $0x140] sm:$0xff]  ;;  %v265_v42 = vld [vmem:[#allocation2 + $0x148] sm:$0xff]  ;;  %v3080_v44 = vcombine.low %v256_v31, %v260_v32 }
  0x3f   : > { %v268_v40 = vld [vmem:[#allocation2 + $0x160] sm:$0xff]  ;;  %v269_v43 = vld [vmem:[#allocation2 + $0x168] sm:$0xff]  ;;  %v3082_v45 = vcombine.low %v257_v33, %v261_v34 }
  0x40   : > { %v3089_v46 = vcombine.high %v264_v39, %v268_v40  ;;  %v3091_v47 = vcombine.high %v265_v42, %v269_v43  ;;  %v272_v48 = vld [vmem:[#allocation2 + $0x180] sm:$0xff]  ;;  %v273_v51 = vld [vmem:[#allocation2 + $0x188] sm:$0xff]  ;;  %v3088_v53 = vcombine.low %v264_v39, %v268_v40  ;;  %v3090_v54 = vcombine.low %v265_v42, %v269_v43  ;;  %v1178_v43 = vld [vmem:[%s5097_s2 + $0x10] sm:$0xff] }
  0x41   : > { %997 = vmatpush1.bf16.msra.mxu0 %v3064_v27  ;;  %1038 = vmatpush1.bf16.msra.mxu1 %v3066_v28  ;;  %v276_v49 = vld [vmem:[#allocation2 + $0x1a0] sm:$0xff]  ;;  %v277_v52 = vld [vmem:[#allocation2 + $0x1a8] sm:$0xff] }
  0x42   : > { %998 = vmatprep.subr.bf16.mxu0 %v3073_v29  ;;  %1039 = vmatprep.subr.bf16.mxu1 %v3075_v30  ;;  %v3097_v55 = vcombine.high %v272_v48, %v276_v49  ;;  %v208_v56 = vld [vmem:[%s207_s30] sm:$0x3]  ;;  %v3099_v57 = vcombine.high %v273_v51, %v277_v52  ;;  %v281_v62 = vld [vmem:[#allocation2 + $0x1c8] sm:$0xff]  ;;  %v3096_v0 = vcombine.low %v272_v48, %v276_v49  ;;  %v1179_v48 = vld [vmem:[%s5097_s2 + $0x18] sm:$0xff]  ;;  %s201_s30 = sand.u32 1, %s3535_s16  }
  0x43   : > { %v280_v58 = vld [vmem:[#allocation2 + $0x1c0] sm:$0xff]  ;;  %v209_v60 = vsub.s32 1, %v208_v56  ;;  %v285_v63 = vld [vmem:[#allocation2 + $0x1e8] sm:$0xff]  ;;  %v3098_v2 = vcombine.low %v273_v51, %v277_v52  ;;  %1204 = vperm.xlu1 %3376, %v1178_v43   ;;  %v250_v43 = vld [vmem:[#allocation2 + $0xd0] sm:$0xff]  ;;  %s3046_s5 = sshll.u32 %s201_s30, 7  ;;  %s5054_s19 = scalar_lea.sflag [#allocation4], %s201_s30 }
  0x44   : > { %v284_v59 = vld [vmem:[#allocation2 + $0x1e0] sm:$0xff]  ;;  %v3107_v4 = vcombine.high %v281_v62, %v285_v63  ;;  %v289_v8 = vld [vmem:[#allocation2 + $0x208] sm:$0xff]  ;;  %v3106_v12 = vcombine.low %v281_v62, %v285_v63  ;;  %s4040_s6 = scalar_lea.vmem [#allocation5], %s3046_s5 }
  0x45   : > { %999 = vmatpush1.bf16.msra.mxu0 %v3072_v35  ;;  %1040 = vmatpush1.bf16.msra.mxu1 %v3074_v36  ;;  %v3676_v1 = vcvt.s32.f32 %v209_v60  ;;  %v3105_v3 = vcombine.high %v280_v58, %v284_v59  ;;  %v288_v5 = vld [vmem:[#allocation2 + $0x200] sm:$0xff]  ;;  %v293_v9 = vld [vmem:[#allocation2 + $0x228] sm:$0xff]  ;;  %v3104_v10 = vcombine.low %v280_v58, %v284_v59  ;;  %s2966_s8 = sshll.u32 %s4040_s6, 4  ;;  %s5048_s8 = int_to_ptr.vmem [resolvable:$true] %s2966_s8 }
  0x46   : > { %1000 = vmatprep.subr.bf16.mxu0 %v3081_v37  ;;  %1041 = vmatprep.subr.bf16.mxu1 %v3083_v38  ;;  %v292_v6 = vld [vmem:[#allocation2 + $0x220] sm:$0xff]  ;;  %v3115_v14 = vcombine.high %v289_v8, %v293_v9  ;;  %v297_v17 = vld [vmem:[#allocation2 + $0x248] sm:$0xff]  ;;  %v3114_v20 = vcombine.low %v289_v8, %v293_v9  ;;  %s3477_s12 = scalar_lea.vmem %s5048_s8, 2048  ;;  %p3484_p2 = scmp.lt.s32.totalorder %s5048_s8, %s3482_s14 }
  0x47   : > { %v219_v7 = vrot.slane %v3676_v1, %v218_v61  ;;  %v3113_v13 = vcombine.high %v288_v5, %v292_v6  ;;  %v296_v15 = vld [vmem:[#allocation2 + $0x240] sm:$0xff]  ;;  %v301_v18 = vld [vmem:[#allocation2 + $0x268] sm:$0xff]  ;;  %v3112_v19 = vcombine.low %v288_v5, %v292_v6  ;;  %1209 = vperm.xlu1 %3376, %v1179_v48   ;;  %v1183_v6 = vld [vmem:[%s5098_s3 + $0x18] sm:$0xff]  ;;  %p3478_p6 = scmp.ne.s32.totalorder %s5048_s8, %s3477_s12  ;;  %p3485_p3 = scmp.lt.s32.totalorder %s3483_s20, %s3477_s12 }
  0x48   : > { %v300_v16 = vld [vmem:[#allocation2 + $0x260] sm:$0xff]  ;;  %v3123_v22 = vcombine.high %v297_v17, %v301_v18  ;;  %v305_v25 = vld [vmem:[#allocation2 + $0x288] sm:$0xff]  ;;  %v3122_v28 = vcombine.low %v297_v17, %v301_v18 }
  0x49   : > { %1001 = vmatpush1.bf16.msra.mxu0 %v3080_v44  ;;  %1042 = vmatpush1.bf16.msra.mxu1 %v3082_v45  ;;  %v3679_v11 = vpack.c.bf16 %v219_v7, %v219_v7  ;;  %v3121_v21 = vcombine.high %v296_v15, %v300_v16  ;;  %v304_v23 = vld [vmem:[#allocation2 + $0x280] sm:$0xff]  ;;  %v309_v26 = vld [vmem:[#allocation2 + $0x2a8] sm:$0xff]  ;;  %v3120_v27 = vcombine.low %v296_v15, %v300_v16  ;;  %p3479_p10 = pnand %p3478_p6, %p5138_p9  ;;  %p3486_p4 = por %p3485_p3, %p3484_p2 }
  0x4a   : > { %1002 = vmatprep.subr.bf16.mxu0 %v3089_v46  ;;  %1043 = vmatprep.subr.bf16.mxu1 %v3091_v47  ;;  %v308_v24 = vld [vmem:[#allocation2 + $0x2a0] sm:$0xff]  ;;  %v3131_v30 = vcombine.high %v305_v25, %v309_v26  ;;  %v313_v33 = vld [vmem:[#allocation2 + $0x2c8] sm:$0xff]  ;;  %v3130_v36 = vcombine.low %v305_v25, %v309_v26 }
  0x4b   : > { %1024 = vmatprep.mubr.bf16.mxu0 %v3679_v11  ;;  %1065 = vmatprep.mubr.bf16.mxu1 %v3679_v11  ;;  %v3129_v29 = vcombine.high %v304_v23, %v308_v24  ;;  %v312_v31 = vld [vmem:[#allocation2 + $0x2c0] sm:$0xff]  ;;  %v317_v34 = vld [vmem:[#allocation2 + $0x2e8] sm:$0xff]  ;;  %v3128_v35 = vcombine.low %v304_v23, %v308_v24  ;;  %p3480_p12 = pneg %p3479_p10 }
  0x4c   : > { %v316_v32 = vld [vmem:[#allocation2 + $0x2e0] sm:$0xff]  ;;  %v3139_v38 = vcombine.high %v313_v33, %v317_v34  ;;  %v321_v41 = vld [vmem:[#allocation2 + $0x308] sm:$0xff]  ;;  %v3138_v46 = vcombine.low %v313_v33, %v317_v34 }
  0x4d   : > { %1003 = vmatpush1.bf16.msra.mxu0 %v3088_v53  ;;  %1044 = vmatpush1.bf16.msra.mxu1 %v3090_v54  ;;  %v3137_v37 = vcombine.high %v312_v31, %v316_v32  ;;  %v320_v39 = vld [vmem:[#allocation2 + $0x300] sm:$0xff]  ;;  %v325_v42 = vld [vmem:[#allocation2 + $0x328] sm:$0xff]  ;;  %v3136_v45 = vcombine.low %v312_v31, %v316_v32  ;;  %v239_v31 = vld [vmem:[#allocation2 + $0x78] sm:$0xff]  ;;  %p3487_p7 = pnand %p3486_p4, %p3480_p12 }
  0x4e   : > { %1004 = vmatprep.subr.bf16.mxu0 %v3097_v55  ;;  %1045 = vmatprep.subr.bf16.mxu1 %v3099_v57  ;;  %v324_v40 = vld [vmem:[#allocation2 + $0x320] sm:$0xff]  ;;  %v3147_v49 = vcombine.high %v321_v41, %v325_v42  ;;  %v329_v53 = vld [vmem:[#allocation2 + $0x348] sm:$0xff]  ;;  %v3146_v57 = vcombine.low %v321_v41, %v325_v42 }
  0x4f   : > { %v1176_v44 = vld [vmem:[%s5097_s2] sm:$0xff]  ;;  %v3145_v47 = vcombine.high %v320_v39, %v324_v40  ;;  %v333_v54 = vld [vmem:[#allocation2 + $0x368] sm:$0xff]  ;;  %v3144_v56 = vcombine.low %v320_v39, %v324_v40 }
  0x50   : > { %v328_v51 = vld [vmem:[#allocation2 + $0x340] sm:$0xff]  ;;  %1194 = vperm.xlu0 %3375, %v1176_v44   ;;  %v1177_v55 = vld [vmem:[%s5097_s2 + $0x8] sm:$0xff]  ;;  %v3155_v60 = vcombine.high %v329_v53, %v333_v54  ;;  %v254_v44 = vld [vmem:[#allocation2 + $0xf0] sm:$0xff] }
  0x51   : > { %1005 = vmatpush1.bf16.msra.mxu0 %v3096_v0  ;;  %1046 = vmatpush1.bf16.msra.mxu1 %v3098_v2  ;;  %v332_v52 = vld [vmem:[#allocation2 + $0x360] sm:$0xff]  ;;  %v1181_v59 = vld [vmem:[%s5098_s3 + $0x8] sm:$0xff] }
  0x52   : > { %1006 = vmatprep.subr.bf16.mxu0 %v3105_v3  ;;  %1047 = vmatprep.subr.bf16.mxu1 %v3107_v4  ;;  %v3153_v58 = vcombine.high %v328_v51, %v332_v52  ;;  %v336_v61 = vld [vmem:[#allocation2 + $0x380] sm:$0xff]  ;;  %v337_v63 = vld [vmem:[#allocation2 + $0x388] sm:$0xff]  ;;  %v3152_v3 = vcombine.low %v328_v51, %v332_v52  ;;  %v3154_v4 = vcombine.low %v329_v53, %v333_v54  ;;  %v258_v52 = vld [vmem:[#allocation2 + $0x110] sm:$0xff] }
  0x53   : > { %v340_v62 = vld [vmem:[#allocation2 + $0x3a0] sm:$0xff]  ;;  %v341_v0 = vld [vmem:[#allocation2 + $0x3a8] sm:$0xff]  ;;  %1227 = vperm.xlu1 %3376, %v1181_v59   ;;  %v262_v53 = vld [vmem:[#allocation2 + $0x130] sm:$0xff] }
  0x54   : > { %1199 = vperm.xlu0 %3375, %v1177_v55   ;;  %v1180_v2 = vld [vmem:[%s5098_s3] sm:$0xff]  ;;  %v3161_v5 = vcombine.high %v336_v61, %v340_v62  ;;  %v3163_v7 = vcombine.high %v337_v63, %v341_v0  ;;  %v3160_v15 = vcombine.low %v336_v61, %v340_v62  ;;  %v3162_v16 = vcombine.low %v337_v63, %v341_v0  ;;  %v259_v54 = vld [vmem:[#allocation2 + $0x118] sm:$0xff]  ;;  %v266_v59 = vld [vmem:[#allocation2 + $0x150] sm:$0xff] }
  0x55   : > { %1007 = vmatpush1.bf16.msra.mxu0 %v3104_v10  ;;  %1048 = vmatpush1.bf16.msra.mxu1 %v3106_v12  ;;  %v344_v8 = vld [vmem:[#allocation2 + $0x3c0] sm:$0xff]  ;;  %v345_v10 = vld [vmem:[#allocation2 + $0x3c8] sm:$0xff]  ;;  %v263_v55 = vld [vmem:[#allocation2 + $0x138] sm:$0xff]  ;;  %v3084_v63 = vcombine.low %v258_v52, %v262_v53 }
  0x56   : > { %1008 = vmatprep.subr.bf16.mxu0 %v3113_v13  ;;  %1049 = vmatprep.subr.bf16.mxu1 %v3115_v14  ;;  %v348_v9 = vld [vmem:[#allocation2 + $0x3e0] sm:$0xff]  ;;  %v349_v12 = vld [vmem:[#allocation2 + $0x3e8] sm:$0xff]  ;;  %v3705_v13 = vsub.s32 0, %v3673_v50  ;;  %v1182_v14 = vld [vmem:[%s5098_s3 + $0x10] sm:$0xff]  ;;  %v3086_v0 = vcombine.low %v259_v54, %v263_v55 }
  0x57   : > { %1237 = vperm.xlu1 %3376, %v1183_v6   ;;  %v3169_v17 = vcombine.high %v344_v8, %v348_v9  ;;  %v3171_v18 = vcombine.high %v345_v10, %v349_v12  ;;  %v3168_v23 = vcombine.low %v344_v8, %v348_v9  ;;  %v3170_v24 = vcombine.low %v345_v10, %v349_v12  ;;  %v267_v61 = vld [vmem:[#allocation2 + $0x158] sm:$0xff] }
  0x58   : > { %1222 = vperm.xlu0 %3375, %v1180_v2   ;;  %v215_v50 = vrot.slane %v3676_v1, %v3705_v13  ;;  %v271_v62 = vld [vmem:[#allocation2 + $0x178] sm:$0xff] }
  0x59   : > { %1009 = vmatpush1.bf16.msra.mxu0 %v3112_v19  ;;  %1050 = vmatpush1.bf16.msra.mxu1 %v3114_v20  ;;  %v226_v19 = vld [vmem:[#allocation2 + $0x10] sm:$0xff]  ;;  %v275_v6 = vld [vmem:[#allocation2 + $0x198] sm:$0xff]  ;;  %v3094_v9 = vcombine.low %v267_v61, %v271_v62 }
  0x5a   : > { %1010 = vmatprep.subr.bf16.mxu0 %v3121_v21  ;;  %1051 = vmatprep.subr.bf16.mxu1 %v3123_v22  ;;  %v230_v20 = vld [vmem:[#allocation2 + $0x30] sm:$0xff]  ;;  %v227_v21 = vld [vmem:[#allocation2 + $0x18] sm:$0xff] }
  0x5b   : > { %v231_v22 = vld [vmem:[#allocation2 + $0x38] sm:$0xff]  ;;  %v3053_v25 = vcombine.high %v226_v19, %v230_v20  ;;  %v3052_v32 = vcombine.low %v226_v19, %v230_v20 }
  0x5c   : > { %1232 = vperm.xlu0 %3375, %v1182_v14   ;;  %v3055_v26 = vcombine.high %v227_v21, %v231_v22  ;;  %v3054_v1 = vcombine.low %v227_v21, %v231_v22  ;;  %v282_v14 = vld [vmem:[#allocation2 + $0x1d0] sm:$0xff] }
  0x5d   : > { %1011 = vmatpush1.bf16.msra.mxu0 %v3120_v27  ;;  %1052 = vmatpush1.bf16.msra.mxu1 %v3122_v28  ;;  %v234_v27 = vld [vmem:[#allocation2 + $0x50] sm:$0xff] }
  0x5e   : > { %1012 = vmatprep.subr.bf16.mxu0 %v3129_v29  ;;  %1053 = vmatprep.subr.bf16.mxu1 %v3131_v30  ;;  %v238_v28 = vld [vmem:[#allocation2 + $0x70] sm:$0xff]  ;;  %v3712_v29 = vpack.c.bf16 %v215_v50, %v215_v50  ;;  %v235_v30 = vld [vmem:[#allocation2 + $0x58] sm:$0xff] }
  0x5f   : > { %v3061_v33 = vcombine.high %v234_v27, %v238_v28  ;;  %v3063_v34 = vcombine.high %v235_v30, %v239_v31  ;;  %v3060_v39 = vcombine.low %v234_v27, %v238_v28  ;;  %v3062_v40 = vcombine.low %v235_v30, %v239_v31  ;;  %v290_v21 = vld [vmem:[#allocation2 + $0x210] sm:$0xff] }
  0x60   : > { %v294_v22 = vld [vmem:[#allocation2 + $0x230] sm:$0xff] }
  0x61   : > { %1013 = vmatpush1.bf16.msra.mxu0 %v3128_v35  ;;  %1054 = vmatpush1.bf16.msra.mxu1 %v3130_v36  ;;  %v242_v35 = vld [vmem:[#allocation2 + $0x90] sm:$0xff]  ;;  %v3117_v27 = vcombine.high %v290_v21, %v294_v22 }
  0x62   : > { %1014 = vmatprep.subr.bf16.mxu0 %v3137_v37  ;;  %1055 = vmatprep.subr.bf16.mxu1 %v3139_v38  ;;  %v246_v36 = vld [vmem:[#allocation2 + $0xb0] sm:$0xff]  ;;  %v243_v37 = vld [vmem:[#allocation2 + $0x98] sm:$0xff] }
  0x63   : > { %v247_v38 = vld [vmem:[#allocation2 + $0xb8] sm:$0xff]  ;;  %v3069_v41 = vcombine.high %v242_v35, %v246_v36  ;;  %v298_v30 = vld [vmem:[#allocation2 + $0x250] sm:$0xff] }
  0x64   : > { %v3071_v42 = vcombine.high %v243_v37, %v247_v38  ;;  %v3070_v48 = vcombine.low %v243_v37, %v247_v38  ;;  %v302_v31 = vld [vmem:[#allocation2 + $0x270] sm:$0xff] }
  0x65   : > { %1015 = vmatpush1.bf16.msra.mxu0 %v3136_v45  ;;  %1056 = vmatpush1.bf16.msra.mxu1 %v3138_v46  ;;  %v251_v45 = vld [vmem:[#allocation2 + $0xd8] sm:$0xff]  ;;  %v306_v37 = vld [vmem:[#allocation2 + $0x290] sm:$0xff] }
  0x66   : > { %1016 = vmatprep.subr.bf16.mxu0 %v3145_v47  ;;  %1057 = vmatprep.subr.bf16.mxu1 %v3147_v49  ;;  %v255_v46 = vld [vmem:[#allocation2 + $0xf8] sm:$0xff]  ;;  %v3068_v47 = vcombine.low %v242_v35, %v246_v36  ;;  %v3077_v49 = vcombine.high %v250_v43, %v254_v44  ;;  %v3125_v35 = vcombine.high %v298_v30, %v302_v31  ;;  %v310_v38 = vld [vmem:[#allocation2 + $0x2b0] sm:$0xff] }
  0x67   : > { %v3079_v51 = vcombine.high %v251_v45, %v255_v46 }
  0x69   : > { %1017 = vmatpush1.bf16.msra.mxu0 %v3144_v56  ;;  %1058 = vmatpush1.bf16.msra.mxu1 %v3146_v57  ;;  %v3076_v56 = vcombine.low %v250_v43, %v254_v44  ;;  %v3078_v57 = vcombine.low %v251_v45, %v255_v46  ;;  %v3133_v43 = vcombine.high %v306_v37, %v310_v38  ;;  %v314_v45 = vld [vmem:[#allocation2 + $0x2d0] sm:$0xff] }
  0x6a   : > { %1018 = vmatprep.subr.bf16.mxu0 %v3153_v58  ;;  %1059 = vmatprep.subr.bf16.mxu1 %v3155_v60  ;;  %v3085_v58 = vcombine.high %v258_v52, %v262_v53  ;;  %v270_v60 = vld [vmem:[#allocation2 + $0x170] sm:$0xff] }
  0x6b   : > { %v3093_v2 = vcombine.high %v266_v59, %v270_v60  ;;  %v3092_v8 = vcombine.low %v266_v59, %v270_v60  ;;  %v318_v46 = vld [vmem:[#allocation2 + $0x2f0] sm:$0xff] }
  0x6c   : > { %v3141_v52 = vcombine.high %v314_v45, %v318_v46 }
  0x6d   : > { %1019 = vmatpush1.bf16.msra.mxu0 %v3152_v3  ;;  %1060 = vmatpush1.bf16.msra.mxu1 %v3154_v4  ;;  %v3095_v3 = vcombine.high %v267_v61, %v271_v62  ;;  %v274_v4 = vld [vmem:[#allocation2 + $0x190] sm:$0xff] }
  0x6e   : > { %1020 = vmatprep.subr.bf16.mxu0 %v3161_v5  ;;  %1061 = vmatprep.subr.bf16.mxu1 %v3163_v7  ;;  %v278_v5 = vld [vmem:[#allocation2 + $0x1b0] sm:$0xff]  ;;  %v279_v7 = vld [vmem:[#allocation2 + $0x1b8] sm:$0xff] }
  0x6f   : > { %v3101_v10 = vcombine.high %v274_v4, %v278_v5  ;;  %v3103_v12 = vcombine.high %v275_v6, %v279_v7  ;;  %v3102_v19 = vcombine.low %v275_v6, %v279_v7  ;;  %v330_v61 = vld [vmem:[#allocation2 + $0x350] sm:$0xff] }
  0x70   : > { %v334_v62 = vld [vmem:[#allocation2 + $0x370] sm:$0xff] }
  0x71   : > { %1021 = vmatpush1.bf16.msra.mxu0 %v3160_v15  ;;  %1062 = vmatpush1.bf16.msra.mxu1 %v3162_v16  ;;  %v286_v15 = vld [vmem:[#allocation2 + $0x1f0] sm:$0xff]  ;;  %v283_v16 = vld [vmem:[#allocation2 + $0x1d8] sm:$0xff] }
  0x72   : > { %1022 = vmatprep.subr.bf16.mxu0 %v3169_v17  ;;  %1063 = vmatprep.subr.bf16.mxu1 %v3171_v18  ;;  %v287_v17 = vld [vmem:[#allocation2 + $0x1f8] sm:$0xff]  ;;  %v3100_v18 = vcombine.low %v274_v4, %v278_v5  ;;  %v3109_v20 = vcombine.high %v282_v14, %v286_v15  ;;  %v3157_v4 = vcombine.high %v330_v61, %v334_v62  ;;  %v338_v6 = vld [vmem:[#allocation2 + $0x390] sm:$0xff] }
  0x73   : > { %v3111_v50 = vcombine.high %v283_v16, %v287_v17  ;;  %v342_v7 = vld [vmem:[#allocation2 + $0x3b0] sm:$0xff] }
  0x75   : > { %1023 = vmatpush1.bf16.msra.mxu0 %v3168_v23  ;;  %1064 = vmatpush1.bf16.msra.mxu1 %v3170_v24  ;;  %v291_v23 = vld [vmem:[#allocation2 + $0x218] sm:$0xff] }
  0x76   : > { %1074 = vmatprep.subr.bf16.mxu0 %v3053_v25  ;;  %1115 = vmatprep.subr.bf16.mxu1 %v3055_v26  ;;  %v295_v24 = vld [vmem:[#allocation2 + $0x238] sm:$0xff]  ;;  %v3108_v25 = vcombine.low %v282_v14, %v286_v15  ;;  %v3110_v26 = vcombine.low %v283_v16, %v287_v17  ;;  %v3165_v14 = vcombine.high %v338_v6, %v342_v7  ;;  %v346_v16 = vld [vmem:[#allocation2 + $0x3d0] sm:$0xff] }
  0x77   : > { %v3119_v28 = vcombine.high %v291_v23, %v295_v24  ;;  %v350_v17 = vld [vmem:[#allocation2 + $0x3f0] sm:$0xff] }
  0x78   : > { %1025 = vmatmul.mubr.bf16.vlgmr.msra.gmra.mrb[0].mxu0 %v3712_v29  ;;  %1066 = vmatmul.mubr.bf16.vlgmr.msra.gmra.mrb[0].mxu1 %v3712_v29 }
  0x79   : > { %1075 = vmatpush1.bf16.msra.mxu0 %v3052_v32  ;;  %1116 = vmatpush1.bf16.msra.mxu1 %v3054_v1  ;;  %v299_v32 = vld [vmem:[#allocation2 + $0x258] sm:$0xff] }
  0x7a   : > { %1076 = vmatprep.subr.bf16.mxu0 %v3061_v33  ;;  %1117 = vmatprep.subr.bf16.mxu1 %v3063_v34  ;;  %v303_v1 = vld [vmem:[#allocation2 + $0x278] sm:$0xff]  ;;  %v3116_v33 = vcombine.low %v290_v21, %v294_v22  ;;  %v3118_v34 = vcombine.low %v291_v23, %v295_v24  ;;  %v3173_v21 = vcombine.high %v346_v16, %v350_v17 }
  0x7b   : > { %1106 = vmatprep.mubr.bf16.mxu0 %v3679_v11  ;;  %1147 = vmatprep.mubr.bf16.mxu1 %v3679_v11  ;;  %v3087_v11 = vcombine.high %v259_v54, %v263_v55  ;;  %v3127_v36 = vcombine.high %v299_v32, %v303_v1  ;;  %v322_v54 = vld [vmem:[#allocation2 + $0x310] sm:$0xff]  ;;  %v3172_v23 = vcombine.low %v346_v16, %v350_v17 }
  0x7c   : > { %v326_v55 = vld [vmem:[#allocation2 + $0x330] sm:$0xff] }
  0x7d   : > { %1077 = vmatpush1.bf16.msra.mxu0 %v3060_v39  ;;  %1118 = vmatpush1.bf16.msra.mxu1 %v3062_v40  ;;  %v307_v39 = vld [vmem:[#allocation2 + $0x298] sm:$0xff]  ;;  %v3149_v59 = vcombine.high %v322_v54, %v326_v55 }
  0x7e   : > { %1078 = vmatprep.subr.bf16.mxu0 %v3069_v41  ;;  %1119 = vmatprep.subr.bf16.mxu1 %v3071_v42  ;;  %v311_v40 = vld [vmem:[#allocation2 + $0x2b8] sm:$0xff]  ;;  %v3124_v41 = vcombine.low %v298_v30, %v302_v31  ;;  %v3126_v42 = vcombine.low %v299_v32, %v303_v1 }
  0x7f   : > { %v3135_v44 = vcombine.high %v307_v39, %v311_v40 }
  0x81   : > { %1079 = vmatpush1.bf16.msra.mxu0 %v3068_v47  ;;  %1120 = vmatpush1.bf16.msra.mxu1 %v3070_v48  ;;  %v315_v47 = vld [vmem:[#allocation2 + $0x2d8] sm:$0xff] }
  0x82   : > { %1080 = vmatprep.subr.bf16.mxu0 %v3077_v49  ;;  %1121 = vmatprep.subr.bf16.mxu1 %v3079_v51  ;;  %v319_v48 = vld [vmem:[#allocation2 + $0x2f8] sm:$0xff]  ;;  %v3132_v49 = vcombine.low %v306_v37, %v310_v38  ;;  %v3134_v51 = vcombine.low %v307_v39, %v311_v40 }
  0x83   : > { %v3143_v53 = vcombine.high %v315_v47, %v319_v48 }
  0x85   : > { %1081 = vmatpush1.bf16.msra.mxu0 %v3076_v56  ;;  %1122 = vmatpush1.bf16.msra.mxu1 %v3078_v57  ;;  %v323_v56 = vld [vmem:[#allocation2 + $0x318] sm:$0xff] }
  0x86   : > { %1082 = vmatprep.subr.bf16.mxu0 %v3085_v58  ;;  %1123 = vmatprep.subr.bf16.mxu1 %v3087_v11  ;;  %v327_v57 = vld [vmem:[#allocation2 + $0x338] sm:$0xff]  ;;  %v3140_v58 = vcombine.low %v314_v45, %v318_v46  ;;  %v3142_v11 = vcombine.low %v315_v47, %v319_v48 }
  0x87   : > { %v3151_v60 = vcombine.high %v323_v56, %v327_v57 }
  0x89   : > { %1083 = vmatpush1.bf16.msra.mxu0 %v3084_v63  ;;  %1124 = vmatpush1.bf16.msra.mxu1 %v3086_v0  ;;  %v331_v63 = vld [vmem:[#allocation2 + $0x358] sm:$0xff] }
  0x8a   : > { %1084 = vmatprep.subr.bf16.mxu0 %v3093_v2  ;;  %1125 = vmatprep.subr.bf16.mxu1 %v3095_v3  ;;  %v335_v0 = vld [vmem:[#allocation2 + $0x378] sm:$0xff]  ;;  %v3148_v2 = vcombine.low %v322_v54, %v326_v55  ;;  %v3150_v3 = vcombine.low %v323_v56, %v327_v57 }
  0x8b   : > { %v3159_v5 = vcombine.high %v331_v63, %v335_v0 }
  0x8d   : > { %1085 = vmatpush1.bf16.msra.mxu0 %v3092_v8  ;;  %1126 = vmatpush1.bf16.msra.mxu1 %v3094_v9  ;;  %v339_v8 = vld [vmem:[#allocation2 + $0x398] sm:$0xff] }
  0x8e   : > { %1086 = vmatprep.subr.bf16.mxu0 %v3101_v10  ;;  %1127 = vmatprep.subr.bf16.mxu1 %v3103_v12  ;;  %v343_v9 = vld [vmem:[#allocation2 + $0x3b8] sm:$0xff]  ;;  %v3156_v10 = vcombine.low %v330_v61, %v334_v62  ;;  %v3158_v12 = vcombine.low %v331_v63, %v335_v0 }
  0x8f   : > { %v3167_v15 = vcombine.high %v339_v8, %v343_v9 }
  0x91   : > { %1087 = vmatpush1.bf16.msra.mxu0 %v3100_v18  ;;  %1128 = vmatpush1.bf16.msra.mxu1 %v3102_v19  ;;  %v347_v18 = vld [vmem:[#allocation2 + $0x3d8] sm:$0xff] }
  0x92   : > { %1088 = vmatprep.subr.bf16.mxu0 %v3109_v20  ;;  %1129 = vmatprep.subr.bf16.mxu1 %v3111_v50  ;;  %v351_v19 = vld [vmem:[#allocation2 + $0x3f8] sm:$0xff]  ;;  %v3164_v20 = vcombine.low %v338_v6, %v342_v7  ;;  %v3166_v50 = vcombine.low %v339_v8, %v343_v9 }
  0x93   : > { %v3175_v22 = vcombine.high %v347_v18, %v351_v19  ;;  %v3174_v24 = vcombine.low %v347_v18, %v351_v19 }
  0x95   : > { %1089 = vmatpush1.bf16.msra.mxu0 %v3108_v25  ;;  %1130 = vmatpush1.bf16.msra.mxu1 %v3110_v26 }
  0x96   : > { %1090 = vmatprep.subr.bf16.mxu0 %v3117_v27  ;;  %1131 = vmatprep.subr.bf16.mxu1 %v3119_v28 }
  0x99   : > { %1091 = vmatpush1.bf16.msra.mxu0 %v3116_v33  ;;  %1132 = vmatpush1.bf16.msra.mxu1 %v3118_v34 }
  0x9a   : > { %1092 = vmatprep.subr.bf16.mxu0 %v3125_v35  ;;  %1133 = vmatprep.subr.bf16.mxu1 %v3127_v36 }
  0x9d   : > { %1093 = vmatpush1.bf16.msra.mxu0 %v3124_v41  ;;  %1134 = vmatpush1.bf16.msra.mxu1 %v3126_v42 }
  0x9e   : > { %1094 = vmatprep.subr.bf16.mxu0 %v3133_v43  ;;  %1135 = vmatprep.subr.bf16.mxu1 %v3135_v44 }
  0xa1   : > { %1095 = vmatpush1.bf16.msra.mxu0 %v3132_v49  ;;  %1136 = vmatpush1.bf16.msra.mxu1 %v3134_v51 }
  0xa2   : > { %1096 = vmatprep.subr.bf16.mxu0 %v3141_v52  ;;  %1137 = vmatprep.subr.bf16.mxu1 %v3143_v53 }
  0xa5   : > { %1097 = vmatpush1.bf16.msra.mxu0 %v3140_v58  ;;  %1138 = vmatpush1.bf16.msra.mxu1 %v3142_v11 }
  0xa6   : > { %1098 = vmatprep.subr.bf16.mxu0 %v3149_v59  ;;  %1139 = vmatprep.subr.bf16.mxu1 %v3151_v60 }
  0xa9   : > { %1099 = vmatpush1.bf16.msra.mxu0 %v3148_v2  ;;  %1140 = vmatpush1.bf16.msra.mxu1 %v3150_v3 }
  0xaa   : > { %1100 = vmatprep.subr.bf16.mxu0 %v3157_v4  ;;  %1141 = vmatprep.subr.bf16.mxu1 %v3159_v5 }
  0xad   : > { %1101 = vmatpush1.bf16.msra.mxu0 %v3156_v10  ;;  %1142 = vmatpush1.bf16.msra.mxu1 %v3158_v12 }
  0xae   : > { %1102 = vmatprep.subr.bf16.mxu0 %v3165_v14  ;;  %1143 = vmatprep.subr.bf16.mxu1 %v3167_v15 }
  0xb1   : > { %1103 = vmatpush1.bf16.msra.mxu0 %v3164_v20  ;;  %1144 = vmatpush1.bf16.msra.mxu1 %v3166_v50 }
  0xb2   : > { %1104 = vmatprep.subr.bf16.mxu0 %v3173_v21  ;;  %1145 = vmatprep.subr.bf16.mxu1 %v3175_v22 }
  0xb5   : > { %1105 = vmatpush1.bf16.msra.mxu0 %v3172_v23  ;;  %1146 = vmatpush1.bf16.msra.mxu1 %v3174_v24 }
  0xb8   : > { %1107 = vmatmul.mubr.bf16.vlgmr.msra.gmra.mrb[4].mxu0 %v3712_v29  ;;  %1148 = vmatmul.mubr.bf16.vlgmr.msra.gmra.mrb[4].mxu1 %v3712_v29 }
  0xc2   : > { %v3720_v44 = vpop.permute.xlu1 %1204 }
  0xc6   : > { %v3724_v56 = vpop.permute.xlu1 %1209 }
  0xcf   : > { %v3722_v48 = vpop.permute.xlu0 %1194 }
  0xd2   : > { %v1228_v5 = vpop.permute.xlu1 %1227 }
  0xd3   : > { %v1200_v63 = vpop.permute.xlu0 %1199 }
 0x14b   : > { %v1026_v25 = vpop.f32.mrb[0].mxu0  ;;  %v1067_v26 = vpop.f32.mrb[0].mxu1 }
 0x14c   : > { %v1028_v27 = vpop.f32.mrb[1].mxu0  ;;  %v1069_v28 = vpop.f32.mrb[1].mxu1  ;;  %v3176_v45 = vadd.f32 -0.5, %v1026_v25  ;;  %v3178_v47 = vadd.f32 -0.5, %v1067_v26 }
 0x14d   : > { %v1030_v30 = vpop.f32.mrb[2].mxu0  ;;  %v1071_v31 = vpop.f32.mrb[2].mxu1  ;;  %v3177_v51 = vadd.f32 -0.5, %v1028_v27  ;;  %v3179_v54 = vadd.f32 -0.5, %v1069_v28 }
 0x14e   : > { %v1031_v32 = vpop.f32.mrb[3].mxu0  ;;  %v1072_v1 = vpop.f32.mrb[3].mxu1 }
 0x18b   : > { %v1108_v33 = vpop.f32.mrb[4].mxu0  ;;  %v1149_v35 = vpop.f32.mrb[4].mxu1 }
 0x18c   : > { %v1158_v34 = vadd.f32 1e-06, %v1108_v33  ;;  %v1110_v36 = vpop.f32.mrb[5].mxu0  ;;  %v1168_v37 = vadd.f32 1e-06, %v1149_v35  ;;  %v1151_v39 = vpop.f32.mrb[5].mxu1 }
 0x18d   : > { %v1159_v38 = vadd.f32 1e-06, %v1110_v36  ;;  %v1112_v40 = vpop.f32.mrb[6].mxu0  ;;  %v1169_v41 = vadd.f32 1e-06, %v1151_v39  ;;  %v1153_v42 = vpop.f32.mrb[6].mxu1 }
 0x18e   : > { %3377 = vrcp.f32 %v1158_v34  ;;  %v1113_v29 = vpop.f32.mrb[7].mxu0  ;;  %v1154_v43 = vpop.f32.mrb[7].mxu1  ;;  %v3550_v40 = vmov 2475754826   ;;  %v3551_v42 = vmov 2131351028  }
 0x18f   : > { %3379 = vrcp.f32 %v1168_v37  ;;  %v3552_v43 = vmov 2102212464  }
 0x190   : > { %3381 = vrcp.f32 %v1159_v38  ;;  %v3549_v38 = vmov 683565275  }
 0x191   : > { %3383 = vrcp.f32 %v1169_v41 }
 0x198   : > { %v3378_v46 = vpop.eup %3377 }
 0x199   : > { %v3380_v49 = vpop.eup %3379  ;;  %v1161_v52 = vmul.f32 %v3378_v46, %v3176_v45  ;;  %v3553_v46 = vmov 920167782  }
 0x19a   : > { %v3382_v53 = vpop.eup %3381  ;;  %v1171_v55 = vmul.f32 %v3380_v49, %v3178_v47 }
 0x19b   : > { %v3384_v57 = vpop.eup %3383  ;;  %v1164_v58 = vmul.f32 6.2831855, %v1161_v52  ;;  %v1163_v11 = vmul.f32 %v3382_v53, %v3177_v51 }
 0x19c   : > { %v1174_v59 = vmul.f32 6.2831855, %v1171_v55  ;;  %v1173_v60 = vmul.f32 %v3384_v57, %v3179_v54  ;;  %v3554_v55 = vmov 1326507024  }
 0x19d   : > { %v1165_v61 = vmul.f32 6.2831855, %v1163_v11  ;;  %v3727_v62 = vrot.slane %v1164_v58, %v3705_v13 }
 0x19e   : > { %v3730_v0 = vrot.slane %v1174_v59, %v3705_v13  ;;  %v1175_v6 = vmul.f32 6.2831855, %v1173_v60 }
 0x19f   : > { %v3733_v2 = vrot.slane %v1165_v61, %v3705_v13  ;;  %v1214_v3 = vmul.f32 %v1200_v63, %v3727_v62 }
 0x1a0   : > { %v2098_v4 = vmul.f32 %v3730_v0, %v1200_v63  ;;  %v3747_v15 = vrot.slane %v1175_v6, %v3705_v13 }
 0x1a1   : > { %v1215_v7 = vmul.f32 %v1200_v63, %v3733_v2  ;;  %v3738_v8 = vadd.f32 %v1228_v5, %v1214_v3 }
 0x1a2   : > { %v3744_v14 = vadd.f32 %v2098_v4, %v1228_v5  ;;  %v2099_v23 = vmul.f32 %v3747_v15, %v1200_v63 }
 0x1a3   : > { %v3740_v9 = vadd.f32 %v1228_v5, %v1215_v7  ;;  %v1456_v10 = vand.u32 2147483647, %v3738_v8  ;;  %v1459_v12 = vand.u32 2139095040, %v3738_v8  ;;  %vm1458_vm13 = vcmp.lt.s32.totalorder %v3738_v8, 0 }
 0x1a4   : > { %v2323_v50 = vand.u32 2139095040, %v3744_v14  ;;  %v3757_v1 = vadd.f32 %v2099_v23, %v1228_v5  ;;  %v2320_v35 = vand.u32 2147483647, %v3744_v14 }
 0x1a5   : > { %v1460_v16 = vshrl.u32 %v1459_v12, 23  ;;  %v1463_v17 = vand.u32 8388607, %v1456_v10  ;;  %v1560_v18 = vand.u32 2147483647, %v3740_v9  ;;  %v1563_v19 = vand.u32 2139095040, %v3740_v9 }
 0x1a6   : > { %v2324_v27 = vshrl.u32 %v2323_v50, 23  ;;  %vm3874_vm14 = vcmp.le.f32.partialorder %v1456_v10, 0.7853982 }
 0x1a7   : > { %v3188_v20 = vadd.s32 4294967169, %v1460_v16  ;;  %v1564_v21 = vshrl.u32 %v1563_v19, 23  ;;  %v1567_v22 = vand.u32 8388607, %v1560_v18  ;;  %v1464_v13 = vor.u32 8388608, %v1463_v17 }
 0x1a8   : > { %v3220_v36 = vadd.s32 4294967169, %v2324_v27 }
 0x1a9   : > { %v1466_v24 = vadd.s32 1, %v3188_v20  ;;  %v3192_v25 = vadd.s32 4294967169, %v1564_v21  ;;  %v1568_v26 = vor.u32 8388608, %v1567_v22  ;;  %v3759_v33 = vshll.u32 %v1464_v13, 8 }
 0x1aa   : > { %v2330_v22 = vadd.s32 1, %v3220_v36 }
 0x1ab   : > { %vm1467_vm0 = vcmp.gt.s32.totalorder %v1466_v24, 0  ;;  %v1570_v30 = vadd.s32 1, %v3192_v25  ;;  %v3761_v34 = vshll.u32 %v1568_v26, 8 }
 0x1ac   : > { %v1468_v28 = vsel %vm1467_vm0, %v1466_v24, 0  ;;  %vm2331_vm11 = vcmp.gt.s32.totalorder %v2330_v22, 0 }
 0x1ad   : > { %v1469_v31 = vshrl.u32 %v1468_v28, 5  ;;  %v1470_v32 = vand.u32 31, %v1468_v28  ;;  %vm1571_vm1 = vcmp.gt.s32.totalorder %v1570_v30, 0 }
 0x1ae   : > { %v1572_v60 = vsel %vm1571_vm1, %v1570_v30, 0 }
 0x1af   : > { %v1471_v37 = vsub.s32 32, %v1470_v32  ;;  %v1473_v39 = vshll.u32 %v3549_v38, %v1470_v32  ;;  %v1476_v41 = vshll.u32 %v3550_v40, %v1470_v32  ;;  %v1479_v29 = vshll.u32 %v3551_v42, %v1470_v32 }
 0x1b0   : > { %v1482_v45 = vshll.u32 %v3552_v43, %v1470_v32  ;;  %v1485_v47 = vshll.u32 %v3553_v46, %v1470_v32  ;;  %vm1488_vm2 = vcmp.lt.s32.totalorder %v1469_v31, 1  ;;  %vm1489_vm3 = vcmp.lt.s32.totalorder %v1469_v31, 2 }
 0x1b1   : > { %v1474_v49 = vshrl.u32 %v3550_v40, %v1471_v37  ;;  %v1477_v51 = vshrl.u32 %v3551_v42, %v1471_v37  ;;  %v1480_v52 = vshrl.u32 %v3552_v43, %v1471_v37  ;;  %v1472_v53 = vshrl.u32 %v3549_v38, %v1471_v37 }
 0x1b2   : > { %v1483_v54 = vshrl.u32 %v3553_v46, %v1471_v37  ;;  %v1486_v57 = vshrl.u32 %v3554_v55, %v1471_v37  ;;  %vm1490_vm4 = vcmp.lt.s32.totalorder %v1469_v31, 3  ;;  %vm1491_vm5 = vcmp.lt.s32.totalorder %v1469_v31, 4 }
 0x1b3   : > { %v1475_v58 = vor.u32 %v1474_v49, %v1473_v39  ;;  %v1478_v11 = vor.u32 %v1477_v51, %v1476_v41  ;;  %v1481_v59 = vor.u32 %v1480_v52, %v1479_v29  ;;  %v1574_v3 = vand.u32 31, %v1572_v60 }
 0x1b4   : > { %v1484_v61 = vor.u32 %v1483_v54, %v1482_v45  ;;  %v1487_v63 = vor.u32 %v1486_v57, %v1485_v47  ;;  %v1573_v13 = vshrl.u32 %v1572_v60, 5 }
 0x1b5   : > { %v1492_v4 = vsel %vm1488_vm2, %v1472_v53, %v1475_v58  ;;  %v1493_v5 = vsel %vm1491_vm5, %v1481_v59, 2102212464  ;;  %v1496_v6 = vsel %vm1488_vm2, %v1475_v58, %v1478_v11  ;;  %v1500_v7 = vsel %vm1488_vm2, %v1478_v11, %v1481_v59 }
 0x1b6   : > { %v1494_v12 = vsel %vm1490_vm4, %v1478_v11, %v1493_v5  ;;  %v1497_v16 = vsel %vm1491_vm5, %v1484_v61, 920167782  ;;  %v1501_v17 = vsel %vm1491_vm5, %v1487_v63, 1326507024  ;;  %v1575_v19 = vsub.s32 32, %v1574_v3 }
 0x1b7   : > { %v1495_v20 = vsel %vm1489_vm3, %v1492_v4, %v1494_v12  ;;  %v1498_v50 = vsel %vm1490_vm4, %v1481_v59, %v1497_v16  ;;  %v1502_v21 = vsel %vm1490_vm4, %v1484_v61, %v1501_v17  ;;  %v1577_v25 = vshll.u32 %v3549_v38, %v1574_v3 }
 0x1b8   : > { %v1499_v23 = vsel %vm1489_vm3, %v1496_v6, %v1498_v50  ;;  %v1503_v24 = vsel %vm1489_vm3, %v1500_v7, %v1502_v21  ;;  %v1511_v32 = vmul.u32 %v3759_v33, %v1495_v20  ;;  %v1578_v36 = vshrl.u32 %v3550_v40, %v1575_v19 }
 0x1b9   : > { %v3787_v26 = vmul.u32.u64.low %v3759_v33, %v1503_v24  ;;  %v3788_v27 = vmul.u32.u64.high %v3759_v33, %v1503_v24, %v3787_v26  ;;  %v3791_v28 = vmul.u32.u64.low %v3759_v33, %v1499_v23  ;;  %v3792_v30 = vmul.u32.u64.high %v3759_v33, %v1499_v23, %v3791_v28 }
 0x1ba   : > { %v1580_v37 = vshll.u32 %v3550_v40, %v1574_v3  ;;  %v1581_v31 = vshrl.u32 %v3551_v42, %v1575_v19  ;;  %v1583_v39 = vshll.u32 %v3551_v42, %v1574_v3  ;;  %v1584_v41 = vshrl.u32 %v3552_v43, %v1575_v19 }
 0x1bb   : > { %v1586_v29 = vshll.u32 %v3552_v43, %v1574_v3  ;;  %v1587_v45 = vshrl.u32 %v3553_v46, %v1575_v19  ;;  %v1579_v47 = vor.u32 %v1578_v36, %v1577_v25  ;;  %v1589_v51 = vshll.u32 %v3553_v46, %v1574_v3 }
 0x1bc   : > { %v1582_v49 = vor.u32 %v1581_v31, %v1580_v37  ;;  %v1590_v33 = vshrl.u32 %v3554_v55, %v1575_v19  ;;  %vm1513_vm6 = vc.u32 %v3788_v27, %v3791_v28  ;;  %v1514_v52 = vadd.s32 1, %v3792_v30 }
 0x1bd   : > { %v1576_v53 = vshrl.u32 %v3549_v38, %v1575_v19  ;;  %v1585_v54 = vor.u32 %v1584_v41, %v1583_v39  ;;  %v1588_v57 = vor.u32 %v1587_v45, %v1586_v29  ;;  %vm1592_vm7 = vcmp.lt.s32.totalorder %v1573_v13, 1 }
 0x1be   : > { %v1591_v58 = vor.u32 %v1590_v33, %v1589_v51  ;;  %vm1593_vm8 = vcmp.lt.s32.totalorder %v1573_v13, 2  ;;  %v1515_v11 = vsel %vm1513_vm6, %v1514_v52, %v3792_v30  ;;  %vm1594_vm9 = vcmp.lt.s32.totalorder %v1573_v13, 3 }
 0x1bf   : > { %vm1595_vm10 = vcmp.lt.s32.totalorder %v1573_v13, 4  ;;  %v1600_v59 = vsel %vm1592_vm7, %v1579_v47, %v1582_v49  ;;  %v1516_v60 = vadd.s32 %v1515_v11, %v1511_v32  ;;  %v1604_v3 = vsel %vm1592_vm7, %v1582_v49, %v1585_v54 }
 0x1c0   : > { %v1597_v61 = vsel %vm1595_vm10, %v1585_v54, 2102212464  ;;  %v1601_v63 = vsel %vm1595_vm10, %v1588_v57, 920167782  ;;  %v1596_v4 = vsel %vm1592_vm7, %v1576_v53, %v1579_v47  ;;  %v1605_v6 = vsel %vm1595_vm10, %v1591_v58, 1326507024 }
 0x1c1   : > { %v1602_v5 = vsel %vm1594_vm9, %v1585_v54, %v1601_v63  ;;  %v1517_v7 = vadd.s32 536870912, %v1516_v60  ;;  %v1598_v12 = vsel %vm1594_vm9, %v1582_v49, %v1597_v61  ;;  %v1606_v17 = vsel %vm1594_vm9, %v1588_v57, %v1605_v6  ;;  %v3835_v49 = vpop.permute.xlu0 %1222 }
 0x1c2   : > { %v1603_v16 = vsel %vm1593_vm8, %v1600_v59, %v1602_v5  ;;  %v1607_v19 = vsel %vm1593_vm8, %v1604_v3, %v1606_v17  ;;  %v2327_v21 = vand.u32 8388607, %v2320_v35  ;;  %v2332_v26 = vsel %vm2331_vm11, %v2330_v22, 0 }
 0x1c3   : > { %v3813_v20 = vmul.u32.u64.low %v3761_v34, %v1603_v16  ;;  %v3814_v50 = vmul.u32.u64.high %v3761_v34, %v1603_v16, %v3813_v20  ;;  %v1518_v23 = vshrl.u32 %v1517_v7, 30  ;;  %v1599_v30 = vsel %vm1593_vm8, %v1596_v4, %v1598_v12 }
 0x1c4   : > { %v3820_v24 = vmul.u32.u64.low %v3761_v34, %v1607_v19  ;;  %v3821_v25 = vmul.u32.u64.high %v3761_v34, %v1607_v19, %v3820_v24  ;;  %v2334_v32 = vand.u32 31, %v2332_v26  ;;  %v1212_v37 = vmul.f32 %v3722_v48, %v3727_v62 }
 0x1c5   : > { %v1519_v36 = vshll.u32 %v1518_v23, 30  ;;  %v1618_v31 = vadd.s32 1, %v3814_v50  ;;  %v2328_v39 = vor.u32 8388608, %v2327_v21  ;;  %v2424_v41 = vand.u32 2147483647, %v3757_v1 }
 0x1c6   : > { %v2427_v29 = vand.u32 2139095040, %v3757_v1  ;;  %v1615_v47 = vmul.u32 %v3761_v34, %v1599_v30  ;;  %vm1617_vm12 = vc.u32 %v3821_v25, %v3813_v20  ;;  %v2335_v22 = vsub.s32 32, %v2334_v32 }
 0x1c7   : > { %v3829_v45 = vsub.s32 %v1516_v60, %v1519_v36  ;;  %v1619_v13 = vsel %vm1617_vm12, %v1618_v31, %v3814_v50  ;;  %v3839_v51 = vmul.f32 %v3722_v48, %v3733_v2  ;;  %v3843_v33 = vmul.f32 %v3730_v0, %v3722_v48 }
 0x1c8   : > { %v1620_v52 = vadd.s32 %v1619_v13, %v1615_v47  ;;  %v3848_v53 = vadd.f32 %v3835_v49, %v1212_v37  ;;  %v3850_v54 = vshrl.u32 %v2332_v26, 5  ;;  %v3852_v57 = vshll.u32 %v2328_v39, 8 }
 0x1c9   : > { %v1522_v34 = vsub.s32 0, %v3829_v45  ;;  %v2428_v58 = vshrl.u32 %v2427_v29, 23  ;;  %v3856_v11 = vand.u32 8388607, %v2424_v41  ;;  %v2338_v61 = vshrl.u32 %v3550_v40, %v2335_v22 }
 0x1ca   : > { %v1621_v60 = vadd.s32 536870912, %v1620_v52  ;;  %v2341_v63 = vshrl.u32 %v3551_v42, %v2335_v22  ;;  %v1542_v3 = vsub.s32 4, %v1518_v23  ;;  %v2344_v4 = vshrl.u32 %v3552_v43, %v2335_v22 }
 0x1cb   : > { %v3189_v59 = vmin.u32 %v1522_v34, %v3829_v45  ;;  %v2346_v5 = vshll.u32 %v3552_v43, %v2334_v32  ;;  %v2347_v6 = vshrl.u32 %v3553_v46, %v2335_v22  ;;  %v2337_v12 = vshll.u32 %v3549_v38, %v2334_v32 }
 0x1cc   : > { %v2340_v16 = vshll.u32 %v3550_v40, %v2334_v32  ;;  %v2350_v17 = vshrl.u32 %v3554_v55, %v2335_v22  ;;  %v1512_v19 = vadd.s32 %v3791_v28, %v3788_v27  ;;  %v3869_v50 = vshrl.u32 %v1621_v60, 30 }
 0x1cd   : > { %v1524_v7 = vclz %v3189_v59  ;;  %v2343_v21 = vshll.u32 %v3551_v42, %v2334_v32  ;;  %v2348_v24 = vor.u32 %v2347_v6, %v2346_v5  ;;  %v2339_v36 = vor.u32 %v2338_v61, %v2337_v12 }
 0x1ce   : > { %v2342_v37 = vor.u32 %v2341_v63, %v2340_v16  ;;  %v2349_v31 = vshll.u32 %v3553_v46, %v2334_v32  ;;  %v1623_v39 = vshll.u32 %v3869_v50, 30  ;;  %vm2355_vm15 = vcmp.lt.s32.totalorder %v3850_v54, 4 }
 0x1cf   : > { %v3190_v30 = vadd.s32 4294967294, %v1524_v7  ;;  %v2345_v29 = vor.u32 %v2344_v4, %v2343_v21  ;;  %v3224_v27 = vadd.s32 4294967169, %v2428_v58  ;;  %v1543_v28 = vsel %vm1458_vm13, %v1542_v3, %v1518_v23 }
 0x1d0   : > { %v2351_v47 = vor.u32 %v2350_v17, %v2349_v31  ;;  %v2361_v10 = vsel %vm2355_vm15, %v2348_v24, 920167782  ;;  %v3885_v34 = vsub.s32 %v1620_v52, %v1623_v39  ;;  %v2336_v59 = vshrl.u32 %v3549_v38, %v2335_v22 }
 0x1d1   : > { %vm3191_vm0 = vcmp.lt.s32.totalorder %v3190_v30, 0  ;;  %vm2352_vm1 = vcmp.lt.s32.totalorder %v3850_v54, 1  ;;  %vm2354_vm2 = vcmp.lt.s32.totalorder %v3850_v54, 3  ;;  %vm2353_vm3 = vcmp.lt.s32.totalorder %v3850_v54, 2 }
 0x1d2   : > { %v1527_v13 = vsel %vm3191_vm0, 0, %v3190_v30  ;;  %v2360_v58 = vsel %vm2352_vm1, %v2339_v36, %v2342_v37  ;;  %v1626_v23 = vsub.s32 0, %v3885_v34  ;;  %v2362_v61 = vsel %vm2354_vm2, %v2345_v29, %v2361_v10 }
 0x1d3   : > { %v1528_v32 = vsub.s32 32, %v1527_v13  ;;  %v1532_v60 = vsub.s32 4294967266, %v1527_v13  ;;  %v2364_v52 = vsel %vm2352_vm1, %v2342_v37, %v2345_v29  ;;  %v1529_v22 = vshll.u32 %v3829_v45, %v1527_v13 }
 0x1d4   : > { %vm1562_vm4 = vcmp.lt.s32.totalorder %v3740_v9, 0  ;;  %v2365_v4 = vsel %vm2355_vm15, %v2351_v47, 1326507024  ;;  %v3193_v5 = vmin.u32 %v1626_v23, %v3885_v34  ;;  %v2357_v6 = vsel %vm2355_vm15, %v2345_v29, 2102212464 }
 0x1d5   : > { %v1530_v63 = vshrl.u32 %v1512_v19, %v1528_v32  ;;  %v1533_v3 = vadd.s32 127, %v1532_v60  ;;  %v2363_v7 = vsel %vm2353_vm3, %v2360_v58, %v2362_v61  ;;  %v2366_v12 = vsel %vm2354_vm2, %v2348_v24, %v2365_v4 }
 0x1d6   : > { %v2367_v17 = vsel %vm2353_vm3, %v2364_v52, %v2366_v12  ;;  %v2434_v19 = vadd.s32 1, %v3224_v27  ;;  %v1545_v21 = vsel %vm3874_vm14, 0, %v1543_v28  ;;  %vm3915_vm5 = vcmp.le.f32.partialorder %v1560_v18, 0.7853982 }
 0x1d7   : > { %v1531_v16 = vor.u32 %v1530_v63, %v1529_v22  ;;  %v1534_v45 = vshll.u32 %v1533_v3, 23  ;;  %v1628_v31 = vclz %v3193_v5  ;;  %v1646_v39 = vsub.s32 4, %v3869_v50 }
 0x1d8   : > { %v2356_v24 = vsel %vm2352_vm1, %v2336_v59, %v2339_v36  ;;  %v2358_v47 = vsel %vm2354_vm2, %v2342_v37, %v2357_v6  ;;  %v3925_v27 = vmul.u32.u64.low %v3852_v57, %v2367_v17  ;;  %v3926_v10 = vmul.u32.u64.high %v3852_v57, %v2367_v17, %v3925_v27 }
 0x1d9   : > { %v1535_v29 = vor.u32 4788187, %v1534_v45  ;;  %v3194_v28 = vadd.s32 4294967294, %v1628_v31  ;;  %v3929_v18 = vmul.u32.u64.low %v3852_v57, %v2363_v7  ;;  %v3930_v13 = vmul.u32.u64.high %v3852_v57, %v2363_v7, %v3929_v18 }
 0x1da   : > { %vm2435_vm6 = vcmp.gt.s32.totalorder %v2434_v19, 0  ;;  %v1538_v60 = vcvt.s32.f32 %v1531_v16  ;;  %v1549_v58 = vadd.s32 3, %v1545_v21  ;;  %v2359_v36 = vsel %vm2353_vm3, %v2356_v24, %v2358_v47 }
 0x1db   : > { %v1536_v32 = vand.u32 2147483647, %v1535_v29  ;;  %v2436_v23 = vsel %vm2435_vm6, %v2434_v19, 0  ;;  %vm3195_vm7 = vcmp.lt.s32.totalorder %v3194_v28, 0  ;;  %v2432_v37 = vor.u32 8388608, %v3856_v11 }
 0x1dc   : > { %v2438_v59 = vand.u32 31, %v2436_v23  ;;  %v1616_v52 = vadd.s32 %v3813_v20, %v3821_v25  ;;  %v1631_v22 = vsel %vm3195_vm7, 0, %v3194_v28  ;;  %vm2377_vm8 = vc.u32 %v3926_v10, %v3929_v18 }
 0x1dd   : > { %v1539_v61 = vmul.f32 %v1538_v60, %v1536_v32  ;;  %v1632_v63 = vsub.s32 32, %v1631_v22  ;;  %v1636_v3 = vsub.s32 4294967266, %v1631_v22  ;;  %v1647_v4 = vsel %vm1562_vm4, %v1646_v39, %v3869_v50 }
 0x1de   : > { %v2378_v54 = vadd.s32 1, %v3930_v13  ;;  %v3944_v6 = vand.u32 3, %v1549_v58  ;;  %v2375_v11 = vmul.u32 %v3852_v57, %v2359_v36  ;;  %v2439_v7 = vsub.s32 32, %v2438_v59 }
 0x1df   : > { %v1540_v5 = vxor.u32 2147483648, %v1539_v61  ;;  %v1633_v20 = vshll.u32 %v3885_v34, %v1631_v22  ;;  %v1634_v25 = vshrl.u32 %v1616_v52, %v1632_v63  ;;  %v1637_v12 = vadd.s32 127, %v1636_v3 }
 0x1e0   : > { %v2379_v16 = vsel %vm2377_vm8, %v2378_v54, %v3930_v13  ;;  %v1649_v50 = vsel %vm3915_vm5, 0, %v1647_v4  ;;  %v3953_v19 = vshrl.u32 %v2436_v23, 5  ;;  %v2441_v34 = vshll.u32 %v3549_v38, %v2438_v59 }
 0x1e1   : > { %v1541_v45 = vsel %vm1458_vm13, %v1540_v5, %v1539_v61  ;;  %v2380_v17 = vadd.s32 %v2379_v16, %v2375_v11  ;;  %v1635_v21 = vor.u32 %v1634_v25, %v1633_v20  ;;  %v1638_v31 = vshll.u32 %v1637_v12, 23 }
 0x1e2   : > { %v1544_v57 = vsel %vm3874_vm14, %v3738_v8, %v1541_v45  ;;  %v2442_v24 = vshrl.u32 %v3550_v40, %v2439_v7  ;;  %v2444_v29 = vshll.u32 %v3550_v40, %v2438_v59  ;;  %v2445_v27 = vshrl.u32 %v3551_v42, %v2439_v7 }
 0x1e3   : > { %3385 = vcosq.f32 %v1544_v57  ;;  %v2381_v39 = vadd.s32 536870912, %v2380_v17  ;;  %v1639_v47 = vor.u32 4788187, %v1638_v31  ;;  %v2448_v28 = vshrl.u32 %v3552_v43, %v2439_v7 }
 0x1e4   : > { %3387 = vsinq.f32 %v1544_v57  ;;  %v2447_v26 = vshll.u32 %v3551_v42, %v2438_v59  ;;  %v2450_v32 = vshll.u32 %v3552_v43, %v2438_v59  ;;  %v2451_v60 = vshrl.u32 %v3553_v46, %v2439_v7 }
 0x1e5   : > { %v3963_v13 = vshrl.u32 %v2381_v39, 30  ;;  %v1640_v58 = vand.u32 2147483647, %v1639_v47  ;;  %v1642_v23 = vcvt.s32.f32 %v1635_v21  ;;  %v2453_v36 = vshll.u32 %v3553_v46, %v2438_v59 }
 0x1e6   : > { %v2454_v61 = vshrl.u32 %v3554_v55, %v2439_v7  ;;  %vm1555_vm9 = vcmp.eq.s32.totalorder %v3944_v6, 2  ;;  %v2443_v22 = vor.u32 %v2442_v24, %v2441_v34  ;;  %v2452_v63 = vor.u32 %v2451_v60, %v2450_v32 }
 0x1e7   : > { %v2383_v52 = vshll.u32 %v3963_v13, 30  ;;  %vm1552_vm10 = vcmp.eq.s32.totalorder %v3944_v6, 0  ;;  %v1643_v3 = vmul.f32 %v1642_v23, %v1640_v58  ;;  %v2446_v4 = vor.u32 %v2445_v27, %v2444_v29 }
 0x1e8   : > { %v2449_v54 = vor.u32 %v2448_v28, %v2447_v26  ;;  %v2455_v5 = vor.u32 %v2454_v61, %v2453_v36  ;;  %vm1551_vm11 = vcmp.lt.s32.totalorder %v3944_v6, 2  ;;  %v1653_v11 = vadd.s32 3, %v1649_v50 }
 0x1e9   : > { %v3974_v20 = vsub.s32 %v2380_v17, %v2383_v52  ;;  %v3976_v59 = vshll.u32 %v2432_v37, 8  ;;  %v1251_v25 = vand.u32 2139095040, %v3848_v53  ;;  %vm1548_vm12 = vweird.f32 %v3738_v8 }
 0x1ea   : > { %v1644_v12 = vxor.u32 2147483648, %v1643_v3  ;;  %v2440_v16 = vshrl.u32 %v3549_v38, %v2439_v7  ;;  %vm2456_vm13 = vcmp.lt.s32.totalorder %v3953_v19, 1  ;;  %vm2459_vm14 = vcmp.lt.s32.totalorder %v3953_v19, 4 }
 0x1eb   : > { %v2386_v45 = vsub.s32 0, %v3974_v20  ;;  %v2406_v50 = vsub.s32 4, %v3963_v13  ;;  %vm2458_vm15 = vcmp.lt.s32.totalorder %v3953_v19, 3  ;;  %v2465_v37 = vsel %vm2459_vm14, %v2452_v63, 920167782 }
 0x1ec   : > { %v1645_v17 = vsel %vm1562_vm4, %v1644_v12, %v1643_v3  ;;  %vm2322_vm0 = vcmp.lt.s32.totalorder %v3744_v14, 0  ;;  %v2464_v7 = vsel %vm2456_vm13, %v2443_v22, %v2446_v4  ;;  %v2466_v57 = vsel %vm2458_vm15, %v2449_v54, %v2465_v37 }
 0x1ed   : > { %v2469_v21 = vsel %vm2459_vm14, %v2455_v5, 1326507024  ;;  %v3386_v31 = vpop.eup %3385  ;;  %v1648_v34 = vsel %vm3915_vm5, %v3740_v9, %v1645_v17  ;;  %v3221_v39 = vmin.u32 %v2386_v45, %v3974_v20  ;;  %v2461_v24 = vsel %vm2459_vm14, %v2449_v54, 2102212464 }
 0x1ee   : > { %v2468_v29 = vsel %vm2456_vm13, %v2446_v4, %v2449_v54  ;;  %v3388_v47 = vpop.eup %3387  ;;  %v1556_v27 = vxor.u32 2147483648, %v3386_v31  ;;  %3389 = vcosq.f32 %v1648_v34  ;;  %vm2457_vm1 = vcmp.lt.s32.totalorder %v3953_v19, 2 }
 0x1ef   : > { %v2470_v28 = vsel %vm2458_vm15, %v2452_v63, %v2469_v21  ;;  %v1553_v26 = vxor.u32 2147483648, %v3388_v47  ;;  %3391 = vsinq.f32 %v1648_v34  ;;  %v2388_v30 = vclz %v3221_v39 }
 0x1f0   : > { %v2467_v32 = vsel %vm2457_vm1, %v2464_v7, %v2466_v57  ;;  %v1557_v60 = vsel %vm1555_vm9, %v1556_v27, %v3388_v47  ;;  %v2460_v58 = vsel %vm2456_vm13, %v2440_v16, %v2443_v22  ;;  %v2462_v23 = vsel %vm2458_vm15, %v2446_v4, %v2461_v24 }
 0x1f1   : > { %v2471_v36 = vsel %vm2457_vm1, %v2468_v29, %v2470_v28  ;;  %v1554_v61 = vsel %vm1552_vm10, %v3386_v31, %v1553_v26  ;;  %v3222_v52 = vadd.s32 4294967294, %v2388_v30  ;;  %v1252_v4 = vshrl.u32 %v1251_v25, 23 }
 0x1f2   : > { %v4018_v63 = vmul.u32.u64.low %v3976_v59, %v2471_v36  ;;  %v4019_v3 = vmul.u32.u64.high %v3976_v59, %v2471_v36, %v4018_v63  ;;  %v1558_v54 = vsel %vm1551_vm11, %v1554_v61, %v1557_v60  ;;  %vm4032_vm2 = vcmp.le.f32.partialorder %v2320_v35, 0.7853982 }
 0x1f3   : > { %v4024_v5 = vmul.u32.u64.low %v3976_v59, %v2467_v32  ;;  %v4025_v22 = vmul.u32.u64.high %v3976_v59, %v2467_v32, %v4024_v5  ;;  %v1559_v12 = vsel %vm1548_vm12, nan, %v1558_v54  ;;  %vm3223_vm3 = vcmp.lt.s32.totalorder %v3222_v52, 0 }
 0x1f4   : > { %v4038_v6 = vadd.f32 %v3835_v49, %v3839_v51  ;;  %v1654_v45 = vand.u32 3, %v1653_v11  ;;  %2082 = vst [vmem:[%s4040_s6 + $0x10] sm:$0xff] %v1559_v12  ;;  %v2391_v25 = vsel %vm3223_vm3, 0, %v3222_v52  ;;  %v2463_v8 = vsel %vm2457_vm1, %v2460_v58, %v2462_v23 }
 0x1f5   : > { %v3180_v37 = vadd.s32 4294967169, %v1252_v4  ;;  %vm1652_vm4 = vweird.f32 %v3740_v9  ;;  %v2376_v35 = vadd.s32 %v3929_v18, %v3926_v10  ;;  %v2392_v17 = vsub.s32 32, %v2391_v25 }
 0x1f6   : > { %v2396_v7 = vsub.s32 4294967266, %v2391_v25  ;;  %v2407_v51 = vsel %vm2322_vm0, %v2406_v50, %v3963_v13  ;;  %vm2481_vm5 = vc.u32 %v4019_v3, %v4024_v5  ;;  %v2482_v11 = vadd.s32 1, %v4025_v22 }
 0x1f7   : > { %v1248_v19 = vand.u32 2147483647, %v3848_v53  ;;  %v1258_v57 = vadd.s32 1, %v3180_v37  ;;  %v2393_v21 = vshll.u32 %v3974_v20, %v2391_v25  ;;  %v2394_v31 = vshrl.u32 %v2376_v35, %v2392_v17 }
 0x1f8   : > { %v2397_v34 = vadd.s32 127, %v2396_v7  ;;  %v2479_v10 = vmul.u32 %v3976_v59, %v2463_v8  ;;  %v3390_v18 = vpop.eup %3389  ;;  %vm1655_vm6 = vcmp.lt.s32.totalorder %v1654_v45, 2  ;;  %v2409_v39 = vsel %vm4032_vm2, 0, %v2407_v51 }
 0x1f9   : > { %v2483_v13 = vsel %vm2481_vm5, %v2482_v11, %v4025_v22  ;;  %vm1259_vm7 = vcmp.gt.s32.totalorder %v1258_v57, 0  ;;  %v3392_v50 = vpop.eup %3391  ;;  %v1660_v24 = vxor.u32 2147483648, %v3390_v18  ;;  %v2395_v29 = vor.u32 %v2394_v31, %v2393_v21 }
 0x1fa   : > { %v2398_v47 = vshll.u32 %v2397_v34, 23  ;;  %v2484_v27 = vadd.s32 %v2483_v13, %v2479_v10  ;;  %vm1656_vm8 = vcmp.eq.s32.totalorder %v1654_v45, 0  ;;  %v1657_v28 = vxor.u32 2147483648, %v3392_v50 }
 0x1fb   : > { %vm1659_vm9 = vcmp.eq.s32.totalorder %v1654_v45, 2  ;;  %v1260_v20 = vsel %vm1259_vm7, %v1258_v57, 0  ;;  %v2413_v30 = vadd.s32 3, %v2409_v39  ;;  %v1255_v58 = vand.u32 8388607, %v1248_v19 }
 0x1fc   : > { %v1661_v26 = vsel %vm1659_vm9, %v1660_v24, %v3392_v50  ;;  %v2399_v59 = vor.u32 4788187, %v2398_v47  ;;  %v2485_v32 = vadd.s32 536870912, %v2484_v27  ;;  %v1658_v60 = vsel %vm1656_vm8, %v3390_v18, %v1657_v28 }
 0x1fd   : > { %v1262_v23 = vand.u32 31, %v1260_v20  ;;  %v1355_v36 = vand.u32 2139095040, %v4038_v6  ;;  %v1662_v61 = vsel %vm1655_vm6, %v1658_v60, %v1661_v26  ;;  %v2402_v63 = vcvt.s32.f32 %v2395_v29 }
 0x1fe   : > { %v2400_v52 = vand.u32 2147483647, %v2399_v59  ;;  %v4064_v54 = vshrl.u32 %v2485_v32, 30  ;;  %v1663_v22 = vsel %vm1652_vm4, nan, %v1662_v61  ;;  %v4070_v12 = vmul.f32 %v3747_v15, %v3722_v48 }
 0x1ff   : > { %v1263_v4 = vsub.s32 32, %v1262_v23  ;;  %v4074_v25 = vadd.f32 %v3843_v33, %v3835_v49  ;;  %2083 = vst [vmem:[%s4040_s6 + $0x18] sm:$0xff] %v1663_v22  ;;  %v4077_v45 = vand.u32 3, %v2413_v30  ;;  %v1352_v35 = vand.u32 2147483647, %v4038_v6 }
 0x200   : > { %v2403_v8 = vmul.f32 %v2402_v63, %v2400_v52  ;;  %v2487_v37 = vshll.u32 %v4064_v54, 30  ;;  %v1256_v17 = vor.u32 8388608, %v1255_v58  ;;  %v1356_v51 = vshrl.u32 %v1355_v36, 23 }
 0x201   : > { %v1266_v9 = vshrl.u32 %v3550_v40, %v1263_v4  ;;  %v1269_v7 = vshrl.u32 %v3551_v42, %v1263_v4  ;;  %v1265_v33 = vshll.u32 %v3549_v38, %v1262_v23  ;;  %v1272_v57 = vshrl.u32 %v3552_v43, %v1263_v4 }
 0x202   : > { %v2404_v48 = vxor.u32 2147483648, %v2403_v8  ;;  %v4083_v11 = vsub.s32 %v2484_v27, %v2487_v37  ;;  %v1261_v21 = vshrl.u32 %v1260_v20, 5  ;;  %v1268_v31 = vshll.u32 %v3550_v40, %v1262_v23 }
 0x203   : > { %v1271_v34 = vshll.u32 %v3551_v42, %v1262_v23  ;;  %v1274_v10 = vshll.u32 %v3552_v43, %v1262_v23  ;;  %v1267_v13 = vor.u32 %v1266_v9, %v1265_v33  ;;  %v1275_v50 = vshrl.u32 %v3553_v46, %v1263_v4 }
 0x204   : > { %v2405_v18 = vsel %vm2322_vm0, %v2404_v48, %v2403_v8  ;;  %v2490_v39 = vsub.s32 0, %v4083_v11  ;;  %v1270_v29 = vor.u32 %v1269_v7, %v1268_v31  ;;  %v1277_v47 = vshll.u32 %v3553_v46, %v1262_v23 }
 0x205   : > { %v2408_v24 = vsel %vm4032_vm2, %v3744_v14, %v2405_v18  ;;  %v1278_v27 = vshrl.u32 %v3554_v55, %v1263_v4  ;;  %v1273_v20 = vor.u32 %v1272_v57, %v1271_v34  ;;  %v1276_v26 = vor.u32 %v1275_v50, %v1274_v10 }
 0x206   : > { %3393 = vcosq.f32 %v2408_v24  ;;  %v3225_v28 = vmin.u32 %v2490_v39, %v4083_v11  ;;  %v4100_v30 = vshll.u32 %v1256_v17, 8  ;;  %v3184_v32 = vadd.s32 4294967169, %v1356_v51 }
 0x207   : > { %3395 = vsinq.f32 %v2408_v24  ;;  %v1279_v59 = vor.u32 %v1278_v27, %v1277_v47  ;;  %v1264_v58 = vshrl.u32 %v3549_v38, %v1263_v4  ;;  %vm1280_vm10 = vcmp.lt.s32.totalorder %v1261_v21, 1 }
 0x208   : > { %v2492_v60 = vclz %v3225_v28  ;;  %v1359_v16 = vand.u32 8388607, %v1352_v35  ;;  %vm1281_vm11 = vcmp.lt.s32.totalorder %v1261_v21, 2  ;;  %vm1282_vm12 = vcmp.lt.s32.totalorder %v1261_v21, 3 }
 0x209   : > { %vm1283_vm13 = vcmp.lt.s32.totalorder %v1261_v21, 4  ;;  %v1288_v23 = vsel %vm1280_vm10, %v1267_v13, %v1270_v29  ;;  %v1292_v63 = vsel %vm1280_vm10, %v1270_v29, %v1273_v20  ;;  %vm2416_vm14 = vcmp.eq.s32.totalorder %v4077_v45, 0 }
 0x20a   : > { %v3226_v36 = vadd.s32 4294967294, %v2492_v60  ;;  %v1285_v61 = vsel %vm1283_vm13, %v1273_v20, 2102212464  ;;  %v1289_v52 = vsel %vm1283_vm13, %v1276_v26, 920167782  ;;  %v1284_v22 = vsel %vm1280_vm10, %v1264_v58, %v1267_v13 }
 0x20b   : > { %v1290_v8 = vsel %vm1282_vm12, %v1273_v20, %v1289_v52  ;;  %v1293_v37 = vsel %vm1283_vm13, %v1279_v59, 1326507024  ;;  %v1362_v17 = vadd.s32 1, %v3184_v32  ;;  %vm2426_vm15 = vcmp.lt.s32.totalorder %v3757_v1, 0 }
 0x20c   : > { %vm3227_vm0 = vcmp.lt.s32.totalorder %v3226_v36, 0  ;;  %v1286_v4 = vsel %vm1282_vm12, %v1270_v29, %v1285_v61  ;;  %v1291_v9 = vsel %vm1281_vm11, %v1288_v23, %v1290_v8  ;;  %v1294_v7 = vsel %vm1282_vm12, %v1276_v26, %v1293_v37 }
 0x20d   : > { %vm2412_vm1 = vweird.f32 %v3744_v14  ;;  %v2495_v51 = vsel %vm3227_vm0, 0, %v3226_v36  ;;  %v1295_v48 = vsel %vm1281_vm11, %v1292_v63, %v1294_v7  ;;  %v2480_v31 = vadd.s32 %v4024_v5, %v4019_v3 }
 0x20e   : > { %v4114_v33 = vmul.u32.u64.low %v4100_v30, %v1291_v9  ;;  %v4115_v57 = vmul.u32.u64.high %v4100_v30, %v1291_v9, %v4114_v33  ;;  %v2496_v34 = vsub.s32 32, %v2495_v51  ;;  %v2500_v10 = vsub.s32 4294967266, %v2495_v51 }
 0x20f   : > { %v1360_v18 = vor.u32 8388608, %v1359_v16  ;;  %vm4122_vm2 = vcmp.le.f32.partialorder %v2424_v41, 0.7853982  ;;  %v1287_v13 = vsel %vm1281_vm11, %v1284_v22, %v1286_v4  ;;  %vm1363_vm3 = vcmp.gt.s32.totalorder %v1362_v17, 0 }
 0x210   : > { %v4128_v50 = vmul.u32.u64.low %v4100_v30, %v1295_v48  ;;  %v4129_v24 = vmul.u32.u64.high %v4100_v30, %v1295_v48, %v4128_v50  ;;  %v3394_v29 = vpop.eup %3393  ;;  %v2497_v47 = vshll.u32 %v4083_v11, %v2495_v51  ;;  %v2498_v3 = vshrl.u32 %v2480_v31, %v2496_v34 }
 0x211   : > { %v2501_v5 = vadd.s32 127, %v2500_v10  ;;  %v1364_v27 = vsel %vm1363_vm3, %v1362_v17, 0  ;;  %v3396_v28 = vpop.eup %3395  ;;  %v2420_v20 = vxor.u32 2147483648, %v3394_v29  ;;  %v2510_v41 = vsub.s32 4, %v4064_v54 }
 0x212   : > { %v1306_v26 = vadd.s32 1, %v4115_v57  ;;  %v1366_v59 = vand.u32 31, %v1364_v27  ;;  %v2417_v21 = vxor.u32 2147483648, %v3396_v28  ;;  %vm2419_vm4 = vcmp.eq.s32.totalorder %v4077_v45, 2 }
 0x213   : > { %v2499_v32 = vor.u32 %v2498_v3, %v2497_v47  ;;  %v2502_v60 = vshll.u32 %v2501_v5, 23  ;;  %v2421_v58 = vsel %vm2419_vm4, %v2420_v20, %v3396_v28  ;;  %v1303_v16 = vmul.u32 %v4100_v30, %v1287_v13 }
 0x214   : > { %vm1305_vm5 = vc.u32 %v4129_v24, %v4114_v33  ;;  %v1367_v11 = vsub.s32 32, %v1366_v59  ;;  %vm2415_vm6 = vcmp.lt.s32.totalorder %v4077_v45, 2  ;;  %v2418_v23 = vsel %vm2416_vm14, %v3394_v29, %v2417_v21 }
 0x215   : > { %v2503_v36 = vor.u32 4788187, %v2502_v60  ;;  %v1307_v61 = vsel %vm1305_vm5, %v1306_v26, %v4115_v57  ;;  %v2422_v52 = vsel %vm2415_vm6, %v2418_v23, %v2421_v58  ;;  %v2511_v63 = vsel %vm2426_vm15, %v2510_v41, %v4064_v54 }
 0x216   : > { %v1308_v22 = vadd.s32 %v1307_v61, %v1303_v16  ;;  %v4145_v8 = vshll.u32 %v1360_v18, 8  ;;  %v2423_v30 = vsel %vm2412_vm1, nan, %v2422_v52  ;;  %v2506_v17 = vcvt.s32.f32 %v2499_v32 }
 0x217   : > { %v2504_v37 = vand.u32 2147483647, %v2503_v36  ;;  %v1370_v4 = vshrl.u32 %v3550_v40, %v1367_v11  ;;  %2946 = vst [vmem:[%s4040_s6 + $0x50] sm:$0xff] %v2423_v30  ;;  %v1373_v9 = vshrl.u32 %v3551_v42, %v1367_v11  ;;  %v1375_v7 = vshll.u32 %v3551_v42, %v1366_v59 }
 0x218   : > { %v1309_v45 = vadd.s32 536870912, %v1308_v22  ;;  %v1376_v51 = vshrl.u32 %v3552_v43, %v1367_v11  ;;  %v2513_v54 = vsel %vm4122_vm2, 0, %v2511_v63  ;;  %v1365_v57 = vshrl.u32 %v1364_v27, 5 }
 0x219   : > { %v2507_v48 = vmul.f32 %v2506_v17, %v2504_v37  ;;  %v1379_v14 = vshrl.u32 %v3553_v46, %v1367_v11  ;;  %v1369_v34 = vshll.u32 %v3549_v38, %v1366_v59  ;;  %v1372_v10 = vshll.u32 %v3550_v40, %v1366_v59 }
 0x21a   : > { %v1310_v31 = vshrl.u32 %v1309_v45, 30  ;;  %v1377_v18 = vor.u32 %v1376_v51, %v1375_v7  ;;  %vm1250_vm7 = vcmp.lt.s32.totalorder %v3848_v53, 0  ;;  %v1378_v50 = vshll.u32 %v3552_v43, %v1366_v59 }
 0x21b   : > { %v2508_v13 = vxor.u32 2147483648, %v2507_v48  ;;  %v1381_v29 = vshll.u32 %v3553_v46, %v1366_v59  ;;  %v1382_v47 = vshrl.u32 %v3554_v55, %v1367_v11  ;;  %v2517_v3 = vadd.s32 3, %v2513_v54 }
 0x21c   : > { %v1311_v5 = vshll.u32 %v1310_v31, 30  ;;  %v1371_v27 = vor.u32 %v1370_v4, %v1369_v34  ;;  %v1374_v28 = vor.u32 %v1373_v9, %v1372_v10  ;;  %v1380_v41 = vor.u32 %v1379_v14, %v1378_v50 }
 0x21d   : > { %v2509_v20 = vsel %vm2426_vm15, %v2508_v13, %v2507_v48  ;;  %v1383_v26 = vor.u32 %v1382_v47, %v1381_v29  ;;  %vm1387_vm8 = vcmp.lt.s32.totalorder %v1365_v57, 4  ;;  %v1368_v59 = vshrl.u32 %v3549_v38, %v1367_v11 }
 0x21e   : > { %v2512_v21 = vsel %vm4122_vm2, %v3757_v1, %v2509_v20  ;;  %v4168_v32 = vsub.s32 %v1308_v22, %v1311_v5  ;;  %v1389_v60 = vsel %vm1387_vm8, %v1377_v18, 2102212464  ;;  %v1334_v58 = vsub.s32 4, %v1310_v31 }
 0x21f   : > { %3397 = vcosq.f32 %v2512_v21  ;;  %vm1384_vm9 = vcmp.lt.s32.totalorder %v1365_v57, 1  ;;  %vm1386_vm10 = vcmp.lt.s32.totalorder %v1365_v57, 3  ;;  %v1393_v52 = vsel %vm1387_vm8, %v1380_v41, 920167782 }
 0x220   : > { %3399 = vsinq.f32 %v2512_v21  ;;  %v1314_v16 = vsub.s32 0, %v4168_v32  ;;  %v1388_v23 = vsel %vm1384_vm9, %v1368_v59, %v1371_v27  ;;  %v1392_v36 = vsel %vm1384_vm9, %v1371_v27, %v1374_v28 }
 0x221   : > { %v1390_v61 = vsel %vm1386_vm10, %v1374_v28, %v1389_v60  ;;  %v1396_v39 = vsel %vm1384_vm9, %v1374_v28, %v1377_v18  ;;  %v1397_v63 = vsel %vm1387_vm8, %v1383_v26, 1326507024  ;;  %vm1385_vm11 = vcmp.lt.s32.totalorder %v1365_v57, 2 }
 0x222   : > { %v3181_v22 = vmin.u32 %v1314_v16, %v4168_v32  ;;  %v1394_v11 = vsel %vm1386_vm10, %v1377_v18, %v1393_v52  ;;  %v1398_v30 = vsel %vm1386_vm10, %v1380_v41, %v1397_v63  ;;  %v2518_v37 = vand.u32 3, %v2517_v3 }
 0x223   : > { %v1395_v17 = vsel %vm1385_vm11, %v1392_v36, %v1394_v11  ;;  %v1399_v4 = vsel %vm1385_vm11, %v1396_v39, %v1398_v30  ;;  %v2115_v45 = vand.u32 2139095040, %v4074_v25  ;;  %v1335_v7 = vsel %vm1250_vm7, %v1334_v58, %v1310_v31 }
 0x224   : > { %v1316_v9 = vclz %v3181_v22  ;;  %v1391_v51 = vsel %vm1385_vm11, %v1388_v23, %v1390_v61  ;;  %v2112_v48 = vand.u32 2147483647, %v4074_v25  ;;  %vm2516_vm12 = vweird.f32 %v3757_v1 }
 0x225   : > { %v4181_v54 = vmul.u32.u64.low %v4145_v8, %v1399_v4  ;;  %v4182_v14 = vmul.u32.u64.high %v4145_v8, %v1399_v4, %v4181_v54  ;;  %v4185_v57 = vmul.u32.u64.low %v4145_v8, %v1395_v17  ;;  %v4186_v34 = vmul.u32.u64.high %v4145_v8, %v1395_v17, %v4185_v57 }
 0x226   : > { %v3182_v10 = vadd.s32 4294967294, %v1316_v9  ;;  %v4191_v18 = vadd.f32 %v4070_v12, %v3835_v49  ;;  %v2116_v13 = vshrl.u32 %v2115_v45, 23  ;;  %vm2520_vm13 = vcmp.eq.s32.totalorder %v2518_v37, 0 }
 0x227   : > { %vm2523_vm14 = vcmp.eq.s32.totalorder %v2518_v37, 2  ;;  %vm4195_vm15 = vcmp.le.f32.partialorder %v1248_v19, 0.7853982  ;;  %v1304_v50 = vadd.s32 %v4114_v33, %v4129_v24  ;;  %v1407_v47 = vmul.u32 %v4145_v8, %v1391_v51 }
 0x228   : > { %vm3183_vm0 = vcmp.lt.s32.totalorder %v3182_v10, 0  ;;  %v1337_v29 = vsel %vm4195_vm15, 0, %v1335_v7  ;;  %v3212_v49 = vadd.s32 4294967169, %v2116_v13  ;;  %vm1409_vm1 = vc.u32 %v4182_v14, %v4185_v57 }
 0x229   : > { %v3398_v12 = vpop.eup %3397  ;;  %v1319_v3 = vsel %vm3183_vm0, 0, %v3182_v10  ;;  %v1410_v5 = vadd.s32 1, %v4186_v34  ;;  %v2119_v19 = vand.u32 8388607, %v2112_v48  ;;  %v2219_v24 = vand.u32 2139095040, %v4191_v18 }
 0x22a   : > { %v3400_v27 = vpop.eup %3399  ;;  %v2524_v28 = vxor.u32 2147483648, %v3398_v12  ;;  %v1320_v20 = vsub.s32 32, %v1319_v3  ;;  %v1324_v33 = vsub.s32 4294967266, %v1319_v3  ;;  %v1321_v26 = vshll.u32 %v4168_v32, %v1319_v3 }
 0x22b   : > { %v2521_v41 = vxor.u32 2147483648, %v3400_v27  ;;  %v1411_v8 = vsel %vm1409_vm1, %v1410_v5, %v4186_v34  ;;  %v2122_v21 = vadd.s32 1, %v3212_v49  ;;  %vm2519_vm2 = vcmp.lt.s32.totalorder %v2518_v37, 2 }
 0x22c   : > { %v2525_v59 = vsel %vm2523_vm14, %v2524_v28, %v3400_v27  ;;  %v1322_v60 = vshrl.u32 %v1304_v50, %v1320_v20  ;;  %v1325_v58 = vadd.s32 127, %v1324_v33  ;;  %v1412_v16 = vadd.s32 %v1411_v8, %v1407_v47 }
 0x22d   : > { %v2522_v23 = vsel %vm2520_vm13, %v3398_v12, %v2521_v41  ;;  %v1341_v36 = vadd.s32 3, %v1337_v29  ;;  %vm2123_vm3 = vcmp.gt.s32.totalorder %v2122_v21, 0  ;;  %v2120_v22 = vor.u32 8388608, %v2119_v19 }
 0x22e   : > { %v2526_v61 = vsel %vm2519_vm2, %v2522_v23, %v2525_v59  ;;  %v1323_v52 = vor.u32 %v1322_v60, %v1321_v26  ;;  %v1326_v39 = vshll.u32 %v1325_v58, 23  ;;  %v1413_v63 = vadd.s32 536870912, %v1412_v16 }
 0x22f   : > { %v2527_v32 = vsel %vm2516_vm12, nan, %v2526_v61  ;;  %v2124_v11 = vsel %vm2123_vm3, %v2122_v21, 0  ;;  %v2220_v30 = vshrl.u32 %v2219_v24, 23  ;;  %v2216_v45 = vand.u32 2147483647, %v4191_v18 }
 0x230   : > { %2947 = vst [vmem:[%s4040_s6 + $0x58] sm:$0xff] %v2527_v32  ;;  %v1327_v17 = vor.u32 4788187, %v1326_v39  ;;  %v1414_v4 = vshrl.u32 %v1413_v63, 30  ;;  %v2126_v9 = vand.u32 31, %v2124_v11  ;;  %v1330_v7 = vcvt.s32.f32 %v1323_v52 }
 0x231   : > { %v4217_v51 = vand.u32 3, %v1341_v36  ;;  %vm1354_vm4 = vcmp.lt.s32.totalorder %v4038_v6, 0  ;;  %v4221_v34 = vadd.s32 %v4185_v57, %v4182_v14  ;;  %v4223_v10 = vshll.u32 %v2120_v22, 8 }
 0x232   : > { %v1328_v37 = vand.u32 2147483647, %v1327_v17  ;;  %v1415_v54 = vshll.u32 %v1414_v4, 30  ;;  %v2127_v1 = vsub.s32 32, %v2126_v9  ;;  %v3216_v13 = vadd.s32 4294967169, %v2220_v30 }
 0x233   : > { %v4227_v47 = vshrl.u32 %v2124_v11, 5  ;;  %v4231_v49 = vand.u32 8388607, %v2216_v45  ;;  %v1438_v12 = vsub.s32 4, %v1414_v4  ;;  %v2129_v3 = vshll.u32 %v3549_v38, %v2126_v9 }
 0x234   : > { %v1331_v50 = vmul.f32 %v1330_v7, %v1328_v37  ;;  %v4225_v29 = vsub.s32 %v1412_v16, %v1415_v54  ;;  %v2130_v5 = vshrl.u32 %v3550_v40, %v2127_v1  ;;  %v2133_v14 = vshrl.u32 %v3551_v42, %v2127_v1 }
 0x235   : > { %vm4238_vm5 = vcmp.le.f32.partialorder %v1352_v35, 0.7853982  ;;  %v2132_v28 = vshll.u32 %v3550_v40, %v2126_v9  ;;  %v2136_v20 = vshrl.u32 %v3552_v43, %v2127_v1  ;;  %v2135_v24 = vshll.u32 %v3551_v42, %v2126_v9 }
 0x236   : > { %v1332_v57 = vxor.u32 2147483648, %v1331_v50  ;;  %v1418_v27 = vsub.s32 0, %v4225_v29  ;;  %v2131_v33 = vor.u32 %v2130_v5, %v2129_v3  ;;  %v2138_v41 = vshll.u32 %v3552_v43, %v2126_v9 }
 0x237   : > { %v2139_v26 = vshrl.u32 %v3553_v46, %v2127_v1  ;;  %v2134_v21 = vor.u32 %v2133_v14, %v2132_v28  ;;  %v2141_v59 = vshll.u32 %v3553_v46, %v2126_v9  ;;  %v2137_v58 = vor.u32 %v2136_v20, %v2135_v24 }
 0x238   : > { %v1333_v8 = vsel %vm1250_vm7, %v1332_v57, %v1331_v50  ;;  %v3185_v35 = vmin.u32 %v1418_v27, %v4225_v29  ;;  %v2142_v23 = vshrl.u32 %v3554_v55, %v2127_v1  ;;  %vm2144_vm6 = vcmp.lt.s32.totalorder %v4227_v47, 1 }
 0x239   : > { %v1336_v60 = vsel %vm4195_vm15, %v3848_v53, %v1333_v8  ;;  %v2140_v16 = vor.u32 %v2139_v26, %v2138_v41  ;;  %v2226_v61 = vadd.s32 1, %v3216_v13  ;;  %v1439_v52 = vsel %vm1354_vm4, %v1438_v12, %v1414_v4 }
 0x23a   : > { %3401 = vcosq.f32 %v1336_v60  ;;  %v1420_v36 = vclz %v3185_v35  ;;  %v2128_v39 = vshrl.u32 %v3549_v38, %v2127_v1  ;;  %v2143_v63 = vor.u32 %v2142_v23, %v2141_v59 }
 0x23b   : > { %3403 = vsinq.f32 %v1336_v60  ;;  %vm2146_vm7 = vcmp.lt.s32.totalorder %v4227_v47, 3  ;;  %vm2147_vm8 = vcmp.lt.s32.totalorder %v4227_v47, 4  ;;  %v2152_v31 = vsel %vm2144_vm6, %v2131_v33, %v2134_v21 }
 0x23c   : > { %v3186_v32 = vadd.s32 4294967294, %v1420_v36  ;;  %v2149_v22 = vsel %vm2147_vm8, %v2137_v58, 2102212464  ;;  %v2153_v11 = vsel %vm2147_vm8, %v2140_v16, 920167782  ;;  %v2156_v30 = vsel %vm2144_vm6, %v2134_v21, %v2137_v58 }
 0x23d   : > { %v2157_v17 = vsel %vm2147_vm8, %v2143_v63, 1326507024  ;;  %vm2145_vm10 = vcmp.lt.s32.totalorder %v4227_v47, 2  ;;  %v2154_v4 = vsel %vm2146_vm7, %v2137_v58, %v2153_v11  ;;  %vm1344_vm11 = vcmp.eq.s32.totalorder %v4217_v51, 0 }
 0x23e   : > { %vm3187_vm9 = vcmp.lt.s32.totalorder %v3186_v32, 0  ;;  %v2158_v9 = vsel %vm2146_vm7, %v2140_v16, %v2157_v17  ;;  %v1441_v7 = vsel %vm4238_vm5, 0, %v1439_v52  ;;  %v2155_v54 = vsel %vm2145_vm10, %v2152_v31, %v2154_v4 }
 0x23f   : > { %v1423_v37 = vsel %vm3187_vm9, 0, %v3186_v32  ;;  %v2159_v1 = vsel %vm2145_vm10, %v2156_v30, %v2158_v9  ;;  %vm1343_vm12 = vcmp.lt.s32.totalorder %v4217_v51, 2  ;;  %v2148_v12 = vsel %vm2144_vm6, %v2128_v39, %v2131_v33 }
 0x240   : > { %v1424_v13 = vsub.s32 32, %v1423_v37  ;;  %v1428_v50 = vsub.s32 4294967266, %v1423_v37  ;;  %v2150_v3 = vsel %vm2146_vm7, %v2134_v21, %v2149_v22  ;;  %vm1340_vm13 = vweird.f32 %v3848_v53 }
 0x241   : > { %v4285_v5 = vmul.u32.u64.low %v4223_v10, %v2159_v1  ;;  %v4286_v14 = vmul.u32.u64.high %v4223_v10, %v2159_v1, %v4285_v5  ;;  %v4289_v57 = vmul.u32.u64.low %v4223_v10, %v2155_v54  ;;  %v4290_v27 = vmul.u32.u64.high %v4223_v10, %v2155_v54, %v4289_v57 }
 0x242   : > { %v1425_v28 = vshll.u32 %v4225_v29, %v1423_v37  ;;  %v1426_v20 = vshrl.u32 %v4221_v34, %v1424_v13  ;;  %v1429_v24 = vadd.s32 127, %v1428_v50  ;;  %vm2227_vm14 = vcmp.gt.s32.totalorder %v2226_v61, 0 }
 0x243   : > { %vm1347_vm15 = vcmp.eq.s32.totalorder %v4217_v51, 2  ;;  %v1445_v33 = vadd.s32 3, %v1441_v7  ;;  %v2151_v41 = vsel %vm2145_vm10, %v2148_v12, %v2150_v3  ;;  %v2228_v26 = vsel %vm2227_vm14, %v2226_v61, 0 }
 0x244   : > { %v3402_v8 = vpop.eup %3401  ;;  %v1427_v35 = vor.u32 %v1426_v20, %v1425_v28  ;;  %v1430_v21 = vshll.u32 %v1429_v24, 23  ;;  %v2230_v59 = vand.u32 31, %v2228_v26  ;;  %v1218_v60 = vmul.f32 %v3724_v56, %v3727_v62 }
 0x245   : > { %v3404_v58 = vpop.eup %3403  ;;  %v1348_v29 = vxor.u32 2147483648, %v3402_v8  ;;  %vm2169_vm0 = vc.u32 %v4286_v14, %v4289_v57  ;;  %v2170_v34 = vadd.s32 1, %v4290_v27  ;;  %v2224_v16 = vor.u32 8388608, %v4231_v49 }
 0x246   : > { %v1345_v23 = vxor.u32 2147483648, %v3404_v58  ;;  %v1431_v47 = vor.u32 4788187, %v1430_v21  ;;  %v2167_v36 = vmul.u32 %v4223_v10, %v2151_v41  ;;  %v2231_v61 = vsub.s32 32, %v2230_v59 }
 0x247   : > { %v1349_v52 = vsel %vm1347_vm15, %v1348_v29, %v3404_v58  ;;  %v4307_v39 = vand.u32 3, %v1445_v33  ;;  %v2171_v63 = vsel %vm2169_vm0, %v2170_v34, %v4290_v27  ;;  %v4312_v32 = vmul.f32 %v3724_v56, %v3733_v2 }
 0x248   : > { %v1346_v49 = vsel %vm1344_vm11, %v3402_v8, %v1345_v23  ;;  %v1432_v31 = vand.u32 2147483647, %v1431_v47  ;;  %v1434_v22 = vcvt.s32.f32 %v1427_v35  ;;  %v2172_v11 = vadd.s32 %v2171_v63, %v2167_v36  ;;  %v4335_v35 = vpop.permute.xlu1 %1237 }
 0x249   : > { %v1350_v10 = vsel %vm1343_vm12, %v1346_v49, %v1349_v52  ;;  %v2233_v30 = vshll.u32 %v3549_v38, %v2230_v59  ;;  %v2234_v17 = vshrl.u32 %v3550_v40, %v2231_v61  ;;  %v2237_v4 = vshrl.u32 %v3551_v42, %v2231_v61 }
 0x24a   : > { %v1351_v9 = vsel %vm1340_vm13, nan, %v1350_v10  ;;  %v1435_v37 = vmul.f32 %v1434_v22, %v1432_v31  ;;  %v2173_v7 = vadd.s32 536870912, %v2172_v11  ;;  %v2240_v54 = vshrl.u32 %v3552_v43, %v2231_v61 }
 0x24b   : > { %2080 = vst [vmem:[%s4040_s6] sm:$0xff] %v1351_v9  ;;  %v2229_v1 = vshrl.u32 %v2228_v26, 5  ;;  %v2236_v13 = vshll.u32 %v3550_v40, %v2230_v59  ;;  %v2239_v51 = vshll.u32 %v3551_v42, %v2230_v59  ;;  %v2243_v50 = vshrl.u32 %v3553_v46, %v2231_v61 }
 0x24c   : > { %v1436_v12 = vxor.u32 2147483648, %v1435_v37  ;;  %v2174_v3 = vshrl.u32 %v2173_v7, 30  ;;  %v2235_v5 = vor.u32 %v2234_v17, %v2233_v30  ;;  %v2242_v27 = vshll.u32 %v3552_v43, %v2230_v59 }
 0x24d   : > { %v2238_v28 = vor.u32 %v2237_v4, %v2236_v13  ;;  %v2241_v53 = vor.u32 %v2240_v54, %v2239_v51  ;;  %v2245_v20 = vshll.u32 %v3553_v46, %v2230_v59  ;;  %v2246_v24 = vshrl.u32 %v3554_v55, %v2231_v61 }
 0x24e   : > { %v1437_v33 = vsel %vm1354_vm4, %v1436_v12, %v1435_v37  ;;  %v2175_v41 = vshll.u32 %v2174_v3, 30  ;;  %v2244_v26 = vor.u32 %v2243_v50, %v2242_v27  ;;  %v4333_v8 = vshll.u32 %v2224_v16, 8 }
 0x24f   : > { %v1440_v21 = vsel %vm4238_vm5, %v4038_v6, %v1437_v33  ;;  %v2232_v58 = vshrl.u32 %v3549_v38, %v2231_v61  ;;  %v2247_v29 = vor.u32 %v2246_v24, %v2245_v20  ;;  %v4342_v59 = vadd.f32 %v4335_v35, %v1218_v60 }
 0x250   : > { %3405 = vcosq.f32 %v1440_v21  ;;  %v4344_v34 = vsub.s32 %v2172_v11, %v2175_v41  ;;  %vm2248_vm1 = vcmp.lt.s32.totalorder %v2229_v1, 1  ;;  %vm2251_vm2 = vcmp.lt.s32.totalorder %v2229_v1, 4 }
 0x251   : > { %3407 = vsinq.f32 %v1440_v21  ;;  %vm2249_vm3 = vcmp.lt.s32.totalorder %v2229_v1, 2  ;;  %v2253_v16 = vsel %vm2251_vm2, %v2241_v53, 2102212464  ;;  %v2256_v23 = vsel %vm2248_vm1, %v2235_v5, %v2238_v28 }
 0x252   : > { %v2178_v47 = vsub.s32 0, %v4344_v34  ;;  %v2198_v36 = vsub.s32 4, %v2174_v3  ;;  %vm2250_vm4 = vcmp.lt.s32.totalorder %v2229_v1, 3  ;;  %v2257_v19 = vsel %vm2251_vm2, %v2244_v26, 920167782 }
 0x253   : > { %v2252_v52 = vsel %vm2248_vm1, %v2232_v58, %v2235_v5  ;;  %v2258_v61 = vsel %vm2250_vm4, %v2241_v53, %v2257_v19  ;;  %v2260_v63 = vsel %vm2248_vm1, %v2238_v28, %v2241_v53  ;;  %v2261_v49 = vsel %vm2251_vm2, %v2247_v29, 1326507024 }
 0x254   : > { %v3213_v60 = vmin.u32 %v2178_v47, %v4344_v34  ;;  %v2254_v31 = vsel %vm2250_vm4, %v2238_v28, %v2253_v16  ;;  %v2259_v22 = vsel %vm2249_vm3, %v2256_v23, %v2258_v61  ;;  %v2262_v11 = vsel %vm2250_vm4, %v2244_v26, %v2261_v49 }
 0x255   : > { %vm2114_vm5 = vcmp.lt.s32.totalorder %v4074_v25, 0  ;;  %v2263_v10 = vsel %vm2249_vm3, %v2260_v63, %v2262_v11  ;;  %v4352_v30 = vmul.u32.u64.low %v4333_v8, %v2259_v22  ;;  %v4353_v17 = vmul.u32.u64.high %v4333_v8, %v2259_v22, %v4352_v30 }
 0x256   : > { %vm4357_vm6 = vcmp.le.f32.partialorder %v2112_v48, 0.7853982  ;;  %v2180_v9 = vclz %v3213_v60  ;;  %v2199_v37 = vsel %vm2114_vm5, %v2198_v36, %v2174_v3  ;;  %v2255_v7 = vsel %vm2249_vm3, %v2252_v52, %v2254_v31 }
 0x257   : > { %v4365_v54 = vmul.u32.u64.low %v4333_v8, %v2263_v10  ;;  %v4366_v13 = vmul.u32.u64.high %v4333_v8, %v2263_v10, %v4365_v54  ;;  %v1872_v51 = vand.u32 2147483647, %v4342_v59  ;;  %vm1447_vm7 = vcmp.lt.s32.totalorder %v4307_v39, 2 }
 0x258   : > { %v3214_v50 = vadd.s32 4294967294, %v2180_v9  ;;  %v4372_v48 = vadd.f32 %v4335_v35, %v4312_v32  ;;  %v1875_v12 = vand.u32 2139095040, %v4342_v59  ;;  %vm1448_vm8 = vcmp.eq.s32.totalorder %v4307_v39, 0 }
 0x259   : > { %vm1451_vm9 = vcmp.eq.s32.totalorder %v4307_v39, 2  ;;  %v2168_v1 = vadd.s32 %v4289_v57, %v4286_v14  ;;  %v2274_v3 = vadd.s32 1, %v4353_v17  ;;  %v2201_v27 = vsel %vm4357_vm6, 0, %v2199_v37 }
 0x25a   : > { %v3406_v5 = vpop.eup %3405  ;;  %vm3215_vm10 = vcmp.lt.s32.totalorder %v3214_v50, 0  ;;  %v2271_v28 = vmul.u32 %v4333_v8, %v2255_v7  ;;  %v1876_v32 = vshrl.u32 %v1875_v12, 23  ;;  %vm2273_vm11 = vc.u32 %v4366_v13, %v4352_v30 }
 0x25b   : > { %v3408_v53 = vpop.eup %3407  ;;  %v1452_v20 = vxor.u32 2147483648, %v3406_v5  ;;  %v2183_v24 = vsel %vm3215_vm10, 0, %v3214_v50  ;;  %v1879_v33 = vand.u32 8388607, %v1872_v51  ;;  %v1979_v26 = vand.u32 2139095040, %v4372_v48 }
 0x25c   : > { %v1449_v41 = vxor.u32 2147483648, %v3408_v53  ;;  %v2184_v14 = vsub.s32 32, %v2183_v24  ;;  %v2188_v57 = vsub.s32 4294967266, %v2183_v24  ;;  %v2185_v8 = vshll.u32 %v4344_v34, %v2183_v24 }
 0x25d   : > { %v1453_v21 = vsel %vm1451_vm9, %v1452_v20, %v3408_v53  ;;  %v2275_v58 = vsel %vm2273_vm11, %v2274_v3, %v4353_v17  ;;  %v3204_v29 = vadd.s32 4294967169, %v1876_v32  ;;  %vm1444_vm12 = vweird.f32 %v4038_v6 }
 0x25e   : > { %v1450_v16 = vsel %vm1448_vm8, %v3406_v5, %v1449_v41  ;;  %v2186_v23 = vshrl.u32 %v2168_v1, %v2184_v14  ;;  %v2189_v47 = vadd.s32 127, %v2188_v57  ;;  %v2276_v36 = vadd.s32 %v2275_v58, %v2271_v28 }
 0x25f   : > { %v1454_v19 = vsel %vm1447_vm7, %v1450_v16, %v1453_v21  ;;  %v2205_v52 = vadd.s32 3, %v2201_v27  ;;  %v1882_v61 = vadd.s32 1, %v3204_v29  ;;  %v1880_v31 = vor.u32 8388608, %v1879_v33 }
 0x260   : > { %v1455_v63 = vsel %vm1444_vm12, nan, %v1454_v19  ;;  %v2187_v49 = vor.u32 %v2186_v23, %v2185_v8  ;;  %v2190_v60 = vshll.u32 %v2189_v47, 23  ;;  %v2277_v34 = vadd.s32 536870912, %v2276_v36 }
 0x261   : > { %2081 = vst [vmem:[%s4040_s6 + $0x8] sm:$0xff] %v1455_v63  ;;  %vm1883_vm13 = vcmp.gt.s32.totalorder %v1882_v61, 0  ;;  %v1980_v17 = vshrl.u32 %v1979_v26, 23  ;;  %v4399_v6 = vmul.f32 %v3730_v0, %v3724_v56  ;;  %v4401_v7 = vand.u32 3, %v2205_v52 }
 0x262   : > { %v2191_v22 = vor.u32 4788187, %v2190_v60  ;;  %v2278_v11 = vshrl.u32 %v2277_v34, 30  ;;  %v1884_v10 = vsel %vm1883_vm13, %v1882_v61, 0  ;;  %v2194_v37 = vcvt.s32.f32 %v2187_v49 }
 0x263   : > { %v1886_v9 = vand.u32 31, %v1884_v10  ;;  %vm2218_vm14 = vcmp.lt.s32.totalorder %v4191_v18, 0  ;;  %v4405_v50 = vadd.s32 %v4352_v30, %v4366_v13  ;;  %v4407_v1 = vshll.u32 %v1880_v31, 8 }
 0x264   : > { %v2192_v39 = vand.u32 2147483647, %v2191_v22  ;;  %v2279_v54 = vshll.u32 %v2278_v11, 30  ;;  %v1976_v3 = vand.u32 2147483647, %v4372_v48  ;;  %v4412_v28 = vshrl.u32 %v1884_v10, 5 }
 0x265   : > { %v1887_v12 = vsub.s32 32, %v1886_v9  ;;  %v3208_v32 = vadd.s32 4294967169, %v1980_v17  ;;  %v2302_v53 = vsub.s32 4, %v2278_v11  ;;  %v1889_v20 = vshll.u32 %v3549_v38, %v1886_v9 }
 0x266   : > { %v2195_v5 = vmul.f32 %v2194_v37, %v2192_v39  ;;  %v4410_v27 = vsub.s32 %v2276_v36, %v2279_v54  ;;  %v1892_v41 = vshll.u32 %v3550_v40, %v1886_v9  ;;  %v1895_v26 = vshll.u32 %v3551_v42, %v1886_v9 }
 0x267   : > { %v1890_v24 = vshrl.u32 %v3550_v40, %v1887_v12  ;;  %v1893_v33 = vshrl.u32 %v3551_v42, %v1887_v12  ;;  %v1896_v14 = vshrl.u32 %v3552_v43, %v1887_v12  ;;  %v1898_v21 = vshll.u32 %v3552_v43, %v1886_v9 }
 0x268   : > { %v2196_v30 = vxor.u32 2147483648, %v2195_v5  ;;  %v2282_v13 = vsub.s32 0, %v4410_v27  ;;  %v1899_v8 = vshrl.u32 %v3553_v46, %v1887_v12  ;;  %v1901_v23 = vshll.u32 %v3553_v46, %v1886_v9 }
 0x269   : > { %v1891_v57 = vor.u32 %v1890_v24, %v1889_v20  ;;  %v1894_v16 = vor.u32 %v1893_v33, %v1892_v41  ;;  %v1897_v36 = vor.u32 %v1896_v14, %v1895_v26  ;;  %v1902_v52 = vshrl.u32 %v3554_v55, %v1887_v12 }
 0x26a   : > { %v2197_v58 = vsel %vm2114_vm5, %v2196_v30, %v2195_v5  ;;  %v3217_v29 = vmin.u32 %v2282_v13, %v4410_v27  ;;  %v1900_v19 = vor.u32 %v1899_v8, %v1898_v21  ;;  %v4433_v63 = vand.u32 8388607, %v1976_v3 }
 0x26b   : > { %v2200_v47 = vsel %vm4357_vm6, %v4074_v25, %v2197_v58  ;;  %v1986_v49 = vadd.s32 1, %v3208_v32  ;;  %vm4437_vm15 = vcmp.le.f32.partialorder %v2216_v45, 0.7853982  ;;  %v2303_v4 = vsel %vm2218_vm14, %v2302_v53, %v2278_v11 }
 0x26c   : > { %3409 = vcosq.f32 %v2200_v47  ;;  %v2284_v61 = vclz %v3217_v29  ;;  %v1888_v34 = vshrl.u32 %v3549_v38, %v1887_v12  ;;  %v1903_v31 = vor.u32 %v1902_v52, %v1901_v23 }
 0x26d   : > { %3411 = vsinq.f32 %v2200_v47  ;;  %vm1904_vm0 = vcmp.lt.s32.totalorder %v4412_v28, 1  ;;  %vm1906_vm1 = vcmp.lt.s32.totalorder %v4412_v28, 3  ;;  %vm1907_vm2 = vcmp.lt.s32.totalorder %v4412_v28, 4 }
 0x26e   : > { %v3218_v22 = vadd.s32 4294967294, %v2284_v61  ;;  %v1909_v10 = vsel %vm1907_vm2, %v1897_v36, 2102212464  ;;  %v1912_v17 = vsel %vm1904_vm0, %v1891_v57, %v1894_v16  ;;  %v1913_v9 = vsel %vm1907_vm2, %v1900_v19, 920167782 }
 0x26f   : > { %v1916_v45 = vsel %vm1904_vm0, %v1894_v16, %v1897_v36  ;;  %vm1905_vm4 = vcmp.lt.s32.totalorder %v4412_v28, 2  ;;  %v1914_v11 = vsel %vm1906_vm1, %v1897_v36, %v1913_v9  ;;  %v1917_v39 = vsel %vm1907_vm2, %v1903_v31, 1326507024 }
 0x270   : > { %vm3219_vm3 = vcmp.lt.s32.totalorder %v3218_v22, 0  ;;  %vm2208_vm5 = vcmp.eq.s32.totalorder %v4401_v7, 0  ;;  %v1908_v54 = vsel %vm1904_vm0, %v1888_v34, %v1891_v57  ;;  %v1915_v12 = vsel %vm1905_vm4, %v1912_v17, %v1914_v11 }
 0x271   : > { %v2287_v37 = vsel %vm3219_vm3, 0, %v3218_v22  ;;  %v1918_v5 = vsel %vm1906_vm1, %v1900_v19, %v1917_v39  ;;  %vm2207_vm6 = vcmp.lt.s32.totalorder %v4401_v7, 2  ;;  %v1910_v20 = vsel %vm1906_vm1, %v1894_v16, %v1909_v10 }
 0x272   : > { %v2288_v32 = vsub.s32 32, %v2287_v37  ;;  %v2292_v53 = vsub.s32 4294967266, %v2287_v37  ;;  %v1919_v24 = vsel %vm1905_vm4, %v1916_v45, %v1918_v5  ;;  %vm2204_vm7 = vweird.f32 %v4074_v25 }
 0x273   : > { %v4462_v33 = vmul.u32.u64.low %v4407_v1, %v1919_v24  ;;  %v4463_v30 = vmul.u32.u64.high %v4407_v1, %v1919_v24, %v4462_v33  ;;  %v4466_v13 = vmul.u32.u64.low %v4407_v1, %v1915_v12  ;;  %v4467_v41 = vmul.u32.u64.high %v4407_v1, %v1915_v12, %v4466_v13 }
 0x274   : > { %v2289_v14 = vshll.u32 %v4410_v27, %v2287_v37  ;;  %v2290_v57 = vshrl.u32 %v4405_v50, %v2288_v32  ;;  %v2293_v26 = vadd.s32 127, %v2292_v53  ;;  %vm1987_vm8 = vcmp.gt.s32.totalorder %v1986_v49, 0 }
 0x275   : > { %vm2211_vm9 = vcmp.eq.s32.totalorder %v4401_v7, 2  ;;  %v1911_v21 = vsel %vm1905_vm4, %v1908_v54, %v1910_v20  ;;  %v1988_v8 = vsel %vm1987_vm8, %v1986_v49, 0  ;;  %v4477_v58 = vmul.f32 %v3747_v15, %v3724_v56 }
 0x276   : > { %v3410_v29 = vpop.eup %3409  ;;  %v2291_v16 = vor.u32 %v2290_v57, %v2289_v14  ;;  %v2294_v23 = vshll.u32 %v2293_v26, 23  ;;  %v2305_v27 = vsel %vm4437_vm15, 0, %v2303_v4  ;;  %v1990_v47 = vand.u32 31, %v1988_v8 }
 0x277   : > { %v3412_v50 = vpop.eup %3411  ;;  %v2212_v36 = vxor.u32 2147483648, %v3410_v29  ;;  %vm1929_vm10 = vc.u32 %v4463_v30, %v4466_v13  ;;  %v1930_v28 = vadd.s32 1, %v4467_v41  ;;  %v1984_v19 = vor.u32 8388608, %v4433_v63 }
 0x278   : > { %v2209_v52 = vxor.u32 2147483648, %v3412_v50  ;;  %v2295_v61 = vor.u32 4788187, %v2294_v23  ;;  %v1927_v56 = vmul.u32 %v4407_v1, %v1911_v21  ;;  %v1991_v49 = vsub.s32 32, %v1990_v47 }
 0x279   : > { %v2213_v34 = vsel %vm2211_vm9, %v2212_v36, %v3412_v50  ;;  %v2309_v4 = vadd.s32 3, %v2305_v27  ;;  %v1931_v31 = vsel %vm1929_vm10, %v1930_v28, %v4467_v41  ;;  %v4491_v22 = vadd.f32 %v4399_v6, %v4335_v35 }
 0x27a   : > { %v2210_v10 = vsel %vm2208_vm5, %v3410_v29, %v2209_v52  ;;  %v2296_v63 = vand.u32 2147483647, %v2295_v61  ;;  %v2298_v17 = vcvt.s32.f32 %v2291_v16  ;;  %v1932_v9 = vadd.s32 %v1931_v31, %v1927_v56 }
 0x27b   : > { %v2214_v1 = vsel %vm2207_vm6, %v2210_v10, %v2213_v34  ;;  %v1993_v45 = vshll.u32 %v3549_v38, %v1990_v47  ;;  %v1994_v11 = vshrl.u32 %v3550_v40, %v1991_v49  ;;  %v1997_v39 = vshrl.u32 %v3551_v42, %v1991_v49 }
 0x27c   : > { %v2215_v37 = vsel %vm2204_vm7, nan, %v2214_v1  ;;  %v2299_v6 = vmul.f32 %v2298_v17, %v2296_v63  ;;  %v1933_v54 = vadd.s32 536870912, %v1932_v9  ;;  %v2000_v12 = vshrl.u32 %v3552_v43, %v1991_v49 }
 0x27d   : > { %2944 = vst [vmem:[%s4040_s6 + $0x40] sm:$0xff] %v2215_v37  ;;  %v1989_v5 = vshrl.u32 %v1988_v8, 5  ;;  %v1996_v32 = vshll.u32 %v3550_v40, %v1990_v47  ;;  %v1999_v7 = vshll.u32 %v3551_v42, %v1990_v47  ;;  %v2003_v53 = vshrl.u32 %v3553_v46, %v1991_v49 }
 0x27e   : > { %v2300_v20 = vxor.u32 2147483648, %v2299_v6  ;;  %v1934_v24 = vshrl.u32 %v1933_v54, 30  ;;  %v1995_v33 = vor.u32 %v1994_v11, %v1993_v45  ;;  %v2002_v41 = vshll.u32 %v3552_v43, %v1990_v47 }
 0x27f   : > { %v1998_v14 = vor.u32 %v1997_v39, %v1996_v32  ;;  %v2001_v25 = vor.u32 %v2000_v12, %v1999_v7  ;;  %v2005_v57 = vshll.u32 %v3553_v46, %v1990_v47  ;;  %v2006_v26 = vshrl.u32 %v3554_v55, %v1991_v49 }
 0x280   : > { %v2301_v21 = vsel %vm2218_vm14, %v2300_v20, %v2299_v6  ;;  %v4512_v8 = vand.u32 3, %v2309_v4  ;;  %v1935_v29 = vshll.u32 %v1934_v24, 30  ;;  %v2004_v16 = vor.u32 %v2003_v53, %v2002_v41 }
 0x281   : > { %v2304_v23 = vsel %vm4437_vm15, %v4191_v18, %v2301_v21  ;;  %v1992_v27 = vshrl.u32 %v3549_v38, %v1991_v49  ;;  %v2007_v50 = vor.u32 %v2006_v26, %v2005_v57  ;;  %v2024_v36 = vshll.u32 %v1984_v19, 8 }
 0x282   : > { %3413 = vcosq.f32 %v2304_v23  ;;  %v4518_v28 = vsub.s32 %v1932_v9, %v1935_v29  ;;  %vm2008_vm11 = vcmp.lt.s32.totalorder %v1989_v5, 1  ;;  %vm2011_vm12 = vcmp.lt.s32.totalorder %v1989_v5, 4 }
 0x283   : > { %3415 = vsinq.f32 %v2304_v23  ;;  %vm2009_vm13 = vcmp.lt.s32.totalorder %v1989_v5, 2  ;;  %v2013_v47 = vsel %vm2011_vm12, %v2001_v25, 2102212464  ;;  %v2016_v52 = vsel %vm2008_vm11, %v1995_v33, %v1998_v14 }
 0x284   : > { %v1938_v61 = vsub.s32 0, %v4518_v28  ;;  %v1958_v56 = vsub.s32 4, %v1934_v24  ;;  %vm2010_vm14 = vcmp.lt.s32.totalorder %v1989_v5, 3  ;;  %v2017_v34 = vsel %vm2011_vm12, %v2004_v16, 920167782 }
 0x285   : > { %v2012_v60 = vsel %vm2008_vm11, %v1992_v27, %v1995_v33  ;;  %v2018_v4 = vsel %vm2010_vm14, %v2001_v25, %v2017_v34  ;;  %v2020_v31 = vsel %vm2008_vm11, %v1998_v14, %v2001_v25  ;;  %v2021_v49 = vsel %vm2011_vm12, %v2007_v50, 1326507024 }
 0x286   : > { %v3205_v19 = vmin.u32 %v1938_v61, %v4518_v28  ;;  %v2014_v10 = vsel %vm2010_vm14, %v1998_v14, %v2013_v47  ;;  %v2019_v63 = vsel %vm2009_vm13, %v2016_v52, %v2018_v4  ;;  %v2022_v17 = vsel %vm2010_vm14, %v2004_v16, %v2021_v49 }
 0x287   : > { %vm1874_vm15 = vcmp.lt.s32.totalorder %v4342_v59, 0  ;;  %v2023_v9 = vsel %vm2009_vm13, %v2020_v31, %v2022_v17  ;;  %v4525_v1 = vmul.u32.u64.low %v2024_v36, %v2019_v63  ;;  %v4526_v45 = vmul.u32.u64.high %v2024_v36, %v2019_v63, %v4525_v1 }
 0x288   : > { %v1940_v11 = vclz %v3205_v19  ;;  %v1959_v39 = vsel %vm1874_vm15, %v1958_v56, %v1934_v24  ;;  %v2736_v37 = vand.u32 2147483647, %v4491_v22  ;;  %v2015_v6 = vsel %vm2009_vm13, %v2012_v60, %v2014_v10 }
 0x289   : > { %v4532_v54 = vmul.u32.u64.low %v2024_v36, %v2023_v9  ;;  %v4533_v12 = vmul.u32.u64.high %v2024_v36, %v2023_v9, %v4532_v54  ;;  %v2739_v32 = vand.u32 2139095040, %v4491_v22  ;;  %vm2311_vm0 = vcmp.lt.s32.totalorder %v4512_v8, 2 }
 0x28a   : > { %vm4539_vm1 = vcmp.le.f32.partialorder %v1872_v51, 0.7853982  ;;  %v3206_v53 = vadd.s32 4294967294, %v1940_v11  ;;  %v4545_v20 = vadd.f32 %v4477_v58, %v4335_v35  ;;  %vm2312_vm2 = vcmp.eq.s32.totalorder %v4512_v8, 0 }
 0x28b   : > { %vm2315_vm3 = vcmp.eq.s32.totalorder %v4512_v8, 2  ;;  %v2034_v5 = vadd.s32 1, %v4526_v45  ;;  %v2740_v24 = vshrl.u32 %v2739_v32, 23  ;;  %v1928_v41 = vadd.s32 %v4466_v13, %v4463_v30 }
 0x28c   : > { %v3414_v33 = vpop.eup %3413  ;;  %vm3207_vm4 = vcmp.lt.s32.totalorder %v3206_v53, 0  ;;  %v1961_v51 = vsel %vm4539_vm1, 0, %v1959_v39  ;;  %v2031_v14 = vmul.u32 %v2024_v36, %v2015_v6  ;;  %vm2033_vm5 = vc.u32 %v4533_v12, %v4525_v1 }
 0x28d   : > { %v3416_v25 = vpop.eup %3415  ;;  %v2316_v57 = vxor.u32 2147483648, %v3414_v33  ;;  %v1943_v35 = vsel %vm3207_vm4, 0, %v3206_v53  ;;  %v2743_v58 = vand.u32 8388607, %v2736_v37  ;;  %v2843_v16 = vand.u32 2139095040, %v4545_v20 }
 0x28e   : > { %v2313_v26 = vxor.u32 2147483648, %v3416_v25  ;;  %v1944_v21 = vsub.s32 32, %v1943_v35  ;;  %v1948_v29 = vsub.s32 4294967266, %v1943_v35  ;;  %v1945_v13 = vshll.u32 %v4518_v28, %v1943_v35 }
 0x28f   : > { %v2317_v30 = vsel %vm2315_vm3, %v2316_v57, %v3416_v25  ;;  %v2035_v23 = vsel %vm2033_vm5, %v2034_v5, %v4526_v45  ;;  %v3236_v27 = vadd.s32 4294967169, %v2740_v24  ;;  %vm2308_vm6 = vweird.f32 %v4191_v18 }
 0x290   : > { %v2314_v50 = vsel %vm2312_vm2, %v3414_v33, %v2313_v26  ;;  %v1946_v36 = vshrl.u32 %v1928_v41, %v1944_v21  ;;  %v1949_v47 = vadd.s32 127, %v1948_v29  ;;  %v2036_v52 = vadd.s32 %v2035_v23, %v2031_v14 }
 0x291   : > { %v2318_v61 = vsel %vm2311_vm0, %v2314_v50, %v2317_v30  ;;  %v1965_v56 = vadd.s32 3, %v1961_v51  ;;  %v2746_v34 = vadd.s32 1, %v3236_v27  ;;  %v2744_v49 = vor.u32 8388608, %v2743_v58 }
 0x292   : > { %v2319_v60 = vsel %vm2308_vm6, nan, %v2318_v61  ;;  %v1947_v4 = vor.u32 %v1946_v36, %v1945_v13  ;;  %v1950_v31 = vshll.u32 %v1949_v47, 23  ;;  %v2037_v28 = vadd.s32 536870912, %v2036_v52 }
 0x293   : > { %2945 = vst [vmem:[%s4040_s6 + $0x48] sm:$0xff] %v2319_v60  ;;  %vm2747_vm7 = vcmp.gt.s32.totalorder %v2746_v34, 0  ;;  %v2840_v19 = vand.u32 2147483647, %v4545_v20  ;;  %v2844_v9 = vshrl.u32 %v2843_v16, 23  ;;  %v4569_v8 = vand.u32 3, %v1965_v56 }
 0x294   : > { %v1951_v10 = vor.u32 4788187, %v1950_v31  ;;  %v2038_v63 = vshrl.u32 %v2037_v28, 30  ;;  %v2748_v17 = vsel %vm2747_vm7, %v2746_v34, 0  ;;  %v1954_v11 = vcvt.s32.f32 %v1947_v4 }
 0x295   : > { %v2750_v45 = vand.u32 31, %v2748_v17  ;;  %vm1978_vm8 = vcmp.lt.s32.totalorder %v4372_v48, 0  ;;  %v4573_v6 = vadd.s32 %v4525_v1, %v4533_v12  ;;  %v4575_v32 = vshll.u32 %v2744_v49, 8 }
 0x296   : > { %v1952_v18 = vand.u32 2147483647, %v1951_v10  ;;  %v2039_v39 = vshll.u32 %v2038_v63, 30  ;;  %v4579_v53 = vand.u32 8388607, %v2840_v19  ;;  %v4583_v33 = vshrl.u32 %v2748_v17, 5 }
 0x297   : > { %v2751_v54 = vsub.s32 32, %v2750_v45  ;;  %v3240_v41 = vadd.s32 4294967169, %v2844_v9  ;;  %v2062_v51 = vsub.s32 4, %v2038_v63  ;;  %v2753_v14 = vshll.u32 %v3549_v38, %v2750_v45 }
 0x298   : > { %v1955_v5 = vmul.f32 %v1954_v11, %v1952_v18  ;;  %v4581_v24 = vsub.s32 %v2036_v52, %v2039_v39  ;;  %v2756_v35 = vshll.u32 %v3550_v40, %v2750_v45  ;;  %v2759_v21 = vshll.u32 %v3551_v42, %v2750_v45 }
 0x299   : > { %v2754_v25 = vshrl.u32 %v3550_v40, %v2751_v54  ;;  %v2757_v1 = vshrl.u32 %v3551_v42, %v2751_v54  ;;  %v2760_v58 = vshrl.u32 %v3552_v43, %v2751_v54  ;;  %v2762_v29 = vshll.u32 %v3552_v43, %v2750_v45 }
 0x29a   : > { %v1956_v12 = vxor.u32 2147483648, %v1955_v5  ;;  %v2042_v57 = vsub.s32 0, %v4581_v24  ;;  %v2763_v16 = vshrl.u32 %v3553_v46, %v2751_v54  ;;  %v2765_v27 = vshll.u32 %v3553_v46, %v2750_v45 }
 0x29b   : > { %v2755_v26 = vor.u32 %v2754_v25, %v2753_v14  ;;  %v2758_v23 = vor.u32 %v2757_v1, %v2756_v35  ;;  %v2761_v36 = vor.u32 %v2760_v58, %v2759_v21  ;;  %v2766_v52 = vshrl.u32 %v3554_v55, %v2751_v54 }
 0x29c   : > { %v1957_v30 = vsel %vm1874_vm15, %v1956_v12, %v1955_v5  ;;  %v3209_v13 = vmin.u32 %v2042_v57, %v4581_v24  ;;  %v2764_v47 = vor.u32 %v2763_v16, %v2762_v29  ;;  %v2848_v56 = vor.u32 8388608, %v4579_v53 }
 0x29d   : > { %v1960_v50 = vsel %vm4539_vm1, %v4342_v59, %v1957_v30  ;;  %v2850_v34 = vadd.s32 1, %v3240_v41  ;;  %vm4605_vm9 = vcmp.le.f32.partialorder %v1976_v3, 0.7853982  ;;  %v2063_v7 = vsel %vm1978_vm8, %v2062_v51, %v2038_v63 }
 0x29e   : > { %3417 = vcosq.f32 %v1960_v50  ;;  %v2044_v61 = vclz %v3209_v13  ;;  %v2752_v4 = vshrl.u32 %v3549_v38, %v2751_v54  ;;  %v2767_v31 = vor.u32 %v2766_v52, %v2765_v27 }
 0x29f   : > { %3419 = vsinq.f32 %v1960_v50  ;;  %vm2768_vm10 = vcmp.lt.s32.totalorder %v4583_v33, 1  ;;  %vm2770_vm11 = vcmp.lt.s32.totalorder %v4583_v33, 3  ;;  %vm2771_vm12 = vcmp.lt.s32.totalorder %v4583_v33, 4 }
 0x2a0   : > { %v3210_v28 = vadd.s32 4294967294, %v2044_v61  ;;  %v2773_v49 = vsel %vm2771_vm12, %v2761_v36, 2102212464  ;;  %v2776_v10 = vsel %vm2768_vm10, %v2755_v26, %v2758_v23  ;;  %v2777_v17 = vsel %vm2771_vm12, %v2764_v47, 920167782 }
 0x2a1   : > { %v2780_v3 = vsel %vm2768_vm10, %v2758_v23, %v2761_v36  ;;  %vm2769_vm14 = vcmp.lt.s32.totalorder %v4583_v33, 2  ;;  %v2778_v63 = vsel %vm2770_vm11, %v2761_v36, %v2777_v17  ;;  %v2781_v9 = vsel %vm2771_vm12, %v2767_v31, 1326507024 }
 0x2a2   : > { %vm3211_vm13 = vcmp.lt.s32.totalorder %v3210_v28, 0  ;;  %vm1968_vm15 = vcmp.eq.s32.totalorder %v4569_v8, 0  ;;  %v2772_v18 = vsel %vm2768_vm10, %v2752_v4, %v2755_v26  ;;  %v2779_v11 = vsel %vm2769_vm14, %v2776_v10, %v2778_v63 }
 0x2a3   : > { %v2047_v45 = vsel %vm3211_vm13, 0, %v3210_v28  ;;  %v2782_v39 = vsel %vm2770_vm11, %v2764_v47, %v2781_v9  ;;  %vm1967_vm0 = vcmp.lt.s32.totalorder %v4569_v8, 2  ;;  %v2774_v5 = vsel %vm2770_vm11, %v2758_v23, %v2773_v49 }
 0x2a4   : > { %v2048_v54 = vsub.s32 32, %v2047_v45  ;;  %v2052_v53 = vsub.s32 4294967266, %v2047_v45  ;;  %v2783_v41 = vsel %vm2769_vm14, %v2780_v3, %v2782_v39  ;;  %vm1964_vm1 = vweird.f32 %v4342_v59 }
 0x2a5   : > { %v4630_v51 = vmul.u32.u64.low %v4575_v32, %v2783_v41  ;;  %v4631_v14 = vmul.u32.u64.high %v4575_v32, %v2783_v41, %v4630_v51  ;;  %v4634_v25 = vmul.u32.u64.low %v4575_v32, %v2779_v11  ;;  %v4635_v1 = vmul.u32.u64.high %v4575_v32, %v2779_v11, %v4634_v25 }
 0x2a6   : > { %v2049_v12 = vshll.u32 %v4581_v24, %v2047_v45  ;;  %v2050_v57 = vshrl.u32 %v4573_v6, %v2048_v54  ;;  %v2053_v35 = vadd.s32 127, %v2052_v53  ;;  %vm2851_vm2 = vcmp.gt.s32.totalorder %v2850_v34, 0 }
 0x2a7   : > { %vm1971_vm3 = vcmp.eq.s32.totalorder %v4569_v8, 2  ;;  %v2775_v58 = vsel %vm2769_vm14, %v2772_v18, %v2774_v5  ;;  %v2852_v26 = vsel %vm2851_vm2, %v2850_v34, 0  ;;  %v4643_v21 = vshll.u32 %v2848_v56, 8 }
 0x2a8   : > { %v3418_v29 = vpop.eup %3417  ;;  %v2051_v16 = vor.u32 %v2050_v57, %v2049_v12  ;;  %v2054_v30 = vshll.u32 %v2053_v35, 23  ;;  %v2065_v13 = vsel %vm4605_vm9, 0, %v2063_v7  ;;  %v2854_v23 = vand.u32 31, %v2852_v26 }
 0x2a9   : > { %v3420_v24 = vpop.eup %3419  ;;  %v1972_v27 = vxor.u32 2147483648, %v3418_v29  ;;  %vm2793_vm4 = vc.u32 %v4631_v14, %v4634_v25  ;;  %v2794_v6 = vadd.s32 1, %v4635_v1  ;;  %v1216_v33 = vmul.f32 %v3720_v44, %v3727_v62 }
 0x2aa   : > { %v1969_v50 = vxor.u32 2147483648, %v3420_v24  ;;  %v2055_v36 = vor.u32 4788187, %v2054_v30  ;;  %v2791_v47 = vmul.u32 %v4575_v32, %v2775_v58  ;;  %v2855_v52 = vsub.s32 32, %v2854_v23 }
 0x2ab   : > { %v1973_v61 = vsel %vm1971_vm3, %v1972_v27, %v3420_v24  ;;  %v2069_v56 = vadd.s32 3, %v2065_v13  ;;  %v2795_v34 = vsel %vm2793_vm4, %v2794_v6, %v4635_v1  ;;  %v4658_v7 = vmul.f32 %v3720_v44, %v3733_v2 }
 0x2ac   : > { %v1970_v4 = vsel %vm1968_vm15, %v3418_v29, %v1969_v50  ;;  %v2056_v62 = vand.u32 2147483647, %v2055_v36  ;;  %v2058_v31 = vcvt.s32.f32 %v2051_v16  ;;  %v2796_v28 = vadd.s32 %v2795_v34, %v2791_v47 }
 0x2ad   : > { %v1974_v32 = vsel %vm1967_vm0, %v1970_v4, %v1973_v61  ;;  %v2857_v49 = vshll.u32 %v3549_v38, %v2854_v23  ;;  %v2858_v10 = vshrl.u32 %v3550_v40, %v2855_v52  ;;  %v2861_v17 = vshrl.u32 %v3551_v42, %v2855_v52 }
 0x2ae   : > { %v1975_v3 = vsel %vm1964_vm1, nan, %v1974_v32  ;;  %v2059_v2 = vmul.f32 %v2058_v31, %v2056_v62  ;;  %v2797_v63 = vadd.s32 536870912, %v2796_v28  ;;  %v2864_v9 = vshrl.u32 %v3552_v43, %v2855_v52 }
 0x2af   : > { %2086 = vst [vmem:[%s4040_s6 + $0x30] sm:$0xff] %v1975_v3  ;;  %v2853_v45 = vshrl.u32 %v2852_v26, 5  ;;  %v2860_v18 = vshll.u32 %v3550_v40, %v2854_v23  ;;  %v2863_v8 = vshll.u32 %v3551_v42, %v2854_v23  ;;  %v2867_v11 = vshrl.u32 %v3553_v46, %v2855_v52  ;;  %v4681_v26 = vpop.permute.xlu0 %1232 }
 0x2b0   : > { %v2060_v39 = vxor.u32 2147483648, %v2059_v2  ;;  %v2798_v54 = vshrl.u32 %v2797_v63, 30  ;;  %v2859_v53 = vor.u32 %v2858_v10, %v2857_v49  ;;  %v2866_v5 = vshll.u32 %v3552_v43, %v2854_v23 }
 0x2b1   : > { %v2862_v41 = vor.u32 %v2861_v17, %v2860_v18  ;;  %v2865_v59 = vor.u32 %v2864_v9, %v2863_v8  ;;  %v2869_v51 = vshll.u32 %v3553_v46, %v2854_v23  ;;  %v2870_v1 = vshrl.u32 %v3554_v55, %v2855_v52 }
 0x2b2   : > { %v2061_v12 = vsel %vm1978_vm8, %v2060_v39, %v2059_v2  ;;  %v4679_v57 = vand.u32 3, %v2069_v56  ;;  %v2799_v35 = vshll.u32 %v2798_v54, 30  ;;  %v2868_v58 = vor.u32 %v2867_v11, %v2866_v5 }
 0x2b3   : > { %v2064_v29 = vsel %vm4605_vm9, %v4372_v48, %v2061_v12  ;;  %v2856_v16 = vshrl.u32 %v3549_v38, %v2855_v52  ;;  %v2871_v30 = vor.u32 %v2870_v1, %v2869_v51  ;;  %v4688_v13 = vadd.f32 %v4681_v26, %v1216_v33 }
 0x2b4   : > { %3421 = vcosq.f32 %v2064_v29  ;;  %v4690_v23 = vsub.s32 %v2796_v28, %v2799_v35  ;;  %vm2872_vm5 = vcmp.lt.s32.totalorder %v2853_v45, 1  ;;  %vm2875_vm6 = vcmp.lt.s32.totalorder %v2853_v45, 4 }
 0x2b5   : > { %3423 = vsinq.f32 %v2064_v29  ;;  %vm2873_vm7 = vcmp.lt.s32.totalorder %v2853_v45, 2  ;;  %v2877_v24 = vsel %vm2875_vm6, %v2865_v59, 2102212464  ;;  %v2880_v27 = vsel %vm2872_vm5, %v2859_v53, %v2862_v41 }
 0x2b6   : > { %v2802_v6 = vsub.s32 0, %v4690_v23  ;;  %v2822_v50 = vsub.s32 4, %v2798_v54  ;;  %vm2874_vm8 = vcmp.lt.s32.totalorder %v2853_v45, 3  ;;  %v2881_v60 = vsel %vm2875_vm6, %v2868_v58, 920167782 }
 0x2b7   : > { %v2876_v36 = vsel %vm2872_vm5, %v2856_v16, %v2859_v53  ;;  %v2882_v47 = vsel %vm2874_vm8, %v2865_v59, %v2881_v60  ;;  %v2884_v52 = vsel %vm2872_vm5, %v2862_v41, %v2865_v59  ;;  %v2885_v61 = vsel %vm2875_vm6, %v2871_v30, 1326507024 }
 0x2b8   : > { %v3237_v33 = vmin.u32 %v2802_v6, %v4690_v23  ;;  %v2878_v56 = vsel %vm2874_vm8, %v2862_v41, %v2877_v24  ;;  %v2883_v34 = vsel %vm2873_vm7, %v2880_v27, %v2882_v47  ;;  %v2886_v4 = vsel %vm2874_vm8, %v2868_v58, %v2885_v61 }
 0x2b9   : > { %v2887_v62 = vsel %vm2873_vm7, %v2884_v52, %v2886_v4  ;;  %v4697_v31 = vmul.u32.u64.low %v4643_v21, %v2883_v34  ;;  %v4698_v28 = vmul.u32.u64.high %v4643_v21, %v2883_v34, %v4697_v31  ;;  %vm4702_vm9 = vcmp.le.f32.partialorder %v2736_v37, 0.7853982 }
 0x2ba   : > { %vm2738_vm10 = vcmp.lt.s32.totalorder %v4491_v22, 0  ;;  %v2804_v49 = vclz %v3237_v33  ;;  %v2879_v17 = vsel %vm2873_vm7, %v2876_v36, %v2878_v56  ;;  %vm2071_vm11 = vcmp.lt.s32.totalorder %v4679_v57, 2 }
 0x2bb   : > { %v2823_v10 = vsel %vm2738_vm10, %v2822_v50, %v2798_v54  ;;  %v4711_v3 = vmul.u32.u64.low %v4643_v21, %v2887_v62  ;;  %v4712_v2 = vmul.u32.u64.high %v4643_v21, %v2887_v62, %v4711_v3  ;;  %v4717_v37 = vadd.f32 %v4681_v26, %v4658_v7 }
 0x2bc   : > { %v3238_v63 = vadd.s32 4294967294, %v2804_v49  ;;  %v1667_v9 = vand.u32 2139095040, %v4688_v13  ;;  %vm2072_vm12 = vcmp.eq.s32.totalorder %v4679_v57, 0  ;;  %vm2075_vm13 = vcmp.eq.s32.totalorder %v4679_v57, 2 }
 0x2bd   : > { %v2792_v45 = vadd.s32 %v4634_v25, %v4631_v14  ;;  %v2898_v18 = vadd.s32 1, %v4698_v28  ;;  %v2825_v11 = vsel %vm4702_vm9, 0, %v2823_v10  ;;  %v2895_v39 = vmul.u32 %v4643_v21, %v2879_v17 }
 0x2be   : > { %v3422_v8 = vpop.eup %3421  ;;  %vm3239_vm14 = vcmp.lt.s32.totalorder %v3238_v63, 0  ;;  %v1668_v7 = vshrl.u32 %v1667_v9, 23  ;;  %vm2897_vm15 = vc.u32 %v4712_v2, %v4697_v31  ;;  %v1664_v41 = vand.u32 2147483647, %v4688_v13 }
 0x2bf   : > { %v3424_v54 = vpop.eup %3423  ;;  %v2076_v53 = vxor.u32 2147483648, %v3422_v8  ;;  %v2807_v5 = vsel %vm3239_vm14, 0, %v3238_v63  ;;  %v1771_v25 = vand.u32 2139095040, %v4717_v37  ;;  %v2899_v21 = vsel %vm2897_vm15, %v2898_v18, %v4698_v28 }
 0x2c0   : > { %v2073_v59 = vxor.u32 2147483648, %v3424_v54  ;;  %v2808_v51 = vsub.s32 32, %v2807_v5  ;;  %v2812_v14 = vsub.s32 4294967266, %v2807_v5  ;;  %v2809_v12 = vshll.u32 %v4690_v23, %v2807_v5 }
 0x2c1   : > { %v2077_v1 = vsel %vm2075_vm13, %v2076_v53, %v3424_v54  ;;  %v3196_v35 = vadd.s32 4294967169, %v1668_v7  ;;  %v2900_v30 = vadd.s32 %v2899_v21, %v2895_v39  ;;  %vm2068_vm0 = vweird.f32 %v4372_v48 }
 0x2c2   : > { %v2074_v58 = vsel %vm2072_vm12, %v3422_v8, %v2073_v59  ;;  %v2810_v29 = vshrl.u32 %v2792_v45, %v2808_v51  ;;  %v2813_v16 = vadd.s32 127, %v2812_v14  ;;  %v2829_v27 = vadd.s32 3, %v2825_v11 }
 0x2c3   : > { %v2078_v24 = vsel %vm2071_vm11, %v2074_v58, %v2077_v1  ;;  %v1674_v6 = vadd.s32 1, %v3196_v35  ;;  %v2901_v23 = vadd.s32 536870912, %v2900_v30  ;;  %v1671_v47 = vand.u32 8388607, %v1664_v41 }
 0x2c4   : > { %v2079_v50 = vsel %vm2068_vm0, nan, %v2078_v24  ;;  %v2811_v60 = vor.u32 %v2810_v29, %v2809_v12  ;;  %v2814_v36 = vshll.u32 %v2813_v16, 23  ;;  %v1772_v56 = vshrl.u32 %v1771_v25, 23 }
 0x2c5   : > { %2087 = vst [vmem:[%s4040_s6 + $0x38] sm:$0xff] %v2079_v50  ;;  %vm1675_vm1 = vcmp.gt.s32.totalorder %v1674_v6, 0  ;;  %v2902_v61 = vshrl.u32 %v2901_v23, 30  ;;  %v4745_v48 = vmul.f32 %v3730_v0, %v3720_v44  ;;  %v4747_v62 = vand.u32 3, %v2829_v27 }
 0x2c6   : > { %v2815_v52 = vor.u32 4788187, %v2814_v36  ;;  %v1676_v33 = vsel %vm1675_vm1, %v1674_v6, 0  ;;  %v2818_v4 = vcvt.s32.f32 %v2811_v60  ;;  %vm2842_vm2 = vcmp.lt.s32.totalorder %v4545_v20, 0 }
 0x2c7   : > { %v1678_v34 = vand.u32 31, %v1676_v33  ;;  %v2903_v28 = vshll.u32 %v2902_v61, 30  ;;  %v4751_v49 = vadd.s32 %v4697_v31, %v4712_v2  ;;  %v1672_v10 = vor.u32 8388608, %v1671_v47 }
 0x2c8   : > { %v2816_v57 = vand.u32 2147483647, %v2815_v52  ;;  %v1768_v3 = vand.u32 2147483647, %v4717_v37  ;;  %v4756_v45 = vshrl.u32 %v1676_v33, 5  ;;  %v3200_v0 = vadd.s32 4294967169, %v1772_v56 }
 0x2c9   : > { %v1679_v17 = vsub.s32 32, %v1678_v34  ;;  %v4754_v9 = vsub.s32 %v2900_v30, %v2903_v28  ;;  %v2926_v18 = vsub.s32 4, %v2902_v61  ;;  %v1681_v8 = vshll.u32 %v3549_v38, %v1678_v34 }
 0x2ca   : > { %v2819_v63 = vmul.f32 %v2818_v4, %v2816_v57  ;;  %v1684_v2 = vshll.u32 %v3550_v40, %v1678_v34  ;;  %v1687_v5 = vshll.u32 %v3551_v42, %v1678_v34  ;;  %v1690_v59 = vshll.u32 %v3552_v43, %v1678_v34 }
 0x2cb   : > { %v1682_v11 = vshrl.u32 %v3550_v40, %v1679_v17  ;;  %v1685_v39 = vshrl.u32 %v3551_v42, %v1679_v17  ;;  %v2906_v31 = vsub.s32 0, %v4754_v9  ;;  %v1688_v54 = vshrl.u32 %v3552_v43, %v1679_v17 }
 0x2cc   : > { %v2820_v7 = vxor.u32 2147483648, %v2819_v63  ;;  %v1691_v51 = vshrl.u32 %v3553_v46, %v1679_v17  ;;  %v1693_v12 = vshll.u32 %v3553_v46, %v1678_v34  ;;  %v1694_v29 = vshrl.u32 %v3554_v55, %v1679_v17 }
 0x2cd   : > { %v1683_v53 = vor.u32 %v1682_v11, %v1681_v8  ;;  %v3241_v25 = vmin.u32 %v2906_v31, %v4754_v9  ;;  %v1686_v1 = vor.u32 %v1685_v39, %v1684_v2  ;;  %v1689_v35 = vor.u32 %v1688_v54, %v1687_v5 }
 0x2ce   : > { %v2821_v14 = vsel %vm2738_vm10, %v2820_v7, %v2819_v63  ;;  %v1692_v58 = vor.u32 %v1691_v51, %v1690_v59  ;;  %v4775_v30 = vshll.u32 %v1672_v10, 8  ;;  %v1778_v24 = vadd.s32 1, %v3200_v0 }
 0x2cf   : > { %v2824_v21 = vsel %vm4702_vm9, %v4491_v22, %v2821_v14  ;;  %v2908_v16 = vclz %v3241_v25  ;;  %v4779_v27 = vsel %vm2842_vm2, %v2926_v18, %v2902_v61  ;;  %v1680_v6 = vshrl.u32 %v3549_v38, %v1679_v17 }
 0x2d0   : > { %3425 = vcosq.f32 %v2824_v21  ;;  %v1695_v50 = vor.u32 %v1694_v29, %v1693_v12  ;;  %vm4784_vm3 = vcmp.le.f32.partialorder %v2840_v19, 0.7853982  ;;  %vm1696_vm4 = vcmp.lt.s32.totalorder %v4756_v45, 1 }
 0x2d1   : > { %3427 = vsinq.f32 %v2824_v21  ;;  %v3242_v60 = vadd.s32 4294967294, %v2908_v16  ;;  %vm1698_vm5 = vcmp.lt.s32.totalorder %v4756_v45, 3  ;;  %vm1699_vm6 = vcmp.lt.s32.totalorder %v4756_v45, 4 }
 0x2d2   : > { %v1701_v36 = vsel %vm1699_vm6, %v1689_v35, 2102212464  ;;  %v1704_v23 = vsel %vm1696_vm4, %v1683_v53, %v1686_v1  ;;  %v1705_v47 = vsel %vm1699_vm6, %v1692_v58, 920167782  ;;  %v1708_v52 = vsel %vm1696_vm4, %v1686_v1, %v1689_v35 }
 0x2d3   : > { %vm3243_vm7 = vcmp.lt.s32.totalorder %v3242_v60, 0  ;;  %vm1697_vm8 = vcmp.lt.s32.totalorder %v4756_v45, 2  ;;  %v1706_v19 = vsel %vm1698_vm5, %v1689_v35, %v1705_v47  ;;  %v1709_v61 = vsel %vm1699_vm6, %v1695_v50, 1326507024 }
 0x2d4   : > { %vm2832_vm9 = vcmp.eq.s32.totalorder %v4747_v62, 0  ;;  %v2911_v33 = vsel %vm3243_vm7, 0, %v3242_v60  ;;  %v1700_v56 = vsel %vm1696_vm4, %v1680_v6, %v1683_v53  ;;  %v1707_v34 = vsel %vm1697_vm8, %v1704_v23, %v1706_v19 }
 0x2d5   : > { %v1710_v57 = vsel %vm1698_vm5, %v1692_v58, %v1709_v61  ;;  %vm2831_vm10 = vcmp.lt.s32.totalorder %v4747_v62, 2  ;;  %v2912_v4 = vsub.s32 32, %v2911_v33  ;;  %v2916_v28 = vsub.s32 4294967266, %v2911_v33 }
 0x2d6   : > { %v1702_v10 = vsel %vm1698_vm5, %v1686_v1, %v1701_v36  ;;  %v1711_v17 = vsel %vm1697_vm8, %v1708_v52, %v1710_v57  ;;  %vm2828_vm11 = vweird.f32 %v4491_v22  ;;  %v2913_v11 = vshll.u32 %v4754_v9, %v2911_v33 }
 0x2d7   : > { %v4806_v63 = vmul.u32.u64.low %v4775_v30, %v1711_v17  ;;  %v4807_v0 = vmul.u32.u64.high %v4775_v30, %v1711_v17, %v4806_v63  ;;  %v4810_v18 = vmul.u32.u64.low %v4775_v30, %v1707_v34  ;;  %v4811_v8 = vmul.u32.u64.high %v4775_v30, %v1707_v34, %v4810_v18 }
 0x2d8   : > { %v2914_v39 = vshrl.u32 %v4751_v49, %v2912_v4  ;;  %v2917_v7 = vadd.s32 127, %v2916_v28  ;;  %vm1779_vm12 = vcmp.gt.s32.totalorder %v1778_v24, 0  ;;  %vm2835_vm13 = vcmp.eq.s32.totalorder %v4747_v62, 2 }
 0x2d9   : > { %v1703_v31 = vsel %vm1697_vm8, %v1700_v56, %v1702_v10  ;;  %v1775_v2 = vand.u32 8388607, %v1768_v3  ;;  %v1780_v54 = vsel %vm1779_vm12, %v1778_v24, 0  ;;  %v4823_v9 = vmul.f32 %v3747_v15, %v3720_v44 }
 0x2da   : > { %v3426_v53 = vpop.eup %3425  ;;  %v2915_v5 = vor.u32 %v2914_v39, %v2913_v11  ;;  %v2918_v59 = vshll.u32 %v2917_v7, 23  ;;  %v1782_v51 = vand.u32 31, %v1780_v54  ;;  %v2929_v25 = vsel %vm4784_vm3, 0, %v4779_v27 }
 0x2db   : > { %v3428_v49 = vpop.eup %3427  ;;  %v2836_v14 = vxor.u32 2147483648, %v3426_v53  ;;  %vm1721_vm14 = vc.u32 %v4807_v0, %v4810_v18  ;;  %v1722_v45 = vadd.s32 1, %v4811_v8  ;;  %v1719_v21 = vmul.u32 %v4775_v30, %v1703_v31 }
 0x2dc   : > { %v2833_v1 = vxor.u32 2147483648, %v3428_v49  ;;  %v2919_v12 = vor.u32 4788187, %v2918_v59  ;;  %v1783_v35 = vsub.s32 32, %v1782_v51  ;;  %v1776_v58 = vor.u32 8388608, %v1775_v2 }
 0x2dd   : > { %v2837_v44 = vsel %vm2835_vm13, %v2836_v14, %v3428_v49  ;;  %v1723_v15 = vsel %vm1721_vm14, %v1722_v45, %v4811_v8  ;;  %v4837_v29 = vadd.f32 %v4745_v48, %v4681_v26  ;;  %v2922_v27 = vcvt.s32.f32 %v2915_v5 }
 0x2de   : > { %v2834_v16 = vsel %vm2832_vm9, %v3426_v53, %v2833_v1  ;;  %v2920_v24 = vand.u32 2147483647, %v2919_v12  ;;  %v1724_v6 = vadd.s32 %v1723_v15, %v1719_v21  ;;  %v2933_v50 = vadd.s32 3, %v2929_v25 }
 0x2df   : > { %v2838_v30 = vsel %vm2831_vm10, %v2834_v16, %v2837_v44  ;;  %v1786_v60 = vshrl.u32 %v3550_v40, %v1783_v35  ;;  %v1789_v36 = vshrl.u32 %v3551_v42, %v1783_v35  ;;  %v1792_v52 = vshrl.u32 %v3552_v43, %v1783_v35 }
 0x2e0   : > { %v2839_v23 = vsel %vm2828_vm11, nan, %v2838_v30  ;;  %v2923_v47 = vmul.f32 %v2922_v27, %v2920_v24  ;;  %v1725_v48 = vadd.s32 536870912, %v1724_v6  ;;  %v1781_v19 = vshrl.u32 %v1780_v54, 5 }
 0x2e1   : > { %2950 = vst [vmem:[%s4040_s6 + $0x70] sm:$0xff] %v2839_v23  ;;  %v1785_v61 = vshll.u32 %v3549_v38, %v1782_v51  ;;  %v1788_v33 = vshll.u32 %v3550_v40, %v1782_v51  ;;  %v1795_v62 = vshrl.u32 %v3553_v46, %v1783_v35  ;;  %v1791_v57 = vshll.u32 %v3551_v42, %v1782_v51 }
 0x2e2   : > { %v2924_v56 = vxor.u32 2147483648, %v2923_v47  ;;  %v1726_v34 = vshrl.u32 %v1725_v48, 30  ;;  %v1794_v4 = vshll.u32 %v3552_v43, %v1782_v51  ;;  %v1797_v10 = vshll.u32 %v3553_v46, %v1782_v51 }
 0x2e3   : > { %v1787_v22 = vor.u32 %v1786_v60, %v1785_v61  ;;  %v1790_v28 = vor.u32 %v1789_v36, %v1788_v33  ;;  %v1798_v17 = vshrl.u32 %v3554_v55, %v1783_v35  ;;  %v1793_v11 = vor.u32 %v1792_v52, %v1791_v57 }
 0x2e4   : > { %v2925_v63 = vsel %vm2842_vm2, %v2924_v56, %v2923_v47  ;;  %v1727_v8 = vshll.u32 %v1726_v34, 30  ;;  %v1796_v39 = vor.u32 %v1795_v62, %v1794_v4  ;;  %v4861_v31 = vand.u32 3, %v2933_v50 }
 0x2e5   : > { %v2928_v7 = vsel %vm4784_vm3, %v4545_v20, %v2925_v63  ;;  %v1799_v2 = vor.u32 %v1798_v17, %v1797_v10  ;;  %v1816_v54 = vshll.u32 %v1776_v58, 8  ;;  %v1784_v5 = vshrl.u32 %v3549_v38, %v1783_v35 }
 0x2e6   : > { %3429 = vcosq.f32 %v2928_v7  ;;  %v4863_v53 = vsub.s32 %v1724_v6, %v1727_v8  ;;  %vm1800_vm15 = vcmp.lt.s32.totalorder %v1781_v19, 1  ;;  %vm1801_vm0 = vcmp.lt.s32.totalorder %v1781_v19, 2 }
 0x2e7   : > { %3431 = vsinq.f32 %v2928_v7  ;;  %vm1803_vm1 = vcmp.lt.s32.totalorder %v1781_v19, 4  ;;  %v1808_v59 = vsel %vm1800_vm15, %v1787_v22, %v1790_v28  ;;  %vm1802_vm2 = vcmp.lt.s32.totalorder %v1781_v19, 3 }
 0x2e8   : > { %v1730_v51 = vsub.s32 0, %v4863_v53  ;;  %v1805_v49 = vsel %vm1803_vm1, %v1793_v11, 2102212464  ;;  %v1809_v32 = vsel %vm1803_vm1, %v1796_v39, 920167782  ;;  %v1750_v14 = vsub.s32 4, %v1726_v34 }
 0x2e9   : > { %v1810_v25 = vsel %vm1802_vm2, %v1793_v11, %v1809_v32  ;;  %v1812_v45 = vsel %vm1800_vm15, %v1790_v28, %v1793_v11  ;;  %v1813_v1 = vsel %vm1803_vm1, %v1799_v2, 1326507024  ;;  %v1804_v21 = vsel %vm1800_vm15, %v1784_v5, %v1787_v22 }
 0x2ea   : > { %v3197_v12 = vmin.u32 %v1730_v51, %v4863_v53  ;;  %v1811_v44 = vsel %vm1801_vm0, %v1808_v59, %v1810_v25  ;;  %v1814_v35 = vsel %vm1802_vm2, %v1796_v39, %v1813_v1  ;;  %v1806_v15 = vsel %vm1802_vm2, %v1790_v28, %v1805_v49 }
 0x2eb   : > { %v1815_v58 = vsel %vm1801_vm0, %v1812_v45, %v1814_v35  ;;  %v4870_v16 = vmul.u32.u64.low %v1816_v54, %v1811_v44  ;;  %v4871_v24 = vmul.u32.u64.high %v1816_v54, %v1811_v44, %v4870_v16  ;;  %vm4876_vm3 = vcmp.le.f32.partialorder %v1664_v41, 0.7853982 }
 0x2ec   : > { %vm1666_vm4 = vcmp.lt.s32.totalorder %v4688_v13, 0  ;;  %v1732_v6 = vclz %v3197_v12  ;;  %v4883_v50 = vmul.u32.u64.low %v1816_v54, %v1815_v58  ;;  %v4884_v60 = vmul.u32.u64.high %v1816_v54, %v1815_v58, %v4883_v50 }
 0x2ed   : > { %v1751_v30 = vsel %vm1666_vm4, %v1750_v14, %v1726_v34  ;;  %v2531_v36 = vand.u32 2139095040, %v4837_v29  ;;  %vm2935_vm5 = vcmp.lt.s32.totalorder %v4861_v31, 2  ;;  %v1807_v47 = vsel %vm1801_vm0, %v1804_v21, %v1806_v15 }
 0x2ee   : > { %v3198_v23 = vadd.s32 4294967294, %v1732_v6  ;;  %v4891_v41 = vadd.f32 %v4823_v9, %v4681_v26  ;;  %vm2936_vm6 = vcmp.eq.s32.totalorder %v4861_v31, 0  ;;  %vm2939_vm7 = vcmp.eq.s32.totalorder %v4861_v31, 2 }
 0x2ef   : > { %v1826_v48 = vadd.s32 1, %v4871_v24  ;;  %v2532_v52 = vshrl.u32 %v2531_v36, 23  ;;  %v1720_v33 = vadd.s32 %v4810_v18, %v4807_v0  ;;  %v1753_v19 = vsel %vm4876_vm3, 0, %v1751_v30 }
 0x2f0   : > { %v3430_v61 = vpop.eup %3429  ;;  %vm3199_vm8 = vcmp.lt.s32.totalorder %v3198_v23, 0  ;;  %v2528_v62 = vand.u32 2147483647, %v4837_v29  ;;  %v1823_v34 = vmul.u32 %v1816_v54, %v1807_v47  ;;  %vm1825_vm9 = vc.u32 %v4884_v60, %v4870_v16 }
 0x2f1   : > { %v3432_v56 = vpop.eup %3431  ;;  %v2940_v26 = vxor.u32 2147483648, %v3430_v61  ;;  %v1735_v9 = vsel %vm3199_vm8, 0, %v3198_v23  ;;  %v2635_v28 = vand.u32 2139095040, %v4891_v41  ;;  %v1827_v10 = vsel %vm1825_vm9, %v1826_v48, %v4871_v24 }
 0x2f2   : > { %v2937_v57 = vxor.u32 2147483648, %v3432_v56  ;;  %v1736_v4 = vsub.s32 32, %v1735_v9  ;;  %v1740_v22 = vsub.s32 4294967266, %v1735_v9  ;;  %v1737_v18 = vshll.u32 %v4863_v53, %v1735_v9 }
 0x2f3   : > { %v2941_v0 = vsel %vm2939_vm7, %v2940_v26, %v3432_v56  ;;  %v3228_v17 = vadd.s32 4294967169, %v2532_v52  ;;  %v1828_v39 = vadd.s32 %v1827_v10, %v1823_v34  ;;  %vm2932_vm10 = vweird.f32 %v4545_v20 }
 0x2f4   : > { %v2938_v63 = vsel %vm2936_vm6, %v3430_v61, %v2937_v57  ;;  %v1738_v8 = vshrl.u32 %v1720_v33, %v1736_v4  ;;  %v1741_v11 = vadd.s32 127, %v1740_v22  ;;  %v1757_v53 = vadd.s32 3, %v1753_v19 }
 0x2f5   : > { %v2942_v7 = vsel %vm2935_vm5, %v2938_v63, %v2941_v0  ;;  %v2538_v2 = vadd.s32 1, %v3228_v17  ;;  %v1829_v51 = vadd.s32 536870912, %v1828_v39  ;;  %v2535_v49 = vand.u32 8388607, %v2528_v62 }
 0x2f6   : > { %v2943_v54 = vsel %vm2932_vm10, nan, %v2942_v7  ;;  %v1739_v5 = vor.u32 %v1738_v8, %v1737_v18  ;;  %v1742_v59 = vshll.u32 %v1741_v11, 23  ;;  %v2636_v45 = vshrl.u32 %v2635_v28, 23 }
 0x2f7   : > { %2951 = vst [vmem:[%s4040_s6 + $0x78] sm:$0xff] %v2943_v54  ;;  %vm2539_vm11 = vcmp.gt.s32.totalorder %v2538_v2, 0  ;;  %v4916_v14 = vshrl.u32 %v1829_v51, 30  ;;  %v4919_v21 = vand.u32 3, %v1757_v53  ;;  %v2632_v35 = vand.u32 2147483647, %v4891_v41 }
 0x2f8   : > { %v1743_v32 = vor.u32 4788187, %v1742_v59  ;;  %v2540_v25 = vsel %vm2539_vm11, %v2538_v2, 0  ;;  %v1746_v31 = vcvt.s32.f32 %v1739_v5  ;;  %v2536_v24 = vor.u32 8388608, %v2535_v49 }
 0x2f9   : > { %v2542_v20 = vand.u32 31, %v2540_v25  ;;  %v1831_v12 = vshll.u32 %v4916_v14, 30  ;;  %v3232_v6 = vadd.s32 4294967169, %v2636_v45  ;;  %v2541_v30 = vshrl.u32 %v2540_v25, 5 }
 0x2fa   : > { %v1744_v1 = vand.u32 2147483647, %v1743_v32  ;;  %v1824_v10 = vadd.s32 %v4870_v16, %v4884_v60  ;;  %v2576_v63 = vshll.u32 %v2536_v24, 8  ;;  %vm1770_vm1 = vcmp.lt.s32.totalorder %v4717_v37, 0 }
 0x2fb   : > { %v2543_v44 = vsub.s32 32, %v2542_v20  ;;  %v4922_v58 = vsub.s32 %v1828_v39, %v1831_v12  ;;  %v2545_v50 = vshll.u32 %v3549_v38, %v2542_v20  ;;  %v2548_v52 = vshll.u32 %v3550_v40, %v2542_v20 }
 0x2fc   : > { %v1747_v15 = vmul.f32 %v1746_v31, %v1744_v1  ;;  %v2551_v19 = vshll.u32 %v3551_v42, %v2542_v20  ;;  %v2554_v56 = vshll.u32 %v3552_v43, %v2542_v20  ;;  %v2557_v4 = vshll.u32 %v3553_v46, %v2542_v20 }
 0x2fd   : > { %v2546_v36 = vshrl.u32 %v3550_v40, %v2543_v44  ;;  %v2549_v23 = vshrl.u32 %v3551_v42, %v2543_v44  ;;  %v1834_v48 = vsub.s32 0, %v4922_v58  ;;  %v2552_v61 = vshrl.u32 %v3552_v43, %v2543_v44 }
 0x2fe   : > { %v1748_v47 = vxor.u32 2147483648, %v1747_v15  ;;  %v2555_v26 = vshrl.u32 %v3553_v46, %v2543_v44  ;;  %v2558_v18 = vshrl.u32 %v3554_v55, %v2543_v44  ;;  %v2544_v8 = vshrl.u32 %v3549_v38, %v2543_v44 }
 0x2ff   : > { %v2547_v33 = vor.u32 %v2546_v36, %v2545_v50  ;;  %v3201_v34 = vmin.u32 %v1834_v48, %v4922_v58  ;;  %v2550_v57 = vor.u32 %v2549_v23, %v2548_v52  ;;  %v2553_v28 = vor.u32 %v2552_v61, %v2551_v19 }
 0x300   : > { %v1749_v9 = vsel %vm1666_vm4, %v1748_v47, %v1747_v15  ;;  %v2556_v0 = vor.u32 %v2555_v26, %v2554_v56  ;;  %v2559_v11 = vor.u32 %v2558_v18, %v2557_v4  ;;  %v2642_v39 = vadd.s32 1, %v3232_v6 }
 0x301   : > { %v1752_v22 = vsel %vm4876_vm3, %v4688_v13, %v1749_v9  ;;  %v1836_v17 = vclz %v3201_v34  ;;  %vm2560_vm12 = vcmp.lt.s32.totalorder %v2541_v30, 1  ;;  %vm2562_vm13 = vcmp.lt.s32.totalorder %v2541_v30, 3 }
 0x302   : > { %3433 = vcosq.f32 %v1752_v22  ;;  %vm2563_vm14 = vcmp.lt.s32.totalorder %v2541_v30, 4  ;;  %v2568_v2 = vsel %vm2560_vm12, %v2547_v33, %v2550_v57  ;;  %v2572_v5 = vsel %vm2560_vm12, %v2550_v57, %v2553_v28 }
 0x303   : > { %3435 = vsinq.f32 %v1752_v22  ;;  %v3202_v7 = vadd.s32 4294967294, %v1836_v17  ;;  %v2565_v27 = vsel %vm2563_vm14, %v2553_v28, 2102212464  ;;  %v2569_v54 = vsel %vm2563_vm14, %v2556_v0, 920167782 }
 0x304   : > { %vm2561_vm0 = vcmp.lt.s32.totalorder %v2541_v30, 2  ;;  %v2570_v59 = vsel %vm2562_vm13, %v2553_v28, %v2569_v54  ;;  %v2573_v16 = vsel %vm2563_vm14, %v2559_v11, 1326507024  ;;  %v2564_v51 = vsel %vm2560_vm12, %v2544_v8, %v2547_v33 }
 0x305   : > { %vm3203_vm15 = vcmp.lt.s32.totalorder %v3202_v7, 0  ;;  %v2571_v53 = vsel %vm2561_vm0, %v2568_v2, %v2570_v59  ;;  %v2574_v49 = vsel %vm2562_vm13, %v2556_v0, %v2573_v16  ;;  %v2566_v45 = vsel %vm2562_vm13, %v2550_v57, %v2565_v27 }
 0x306   : > { %v1839_v60 = vsel %vm3203_vm15, 0, %v3202_v7  ;;  %v2575_v20 = vsel %vm2561_vm0, %v2572_v5, %v2574_v49  ;;  %vm1756_vm2 = vweird.f32 %v4688_v13  ;;  %vm2643_vm3 = vcmp.gt.s32.totalorder %v2642_v39, 0 }
 0x307   : > { %v1840_v32 = vsub.s32 32, %v1839_v60  ;;  %v1844_v25 = vsub.s32 4294967266, %v1839_v60  ;;  %v4951_v1 = vmul.u32.u64.low %v2576_v63, %v2575_v20  ;;  %v4952_v31 = vmul.u32.u64.high %v2576_v63, %v2575_v20, %v4951_v1 }
 0x308   : > { %v4954_v12 = vmul.u32.u64.low %v2576_v63, %v2571_v53  ;;  %v4955_v44 = vmul.u32.u64.high %v2576_v63, %v2571_v53, %v4954_v12  ;;  %v1841_v15 = vshll.u32 %v4922_v58, %v1839_v60  ;;  %vm1759_vm4 = vcmp.lt.s32.totalorder %v4919_v21, 2 }
 0x309   : > { %v1842_v24 = vshrl.u32 %v1824_v10, %v1840_v32  ;;  %v1845_v6 = vadd.s32 127, %v1844_v25  ;;  %v2567_v50 = vsel %vm2561_vm0, %v2564_v51, %v2566_v45  ;;  %v2639_v36 = vand.u32 8388607, %v2632_v35 }
 0x30a   : > { %v2644_v23 = vsel %vm2643_vm3, %v2642_v39, 0  ;;  %vm1763_vm5 = vcmp.eq.s32.totalorder %v4919_v21, 2  ;;  %vm4966_vm6 = vcmp.le.f32.partialorder %v1768_v3, 0.7853982  ;;  %v1854_v30 = vsub.s32 4, %v4916_v14 }
 0x30b   : > { %v1843_v48 = vor.u32 %v1842_v24, %v1841_v15  ;;  %v1846_v52 = vshll.u32 %v1845_v6, 23  ;;  %v2646_v61 = vand.u32 31, %v2644_v23  ;;  %vm2585_vm7 = vc.u32 %v4952_v31, %v4954_v12 }
 0x30c   : > { %v3434_v47 = vpop.eup %3433  ;;  %v2586_v56 = vadd.s32 1, %v4955_v44  ;;  %v2583_v34 = vmul.u32 %v2576_v63, %v2567_v50  ;;  %vm1760_vm8 = vcmp.eq.s32.totalorder %v4919_v21, 0  ;;  %v2640_v22 = vor.u32 8388608, %v2639_v36 }
 0x30d   : > { %v3436_v33 = vpop.eup %3435  ;;  %v1764_v19 = vxor.u32 2147483648, %v3434_v47  ;;  %v1847_v9 = vor.u32 4788187, %v1846_v52  ;;  %v2647_v57 = vsub.s32 32, %v2646_v61  ;;  %v1850_v18 = vcvt.s32.f32 %v1843_v48 }
 0x30e   : > { %v1761_v26 = vxor.u32 2147483648, %v3436_v33  ;;  %v2587_v3 = vsel %vm2585_vm7, %v2586_v56, %v4955_v44  ;;  %v1855_v8 = vsel %vm1770_vm1, %v1854_v30, %v4916_v14  ;;  %v2645_v2 = vshrl.u32 %v2644_v23, 5 }
 0x30f   : > { %v1765_v4 = vsel %vm1763_vm5, %v1764_v19, %v3436_v33  ;;  %v1848_v0 = vand.u32 2147483647, %v1847_v9  ;;  %v2588_v10 = vadd.s32 %v2587_v3, %v2583_v34  ;;  %v2650_v63 = vshrl.u32 %v3550_v40, %v2647_v57 }
 0x310   : > { %v1762_v28 = vsel %vm1760_vm8, %v3434_v47, %v1761_v26  ;;  %v2653_v11 = vshrl.u32 %v3551_v42, %v2647_v57  ;;  %v2649_v54 = vshll.u32 %v3549_v38, %v2646_v61  ;;  %v2652_v21 = vshll.u32 %v3550_v40, %v2646_v61 }
 0x311   : > { %v1766_v17 = vsel %vm1759_vm4, %v1762_v28, %v1765_v4  ;;  %v1851_v7 = vmul.f32 %v1850_v18, %v1848_v0  ;;  %v2589_v27 = vadd.s32 536870912, %v2588_v10  ;;  %v2656_v5 = vshrl.u32 %v3552_v43, %v2647_v57 }
 0x312   : > { %v1767_v39 = vsel %vm1756_vm2, nan, %v1766_v17  ;;  %v2659_v59 = vshrl.u32 %v3553_v46, %v2647_v57  ;;  %v2655_v60 = vshll.u32 %v3551_v42, %v2646_v61  ;;  %v2658_v13 = vshll.u32 %v3552_v43, %v2646_v61 }
 0x313   : > { %2084 = vst [vmem:[%s4040_s6 + $0x20] sm:$0xff] %v1767_v39  ;;  %v1852_v14 = vxor.u32 2147483648, %v1851_v7  ;;  %v4990_v16 = vshrl.u32 %v2589_v27, 30  ;;  %v2651_v51 = vor.u32 %v2650_v63, %v2649_v54  ;;  %v2654_v53 = vor.u32 %v2653_v11, %v2652_v21 }
 0x314   : > { %v2661_v49 = vshll.u32 %v3553_v46, %v2646_v61  ;;  %v2662_v32 = vshrl.u32 %v3554_v55, %v2647_v57  ;;  %v1857_v25 = vsel %vm4966_vm6, 0, %v1855_v8  ;;  %v2660_v20 = vor.u32 %v2659_v59, %v2658_v13 }
 0x315   : > { %v1853_v40 = vsel %vm1770_vm1, %v1852_v14, %v1851_v7  ;;  %v2591_v45 = vshll.u32 %v4990_v16, 30  ;;  %v2657_v43 = vor.u32 %v2656_v5, %v2655_v60  ;;  %vm2664_vm9 = vcmp.lt.s32.totalorder %v2645_v2, 1 }
 0x316   : > { %v1856_v42 = vsel %vm4966_vm6, %v4717_v37, %v1853_v40  ;;  %v2663_v1 = vor.u32 %v2662_v32, %v2661_v49  ;;  %v2680_v46 = vshll.u32 %v2640_v22, 8  ;;  %v1861_v55 = vadd.s32 3, %v1857_v25 }
 0x317   : > { %3437 = vcosq.f32 %v1856_v42  ;;  %v2592_v44 = vsub.s32 %v2588_v10, %v2591_v45  ;;  %vm2667_vm10 = vcmp.lt.s32.totalorder %v2645_v2, 4  ;;  %v2672_v15 = vsel %vm2664_vm9, %v2651_v51, %v2654_v53 }
 0x318   : > { %3439 = vsinq.f32 %v1856_v42  ;;  %vm2665_vm11 = vcmp.lt.s32.totalorder %v2645_v2, 2  ;;  %vm2666_vm12 = vcmp.lt.s32.totalorder %v2645_v2, 3  ;;  %v2673_v6 = vsel %vm2667_vm10, %v2660_v20, 920167782 }
 0x319   : > { %v2594_v24 = vsub.s32 0, %v2592_v44  ;;  %v2669_v50 = vsel %vm2667_vm10, %v2657_v43, 2102212464  ;;  %v2674_v36 = vsel %vm2666_vm12, %v2657_v43, %v2673_v6  ;;  %v2676_v23 = vsel %vm2664_vm9, %v2654_v53, %v2657_v43 }
 0x31a   : > { %v2677_v47 = vsel %vm2667_vm10, %v2663_v1, 1326507024  ;;  %v2648_v52 = vshrl.u32 %v3549_v38, %v2647_v57  ;;  %v2675_v61 = vsel %vm2665_vm11, %v2672_v15, %v2674_v36  ;;  %v1862_v56 = vand.u32 3, %v1861_v55 }
 0x31b   : > { %v3229_v48 = vmin.u32 %v2594_v24, %v2592_v44  ;;  %v2678_v33 = vsel %vm2666_vm12, %v2660_v20, %v2677_v47  ;;  %v5009_v58 = vmul.u32.u64.low %v2680_v46, %v2675_v61  ;;  %v5010_v30 = vmul.u32.u64.high %v2680_v46, %v2675_v61, %v5009_v58 }
 0x31c   : > { %v2679_v19 = vsel %vm2665_vm11, %v2676_v23, %v2678_v33  ;;  %v2668_v9 = vsel %vm2664_vm9, %v2648_v52, %v2651_v51  ;;  %v2670_v34 = vsel %vm2666_vm12, %v2654_v53, %v2669_v50  ;;  %vm1863_vm13 = vcmp.lt.s32.totalorder %v1862_v56, 2 }
 0x31d   : > { %v2596_v26 = vclz %v3229_v48  ;;  %v5014_v4 = vmul.u32.u64.low %v2680_v46, %v2679_v19  ;;  %v5015_v3 = vmul.u32.u64.high %v2680_v46, %v2679_v19, %v5014_v4  ;;  %v2671_v38 = vsel %vm2665_vm11, %v2668_v9, %v2670_v34 }
 0x31e   : > { %v2690_v57 = vadd.s32 1, %v5010_v30  ;;  %vm1867_vm14 = vcmp.eq.s32.totalorder %v1862_v56, 2  ;;  %v2584_v10 = vadd.s32 %v4954_v12, %v4952_v31  ;;  %v2687_v39 = vmul.u32 %v2680_v46, %v2671_v38 }
 0x31f   : > { %v3230_v22 = vadd.s32 4294967294, %v2596_v26  ;;  %vm2689_vm0 = vc.u32 %v5015_v3, %v5009_v58  ;;  %vm1864_vm1 = vcmp.eq.s32.totalorder %v1862_v56, 0  ;;  %vm1860_vm2 = vweird.f32 %v4717_v37 }
 0x320   : > { %v2691_v2 = vsel %vm2689_vm0, %v2690_v57, %v5010_v30  ;;  %v2614_v45 = vsub.s32 4, %v4990_v16  ;;  %vm2530_vm3 = vcmp.lt.s32.totalorder %v4837_v29, 0  ;;  %vm2529_vm4 = vcmp.le.f32.partialorder %v2528_v62, 0.7853982 }
 0x321   : > { %v3438_v28 = vpop.eup %3437  ;;  %vm3231_vm15 = vcmp.lt.s32.totalorder %v3230_v22, 0  ;;  %v2692_v59 = vadd.s32 %v2691_v2, %v2687_v39  ;;  %v2688_v36 = vadd.s32 %v5009_v58, %v5015_v3  ;;  %vm2620_vm9 = vweird.f32 %v4837_v29 }
 0x322   : > { %v3440_v0 = vpop.eup %3439  ;;  %v1868_v18 = vxor.u32 2147483648, %v3438_v28  ;;  %v2599_v17 = vsel %vm3231_vm15, 0, %v3230_v22  ;;  %v2615_v1 = vsel %vm2530_vm3, %v2614_v45, %v4990_v16  ;;  %vm2634_vm10 = vcmp.lt.s32.totalorder %v4891_v41, 0 }
 0x323   : > { %v1865_v8 = vxor.u32 2147483648, %v3440_v0  ;;  %v2600_v63 = vsub.s32 32, %v2599_v17  ;;  %v2604_v11 = vsub.s32 4294967266, %v2599_v17  ;;  %v2601_v27 = vshll.u32 %v2592_v44, %v2599_v17 }
 0x324   : > { %v1869_v7 = vsel %vm1867_vm14, %v1868_v18, %v3440_v0  ;;  %v2693_v13 = vadd.s32 536870912, %v2692_v59  ;;  %v2617_v15 = vsel %vm2529_vm4, 0, %v2615_v1  ;;  %vm2633_vm11 = vcmp.le.f32.partialorder %v2632_v35, 0.7853982 }
 0x325   : > { %v1866_v54 = vsel %vm1864_vm1, %v3438_v28, %v1865_v8  ;;  %v2602_v21 = vshrl.u32 %v2584_v10, %v2600_v63  ;;  %v2605_v5 = vadd.s32 127, %v2604_v11  ;;  %v2621_v6 = vadd.s32 3, %v2617_v15 }
 0x326   : > { %v1870_v31 = vsel %vm1863_vm13, %v1866_v54, %v1869_v7  ;;  %v2694_v53 = vshrl.u32 %v2693_v13, 30  ;;  %vm2724_vm15 = vweird.f32 %v4891_v41 }
 0x327   : > { %v1871_v12 = vsel %vm1860_vm2, nan, %v1870_v31  ;;  %v2603_v14 = vor.u32 %v2602_v21, %v2601_v27  ;;  %v2606_v60 = vshll.u32 %v2605_v5, 23  ;;  %v2622_v62 = vand.u32 3, %v2621_v6 }
 0x328   : > { %2085 = vst [vmem:[%s4040_s6 + $0x28] sm:$0xff] %v1871_v12  ;;  %v2695_v40 = vshll.u32 %v2694_v53, 30  ;;  %v2718_v28 = vsub.s32 4, %v2694_v53 }
 0x329   : > { %v2607_v51 = vor.u32 4788187, %v2606_v60  ;;  %v2610_v32 = vcvt.s32.f32 %v2603_v14  ;;  %vm2627_vm6 = vcmp.eq.s32.totalorder %v2622_v62, 2  ;;  %vm2624_vm7 = vcmp.eq.s32.totalorder %v2622_v62, 0 }
 0x32a   : > { %v2696_v20 = vsub.s32 %v2692_v59, %v2695_v40  ;;  %vm2623_vm8 = vcmp.lt.s32.totalorder %v2622_v62, 2  ;;  %v2719_v10 = vsel %vm2634_vm10, %v2718_v28, %v2694_v53 }
 0x32b   : > { %v2608_v49 = vand.u32 2147483647, %v2607_v51  ;;  %v2721_v8 = vsel %vm2633_vm11, 0, %v2719_v10 }
 0x32c   : > { %v2698_v43 = vsub.s32 0, %v2696_v20 }
 0x32d   : > { %v2611_v25 = vmul.f32 %v2610_v32, %v2608_v49 }
 0x32e   : > { %v3233_v44 = vmin.u32 %v2698_v43, %v2696_v20 }
 0x32f   : > { %v2612_v42 = vxor.u32 2147483648, %v2611_v25 }
 0x330   : > { %v2700_v55 = vclz %v3233_v44 }
 0x331   : > { %v2613_v37 = vsel %vm2530_vm3, %v2612_v42, %v2611_v25 }
 0x332   : > { %v2616_v46 = vsel %vm2529_vm4, %v4837_v29, %v2613_v37  ;;  %v3234_v24 = vadd.s32 4294967294, %v2700_v55  ;;  %v2725_v29 = vadd.s32 3, %v2721_v8 }
 0x333   : > { %3441 = vcosq.f32 %v2616_v46 }
 0x334   : > { %3443 = vsinq.f32 %v2616_v46  ;;  %vm3235_vm5 = vcmp.lt.s32.totalorder %v3234_v24, 0  ;;  %v2726_v63 = vand.u32 3, %v2725_v29 }
 0x335   : > { %v2703_v50 = vsel %vm3235_vm5, 0, %v3234_v24 }
 0x336   : > { %v2704_v23 = vsub.s32 32, %v2703_v50  ;;  %v2708_v47 = vsub.s32 4294967266, %v2703_v50  ;;  %v2705_v48 = vshll.u32 %v2696_v20, %v2703_v50  ;;  %vm2731_vm12 = vcmp.eq.s32.totalorder %v2726_v63, 2 }
 0x337   : > { %vm2728_vm13 = vcmp.eq.s32.totalorder %v2726_v63, 0  ;;  %vm2727_vm14 = vcmp.lt.s32.totalorder %v2726_v63, 2 }
 0x338   : > { %v2706_v52 = vshrl.u32 %v2688_v36, %v2704_v23  ;;  %v2709_v16 = vadd.s32 127, %v2708_v47 }
 0x33a   : > { %v2707_v33 = vor.u32 %v2706_v52, %v2705_v48  ;;  %v2710_v19 = vshll.u32 %v2709_v16, 23 }
 0x33c   : > { %v2711_v9 = vor.u32 4788187, %v2710_v19  ;;  %v2714_v3 = vcvt.s32.f32 %v2707_v33 }
 0x33d   : > { %v3442_v61 = vpop.eup %3441 }
 0x33e   : > { %v3444_v30 = vpop.eup %3443  ;;  %v2628_v56 = vxor.u32 2147483648, %v3442_v61  ;;  %v2712_v58 = vand.u32 2147483647, %v2711_v9 }
 0x33f   : > { %v2625_v26 = vxor.u32 2147483648, %v3444_v30 }
 0x340   : > { %v2629_v34 = vsel %vm2627_vm6, %v2628_v56, %v3444_v30  ;;  %v2715_v57 = vmul.f32 %v2714_v3, %v2712_v58 }
 0x341   : > { %v2626_v4 = vsel %vm2624_vm7, %v3442_v61, %v2625_v26 }
 0x342   : > { %v2630_v22 = vsel %vm2623_vm8, %v2626_v4, %v2629_v34  ;;  %v2716_v0 = vxor.u32 2147483648, %v2715_v57 }
 0x343   : > { %v2631_v38 = vsel %vm2620_vm9, nan, %v2630_v22 }
 0x344   : > { %2948 = vst [vmem:[%s4040_s6 + $0x60] sm:$0xff] %v2631_v38  ;;  %v2717_v18 = vsel %vm2634_vm10, %v2716_v0, %v2715_v57 }
 0x345   : > { %v2720_v17 = vsel %vm2633_vm11, %v4891_v41, %v2717_v18 }
 0x346   : > { %3445 = vcosq.f32 %v2720_v17 }
 0x347   : > { %3447 = vsinq.f32 %v2720_v17 }
 0x350   : > { %v3446_v11 = vpop.eup %3445 }
 0x351   : > { %v3448_v39 = vpop.eup %3447  ;;  %v2732_v7 = vxor.u32 2147483648, %v3446_v11 }
 0x352   : > { %v2729_v27 = vxor.u32 2147483648, %v3448_v39 }
 0x353   : > { %v2733_v35 = vsel %vm2731_vm12, %v2732_v7, %v3448_v39 }
 0x354   : > { %v2730_v2 = vsel %vm2728_vm13, %v3446_v11, %v2729_v27 }
 0x355   : > { %v2734_v54 = vsel %vm2727_vm14, %v2730_v2, %v2733_v35 }
 0x356   : > { %v2735_v21 = vsel %vm2724_vm15, nan, %v2734_v54 }
 0x357   : > { %2949 = vst [vmem:[%s4040_s6 + $0x68] sm:$0xff] %v2735_v21 }
 0x358   : > { %3490 = shalt.err (!%p3487_p7)
}
 0x359   : > { %s3491_s22 = scalar_lea.hbm %s5046_s11, 2048  ;;  %s3495_s28 = scalar_lea.hbm %s5099_s4, 4096 }
 0x35a   : > { %p3492_p8 = scmp.ne.s32.totalorder %s5046_s11, %s3491_s22  ;;  %p3496_p1 = scmp.lt.u32.totalorder %s5046_s11, %s5099_s4 }
 0x35b   : > { %p3497_p0 = scmp.lt.u32.totalorder %s3495_s28, %s3491_s22  ;;  %p3499_p6 = scmp.lt.u32.totalorder %s3491_s22, %s5046_s11 }
 0x35c   : > { %p3493_p11 = pnand %p3492_p8, %p5138_p9 }
 0x35d   : > { %p3498_p5 = por %p3497_p0, %p3496_p1 }
 0x35e   : > { %p3494_p13 = pneg %p3493_p11 }
 0x35f   : > { %p3500_p10 = por %p3499_p6, %p3498_p5 }
 0x361   : > { %p3501_p12 = pnand %p3500_p10, %p3494_p13 }
 0x363   : > { %3504 = shalt.err (!%p3501_p12)
}
 0x364   : > { %s3556_s5 = smov 256   ;;  %s3557_s6 = smov 16  }
 0x365   : > { %3318 = dma.vmem_to_hbm [thread:$0]  (%p5138_p9), %s5048_s8, 2048, %s5046_s11, %s5054_s19, %s3556_s5, %s3556_s5, %s3557_s6  }
 0x366 PF: > { %p3330_p2 = scmp.ge.s32.totalorder %s3543_s18, 2  ;;  %s2981_s7 = sand.u32 1, %s3531_s15  }
 0x367   : > { %p5139_p3 = scmp.ne.s32.totalorder %s5104_s26, 0  ;;  %s2982_s9 = scalar_lea.sflag [#allocation4], %s2981_s7 }
 0x369   : > { %p3325_p4 = pnand %p3330_p2, %p5139_p3 }
 0x36b   : > { %3526 = dma.done.wait (!%p3325_p4), %s2982_s9, 2048  }
 0x36c   : > { %3528 = vsyncadd (!%p3325_p4), %s2982_s9, 4294965248  ;;  %p15_p7 = scmp.ge.s32.totalorder %s3608_s21, 4   ;;  %s5140_s15 = smov %s3535_s16 }
 0x36d   : > { %s5141_s16 = smov %s3539_s17  ;;  %s5142_s17 = smov %s3619_s24 }
 0x36e   : > { %s5143_s18 = smov %s3608_s21  ;;  %17 = sbr.rel (!%p15_p7) target bundleno = 4 (0x4), region = 76 }
 0x375   :  { %2987 = vsyncpa [#allocation3], 1 }
 0x376   :  { %2989 = vsyncpa [#allocation3 + $0x1], 1 }
 0x377   :  { %2990 = vsyncpa [#allocation4], 1 }
 0x378   :  { %2992 = vsyncpa [#allocation4 + $0x1], 1 }

</bundles_post_ra>
